<compile_context>
chip_gen: v7x
topology: tpu7x:2x2x1
jax: 0.10.0
libtpu: 0.0.40
codegen_flags: <defaults>
</compile_context>

<pallas_src>
import jax
import jax.numpy as jnp
from jax.experimental import pallas as pl
from jax.experimental.pallas import tpu as pltpu

LANE = 128


def _round_up(x, m):
    return (x + m - 1) // m * m


def _fold_bn(gamma, beta, mean, var, eps):
    scale = gamma / jnp.sqrt(var + eps)
    bias = beta - mean * scale
    return scale, bias


def _pad_cols(a, n):
    return jnp.pad(a, [(0, 0)] * (a.ndim - 1) + [(0, n - a.shape[-1])])


def _make_kernel(stride, h1, w1, need_proj):
    """Build the fused BasicBlock kernel, specialized on stride / shortcut type."""

    def body(x_ref, w1c_ref, s1_ref, b1_ref, w2c_ref, s2_ref, b2_ref,
             ws_ref, ss_ref, bs_ref, o_ref, hpad_ref):
        # x_ref  : (tb, s, s, hb, wb, Cin_p) bf16  -- polyphase-split padded input
        # w1c_ref: (9*Cin_p, Cout_p) bf16          -- conv1, taps concatenated along K
        # w2c_ref: (9*Cout_p, Cout_p) bf16         -- conv2, taps concatenated along K
        # ws_ref : (Cin_p, Cout_p) bf16 or None    -- 1x1 projection shortcut
        # s*/b*  : (1, Cout_p) f32                 -- folded BatchNorm scale / bias
        # o_ref  : (tb, h1, w1, Cout_p)
        # hpad   : (tb, h1+2, w1+2, Cout_p) bf16 VMEM scratch for conv2's 3x3 window
        tb = x_ref.shape[0]
        c_in = x_ref.shape[-1]
        c_out = o_ref.shape[-1]
        m = tb * h1 * w1

        def tap(ky, kx):
            # tap (ky,kx) at stride s: x_pad[s*y+ky, s*x+kx] == x_ref[ky%s, kx%s, y+ky//s, x+kx//s]
            kyp, ky2 = ky % stride, ky // stride
            kxp, kx2 = kx % stride, kx // stride
            t = x_ref[:, kyp:kyp + 1, kxp:kxp + 1,
                      ky2:ky2 + h1, kx2:kx2 + w1, :]
            return t.reshape(m, c_in)

        # ---- conv1: K-concat the 9 taps (VMEM -> VMEM), one MXU matmul, f32 accumulate
        a1 = jnp.concatenate([tap(ky, kx) for ky in range(3) for kx in range(3)],
                             axis=-1)                                   # (m, 9*Cin_p) bf16
        h = jnp.dot(a1, w1c_ref[...], preferred_element_type=jnp.float32)
        h = jnp.maximum(h * s1_ref[...] + b1_ref[...], 0.0)             # folded bn1 + ReLU

        # ---- stage h into the spatially padded scratch; zero only the 1-pixel halo
        zrow = jnp.zeros((tb, 1, w1 + 2, c_out), hpad_ref.dtype)
        zcol = jnp.zeros((tb, h1, 1, c_out), hpad_ref.dtype)
        hpad_ref[:, 0:1, :, :] = zrow
        hpad_ref[:, h1 + 1:h1 + 2, :, :] = zrow
        hpad_ref[:, 1:h1 + 1, 0:1, :] = zcol
        hpad_ref[:, 1:h1 + 1, w1 + 1:w1 + 2, :] = zcol
        hpad_ref[:, 1:h1 + 1, 1:w1 + 1, :] = (
            h.astype(hpad_ref.dtype).reshape(tb, h1, w1, c_out))

        # ---- conv2 (3x3, stride 1): K-concat taps from the padded scratch, one matmul
        a2 = jnp.concatenate(
            [hpad_ref[:, ky:ky + h1, kx:kx + w1, :].reshape(m, c_out)
             for ky in range(3) for kx in range(3)], axis=-1)           # (m, 9*Cout_p) bf16
        y = jnp.dot(a2, w2c_ref[...], preferred_element_type=jnp.float32)
        y = y * s2_ref[...] + b2_ref[...]                                # folded bn2

        # ---- shortcut: center tap; identity case skips the matmul entirely
        ctr = tap(1, 1)
        if need_proj:
            sc = jnp.dot(ctr, ws_ref[...], preferred_element_type=jnp.float32)
            sc = sc * ss_ref[...] + bs_ref[...]
        else:
            sc = ctr.astype(jnp.float32)

        # ---- residual add + ReLU, lane-dense store
        o_ref[...] = jnp.maximum(y + sc, 0.0).reshape(
            tb, h1, w1, c_out).astype(o_ref.dtype)

    if need_proj:
        def kernel(x_ref, w1c, s1, b1, w2c, s2, b2, ws, ss, bs, o_ref, hpad_ref):
            body(x_ref, w1c, s1, b1, w2c, s2, b2, ws, ss, bs, o_ref, hpad_ref)
    else:
        def kernel(x_ref, w1c, s1, b1, w2c, s2, b2, o_ref, hpad_ref):
            body(x_ref, w1c, s1, b1, w2c, s2, b2, None, None, None, o_ref, hpad_ref)
    return kernel


def basic_block_forward(x_nchw, params, *, stride=1, eps=1e-5, tile_b=1,
                        out_dtype=jnp.float32):
    """Fused BasicBlock forward. x_nchw: (N, C_in, H, W) f32 -> (N, planes, H1, W1)."""
    conv1_w = params["conv1_w"]            # (planes, in_planes, 3, 3)
    conv2_w = params["conv2_w"]            # (planes, planes, 3, 3)
    bn1, bn2 = params["bn1"], params["bn2"]
    shortcut = params["shortcut"]          # None, or (sc_conv_w, bn_s)

    n, c_in, h, w = x_nchw.shape
    planes = conv1_w.shape[0]
    h1 = (h + 2 - 3) // stride + 1
    w1 = (w + 2 - 3) // stride + 1
    need_proj = (stride != 1) or (c_in != planes)
    assert (shortcut is not None) == need_proj
    assert n % tile_b == 0

    c_in_p = _round_up(c_in, LANE)
    c_out_p = _round_up(planes, LANE)

    # --- activations: NCHW -> NHWC, channel pad to 128 lanes, 1-pixel spatial pad, then a
    #     polyphase split of H/W by the stride so the kernel needs only unit-stride slices.
    hb = 2 // stride + h1
    wb = 2 // stride + w1
    x_nhwc = jnp.transpose(x_nchw, (0, 2, 3, 1)).astype(jnp.float32)
    x_cp = jnp.pad(x_nhwc, ((0, 0), (0, 0), (0, 0), (0, c_in_p - c_in)))
    x_sp = jnp.pad(x_cp, ((0, 0),
                          (1, 1 + hb * stride - (h + 2)),
                          (1, 1 + wb * stride - (w + 2)), (0, 0)))
    x_r = x_sp.reshape(n, hb, stride, wb, stride, c_in_p)
    x_r = jnp.transpose(x_r, (0, 2, 4, 1, 3, 5)).astype(jnp.bfloat16)   # (n,s,s,hb,wb,Cp)

    # --- weights: OIHW -> K-concatenated (9*Cin_p, Cout_p), bf16 MXU operands.
    def conv3x3_to_kcat(w_oihw, cin, cin_pad, cout, cout_pad):
        w_t = jnp.transpose(w_oihw, (2, 3, 1, 0)).reshape(9, cin, cout)
        w_t = jnp.pad(w_t, ((0, 0), (0, cin_pad - cin), (0, cout_pad - cout)))
        return w_t.reshape(9 * cin_pad, cout_pad).astype(jnp.bfloat16)

    w1_cat = conv3x3_to_kcat(conv1_w, c_in, c_in_p, planes, c_out_p)
    w2_cat = conv3x3_to_kcat(conv2_w, planes, c_out_p, planes, c_out_p)

    # --- fold eval-mode BatchNorm into per-channel scale/bias; padded channels -> 0.
    def folded(bn_p):
        g, b, mu, v = bn_p
        s, bb = _fold_bn(g, b, mu, v, eps)
        return (_pad_cols(s.reshape(1, -1).astype(jnp.float32), c_out_p),
                _pad_cols(bb.reshape(1, -1).astype(jnp.float32), c_out_p))

    s1, b1 = folded(bn1)
    s2, b2 = folded(bn2)

    args = [x_r, w1_cat, s1, b1, w2_cat, s2, b2]
    in_specs = [
        pl.BlockSpec((tile_b, stride, stride, hb, wb, c_in_p),
                     lambda i: (i, 0, 0, 0, 0, 0)),
        pl.BlockSpec((9 * c_in_p, c_out_p), lambda i: (0, 0)),
        pl.BlockSpec((1, c_out_p), lambda i: (0, 0)),
        pl.BlockSpec((1, c_out_p), lambda i: (0, 0)),
        pl.BlockSpec((9 * c_out_p, c_out_p), lambda i: (0, 0)),
        pl.BlockSpec((1, c_out_p), lambda i: (0, 0)),
        pl.BlockSpec((1, c_out_p), lambda i: (0, 0)),
    ]
    ws = None
    if need_proj:
        sc_w, bn_s = shortcut
        ws = jnp.transpose(sc_w.reshape(planes, c_in), (1, 0))
        ws = jnp.pad(ws, ((0, c_in_p - c_in), (0, c_out_p - planes))).astype(jnp.bfloat16)
        ss, bs = folded(bn_s)
        args += [ws, ss, bs]
        in_specs += [
            pl.BlockSpec((c_in_p, c_out_p), lambda i: (0, 0)),
            pl.BlockSpec((1, c_out_p), lambda i: (0, 0)),
            pl.BlockSpec((1, c_out_p), lambda i: (0, 0)),
        ]

    # --- cost estimate + explicit VMEM budget (re-derived; capped below v7x 64 MiB physical)
    out_isz = jnp.dtype(out_dtype).itemsize
    m_rows = tile_b * h1 * w1
    n_steps = n // tile_b
    flops = 2 * m_rows * c_out_p * (9 * c_in_p + 9 * c_out_p
                                    + (c_in_p if need_proj else 0)) * n_steps
    w_bytes = (w1_cat.size + w2_cat.size) * 2 + (ws.size * 2 if need_proj else 0) \
        + 6 * c_out_p * 4
    bytes_accessed = int(x_r.size * 2 + n * h1 * w1 * c_out_p * out_isz + w_bytes)
    cost = pl.CostEstimate(flops=int(flops), transcendentals=0,
                           bytes_accessed=bytes_accessed)

    x_blk = tile_b * stride * stride * hb * wb * c_in_p * 2
    o_blk = tile_b * h1 * w1 * c_out_p * out_isz
    hpad_b = tile_b * (h1 + 2) * (w1 + 2) * c_out_p * 2
    im2col = m_rows * 9 * max(c_in_p, c_out_p) * 2
    est = (2 * (x_blk + o_blk) + hpad_b + w_bytes + 2 * im2col
           + 3 * m_rows * c_out_p * 4 + (4 << 20))
    vmem_limit = int(min(max(est, 32 << 20), 56 << 20))

    kernel = _make_kernel(stride, h1, w1, need_proj)
    out_padded = pl.pallas_call(
        kernel,
        out_shape=jax.ShapeDtypeStruct((n, h1, w1, c_out_p), out_dtype),
        grid_spec=pltpu.PrefetchScalarGridSpec(
            num_scalar_prefetch=0,
            grid=(n // tile_b,),
            in_specs=in_specs,
            out_specs=pl.BlockSpec((tile_b, h1, w1, c_out_p), lambda i: (i, 0, 0, 0)),
            scratch_shapes=[pltpu.VMEM((tile_b, h1 + 2, w1 + 2, c_out_p), jnp.bfloat16)],
        ),
        compiler_params=pltpu.CompilerParams(
            dimension_semantics=("parallel",),
            vmem_limit_bytes=vmem_limit,
        ),
        cost_estimate=cost,
    )(*args)

    out = out_padded[..., :planes]                 # drop lane padding
    return jnp.transpose(out, (0, 3, 1, 2)).astype(jnp.float32)   # NHWC -> NCHW


# ---------------- pure-JAX reference (eval-mode BN, bf16-quantized operands) ----------------
def basic_block_reference(x_nchw, params, *, stride=1, eps=1e-5):
    q = lambda t: t.astype(jnp.bfloat16).astype(jnp.float32)

    def conv(x, w, s, pad):
        return jax.lax.conv_general_dilated(
            q(x), q(w), window_strides=(s, s), padding=pad,
            dimension_numbers=("NCHW", "OIHW", "NCHW"))

    def bn(x, p):
        g, b, m, v = p
        inv = g / jnp.sqrt(v + eps)
        return x * inv[None, :, None, None] + (b - m * inv)[None, :, None, None]

    out = jax.nn.relu(bn(conv(x_nchw, params["conv1_w"], stride, [(1, 1), (1, 1)]), params["bn1"]))
    out = bn(conv(out, params["conv2_w"], 1, [(1, 1), (1, 1)]), params["bn2"])
    if params["shortcut"] is not None:
        sc_w, bn_s = params["shortcut"]
        sc = bn(conv(x_nchw, sc_w, stride, [(0, 0), (0, 0)]), bn_s)
    else:
        sc = q(x_nchw)
    return jax.nn.relu(out + sc)


def make_params(key, in_planes, planes, stride):
    ks = jax.random.split(key, 16)

    def conv_init(k, shape):
        fan_in = shape[1] * shape[2] * shape[3]
        bound = 1.0 / (fan_in ** 0.5)
        return jax.random.uniform(k, shape, jnp.float32, -bound, bound)

    def bn_init(k1, k2, k3, k4, c):
        g = 1.0 + 0.1 * jax.random.normal(k1, (c,), jnp.float32)
        b = 0.1 * jax.random.normal(k2, (c,), jnp.float32)
        m = 0.1 * jax.random.normal(k3, (c,), jnp.float32)
        v = jax.random.uniform(k4, (c,), jnp.float32, 0.5, 1.5)
        return (g, b, m, v)

    params = {
        "conv1_w": conv_init(ks[0], (planes, in_planes, 3, 3)),
        "bn1": bn_init(ks[1], ks[2], ks[3], ks[4], planes),
        "conv2_w": conv_init(ks[5], (planes, planes, 3, 3)),
        "bn2": bn_init(ks[6], ks[7], ks[8], ks[9], planes),
    }
    if stride != 1 or in_planes != planes:
        params["shortcut"] = (conv_init(ks[10], (planes, in_planes, 1, 1)),
                              bn_init(ks[11], ks[12], ks[13], ks[14], planes))
    else:
        params["shortcut"] = None
    return params


if __name__ == "__main__":
    key = jax.random.PRNGKey(0)
    k_x1, k_p1, k_x2, k_p2 = jax.random.split(key, 4)

    # Case 1: downsampling block (stride=2, projection shortcut): (2,4,16,16) -> (2,8,8,8)
    x1 = jax.random.normal(k_x1, (2, 4, 16, 16), jnp.float32)
    p1 = make_params(k_p1, 4, 8, 2)
    out1 = jax.block_until_ready(basic_block_forward(x1, p1, stride=2))
    ref1 = basic_block_reference(x1, p1, stride=2)
    assert out1.shape == (2, 8, 8, 8)
    assert jnp.allclose(out1, ref1, atol=2e-3, rtol=2e-3), (
        f"case1 mismatch, max abs err {jnp.max(jnp.abs(out1 - ref1))}")

    # Case 2: identity-shortcut block (stride=1, in_planes==planes): (2,8,8,8) -> (2,8,8,8)
    x2 = jax.random.normal(k_x2, (2, 8, 8, 8), jnp.float32)
    p2 = make_params(k_p2, 8, 8, 1)
    out2 = jax.block_until_ready(basic_block_forward(x2, p2, stride=1))
    ref2 = basic_block_reference(x2, p2, stride=1)
    assert out2.shape == (2, 8, 8, 8)
    assert jnp.allclose(out2, ref2, atol=2e-3, rtol=2e-3), (
        f"case2 mismatch, max abs err {jnp.max(jnp.abs(out2 - ref2))}")

    print("KERNEL_OK")
</pallas_src>

<mosaic_0001>
module attributes {stable_mosaic.version = 11 : i64} {
  func.func @kernel(%arg0: i32, %arg1: memref<1x2x2x9x9x128xbf16, #tpu.memory_space<vmem>>, %arg2: memref<1152x128xbf16, #tpu.memory_space<vmem>>, %arg3: memref<1x128xf32, #tpu.memory_space<vmem>>, %arg4: memref<1x128xf32, #tpu.memory_space<vmem>>, %arg5: memref<1152x128xbf16, #tpu.memory_space<vmem>>, %arg6: memref<1x128xf32, #tpu.memory_space<vmem>>, %arg7: memref<1x128xf32, #tpu.memory_space<vmem>>, %arg8: memref<128x128xbf16, #tpu.memory_space<vmem>>, %arg9: memref<1x128xf32, #tpu.memory_space<vmem>>, %arg10: memref<1x128xf32, #tpu.memory_space<vmem>>, %arg11: memref<1x8x8x128xf32, #tpu.memory_space<vmem>>, %arg12: memref<1x10x10x128xbf16, #tpu.memory_space<vmem>>) attributes {dimension_semantics = [#tpu.dimension_semantics<parallel>], iteration_bounds = array<i64: 2>, scalar_prefetch = 0 : i64, scratch_operands = 1 : i64, tpu.core_type = #tpu.core_type<tc>, window_params = [{transform_indices = @transform_0, window_bounds = array<i64: 1, 2, 2, 9, 9, 128>}, {pipeline_mode = #tpu.pipeline_mode<synchronous>, transform_indices = @transform_1, window_bounds = array<i64: 1152, 128>}, {pipeline_mode = #tpu.pipeline_mode<synchronous>, transform_indices = @transform_2, window_bounds = array<i64: 1, 128>}, {pipeline_mode = #tpu.pipeline_mode<synchronous>, transform_indices = @transform_3, window_bounds = array<i64: 1, 128>}, {pipeline_mode = #tpu.pipeline_mode<synchronous>, transform_indices = @transform_4, window_bounds = array<i64: 1152, 128>}, {pipeline_mode = #tpu.pipeline_mode<synchronous>, transform_indices = @transform_5, window_bounds = array<i64: 1, 128>}, {pipeline_mode = #tpu.pipeline_mode<synchronous>, transform_indices = @transform_6, window_bounds = array<i64: 1, 128>}, {pipeline_mode = #tpu.pipeline_mode<synchronous>, transform_indices = @transform_7, window_bounds = array<i64: 128, 128>}, {pipeline_mode = #tpu.pipeline_mode<synchronous>, transform_indices = @transform_8, window_bounds = array<i64: 1, 128>}, {pipeline_mode = #tpu.pipeline_mode<synchronous>, transform_indices = @transform_9, window_bounds = array<i64: 1, 128>}, {transform_indices = @transform_10, window_bounds = array<i64: 1, 8, 8, 128>}]} {
    %c0 = arith.constant 0 : index
    %c0_0 = arith.constant 0 : index
    %c0_1 = arith.constant 0 : index
    %c0_2 = arith.constant 0 : index
    %c0_3 = arith.constant 0 : index
    %c0_4 = arith.constant 0 : index
    %0 = vector.load %arg1[%c0, %c0_0, %c0_1, %c0_2, %c0_3, %c0_4] : memref<1x2x2x9x9x128xbf16, #tpu.memory_space<vmem>>, vector<1x1x1x8x8x128xbf16>
    %1 = vector.shape_cast %0 : vector<1x1x1x8x8x128xbf16> to vector<64x128xbf16>
    %c0_5 = arith.constant 0 : index
    %c0_6 = arith.constant 0 : index
    %c1 = arith.constant 1 : index
    %c0_7 = arith.constant 0 : index
    %c0_8 = arith.constant 0 : index
    %c0_9 = arith.constant 0 : index
    %2 = vector.load %arg1[%c0_5, %c0_6, %c1, %c0_7, %c0_8, %c0_9] : memref<1x2x2x9x9x128xbf16, #tpu.memory_space<vmem>>, vector<1x1x1x8x8x128xbf16>
    %3 = vector.shape_cast %2 : vector<1x1x1x8x8x128xbf16> to vector<64x128xbf16>
    %c0_10 = arith.constant 0 : index
    %c0_11 = arith.constant 0 : index
    %c0_12 = arith.constant 0 : index
    %c0_13 = arith.constant 0 : index
    %c1_14 = arith.constant 1 : index
    %c0_15 = arith.constant 0 : index
    %4 = vector.load %arg1[%c0_10, %c0_11, %c0_12, %c0_13, %c1_14, %c0_15] : memref<1x2x2x9x9x128xbf16, #tpu.memory_space<vmem>>, vector<1x1x1x8x8x128xbf16>
    %5 = vector.shape_cast %4 : vector<1x1x1x8x8x128xbf16> to vector<64x128xbf16>
    %c0_16 = arith.constant 0 : index
    %c1_17 = arith.constant 1 : index
    %c0_18 = arith.constant 0 : index
    %c0_19 = arith.constant 0 : index
    %c0_20 = arith.constant 0 : index
    %c0_21 = arith.constant 0 : index
    %6 = vector.load %arg1[%c0_16, %c1_17, %c0_18, %c0_19, %c0_20, %c0_21] : memref<1x2x2x9x9x128xbf16, #tpu.memory_space<vmem>>, vector<1x1x1x8x8x128xbf16>
    %7 = vector.shape_cast %6 : vector<1x1x1x8x8x128xbf16> to vector<64x128xbf16>
    %c0_22 = arith.constant 0 : index
    %c1_23 = arith.constant 1 : index
    %c1_24 = arith.constant 1 : index
    %c0_25 = arith.constant 0 : index
    %c0_26 = arith.constant 0 : index
    %c0_27 = arith.constant 0 : index
    %8 = vector.load %arg1[%c0_22, %c1_23, %c1_24, %c0_25, %c0_26, %c0_27] : memref<1x2x2x9x9x128xbf16, #tpu.memory_space<vmem>>, vector<1x1x1x8x8x128xbf16>
    %9 = vector.shape_cast %8 : vector<1x1x1x8x8x128xbf16> to vector<64x128xbf16>
    %c0_28 = arith.constant 0 : index
    %c1_29 = arith.constant 1 : index
    %c0_30 = arith.constant 0 : index
    %c0_31 = arith.constant 0 : index
    %c1_32 = arith.constant 1 : index
    %c0_33 = arith.constant 0 : index
    %10 = vector.load %arg1[%c0_28, %c1_29, %c0_30, %c0_31, %c1_32, %c0_33] : memref<1x2x2x9x9x128xbf16, #tpu.memory_space<vmem>>, vector<1x1x1x8x8x128xbf16>
    %11 = vector.shape_cast %10 : vector<1x1x1x8x8x128xbf16> to vector<64x128xbf16>
    %c0_34 = arith.constant 0 : index
    %c0_35 = arith.constant 0 : index
    %c0_36 = arith.constant 0 : index
    %c1_37 = arith.constant 1 : index
    %c0_38 = arith.constant 0 : index
    %c0_39 = arith.constant 0 : index
    %12 = vector.load %arg1[%c0_34, %c0_35, %c0_36, %c1_37, %c0_38, %c0_39] : memref<1x2x2x9x9x128xbf16, #tpu.memory_space<vmem>>, vector<1x1x1x8x8x128xbf16>
    %13 = vector.shape_cast %12 : vector<1x1x1x8x8x128xbf16> to vector<64x128xbf16>
    %c0_40 = arith.constant 0 : index
    %c0_41 = arith.constant 0 : index
    %c1_42 = arith.constant 1 : index
    %c1_43 = arith.constant 1 : index
    %c0_44 = arith.constant 0 : index
    %c0_45 = arith.constant 0 : index
    %14 = vector.load %arg1[%c0_40, %c0_41, %c1_42, %c1_43, %c0_44, %c0_45] : memref<1x2x2x9x9x128xbf16, #tpu.memory_space<vmem>>, vector<1x1x1x8x8x128xbf16>
    %15 = vector.shape_cast %14 : vector<1x1x1x8x8x128xbf16> to vector<64x128xbf16>
    %c0_46 = arith.constant 0 : index
    %c0_47 = arith.constant 0 : index
    %c0_48 = arith.constant 0 : index
    %c1_49 = arith.constant 1 : index
    %c1_50 = arith.constant 1 : index
    %c0_51 = arith.constant 0 : index
    %16 = vector.load %arg1[%c0_46, %c0_47, %c0_48, %c1_49, %c1_50, %c0_51] : memref<1x2x2x9x9x128xbf16, #tpu.memory_space<vmem>>, vector<1x1x1x8x8x128xbf16>
    %17 = vector.shape_cast %16 : vector<1x1x1x8x8x128xbf16> to vector<64x128xbf16>
    %18 = tpu.concatenate %1, %3, %5, %7, %9, %11, %13, %15, %17 in 1 : vector<64x128xbf16>, vector<64x128xbf16>, vector<64x128xbf16>, vector<64x128xbf16>, vector<64x128xbf16>, vector<64x128xbf16>, vector<64x128xbf16>, vector<64x128xbf16>, vector<64x128xbf16> -> vector<64x1152xbf16>
    %c0_52 = arith.constant 0 : index
    %c0_53 = arith.constant 0 : index
    %19 = vector.load %arg2[%c0_52, %c0_53] : memref<1152x128xbf16, #tpu.memory_space<vmem>>, vector<1152x128xbf16>
    %cst = arith.constant dense<0.000000e+00> : vector<64x128xf32>
    %20 = tpu.matmul %18, %19, %cst {dimension_numbers = #tpu.dot_dimension_numbers<[1], [0], [0], [1], [0, 0, 1, 1], [], []>} : vector<64x1152xbf16>, vector<1152x128xbf16>, vector<64x128xf32> -> vector<64x128xf32>
    %c0_54 = arith.constant 0 : index
    %c0_55 = arith.constant 0 : index
    %21 = vector.load %arg3[%c0_54, %c0_55] : memref<1x128xf32, #tpu.memory_space<vmem>>, vector<1x128xf32>
    %22 = vector.broadcast %21 : vector<1x128xf32> to vector<64x128xf32>
    %23 = arith.mulf %20, %22 : vector<64x128xf32>
    %c0_56 = arith.constant 0 : index
    %c0_57 = arith.constant 0 : index
    %24 = vector.load %arg4[%c0_56, %c0_57] : memref<1x128xf32, #tpu.memory_space<vmem>>, vector<1x128xf32>
    %25 = vector.broadcast %24 : vector<1x128xf32> to vector<64x128xf32>
    %26 = arith.addf %23, %25 : vector<64x128xf32>
    %cst_58 = arith.constant 0.000000e+00 : f32
    %27 = vector.broadcast %cst_58 : f32 to vector<64x128xf32>
    %28 = arith.maximumf %26, %27 : vector<64x128xf32>
    %cst_59 = arith.constant 0.000000e+00 : bf16
    %29 = vector.broadcast %cst_59 : bf16 to vector<1x1x10x128xbf16>
    %cst_60 = arith.constant 0.000000e+00 : bf16
    %30 = vector.broadcast %cst_60 : bf16 to vector<1x8x1x128xbf16>
    %c0_61 = arith.constant 0 : index
    %c0_62 = arith.constant 0 : index
    %c0_63 = arith.constant 0 : index
    %c0_64 = arith.constant 0 : index
    %31 = vector.load %arg12[%c0_61, %c0_62, %c0_63, %c0_64] : memref<1x10x10x128xbf16, #tpu.memory_space<vmem>>, vector<1x1x10x128xbf16>
    tpu.vector_store %arg12[%c0_61, %c0_62, %c0_63, %c0_64], %29 {strides = array<i32>} : memref<1x10x10x128xbf16, #tpu.memory_space<vmem>>, vector<1x1x10x128xbf16>,
    %c0_65 = arith.constant 0 : index
    %c9 = arith.constant 9 : index
    %c0_66 = arith.constant 0 : index
    %c0_67 = arith.constant 0 : index
    %32 = vector.load %arg12[%c0_65, %c9, %c0_66, %c0_67] : memref<1x10x10x128xbf16, #tpu.memory_space<vmem>>, vector<1x1x10x128xbf16>
    tpu.vector_store %arg12[%c0_65, %c9, %c0_66, %c0_67], %29 {strides = array<i32>} : memref<1x10x10x128xbf16, #tpu.memory_space<vmem>>, vector<1x1x10x128xbf16>,
    %c0_68 = arith.constant 0 : index
    %c1_69 = arith.constant 1 : index
    %c0_70 = arith.constant 0 : index
    %c0_71 = arith.constant 0 : index
    %33 = vector.load %arg12[%c0_68, %c1_69, %c0_70, %c0_71] : memref<1x10x10x128xbf16, #tpu.memory_space<vmem>>, vector<1x8x1x128xbf16>
    tpu.vector_store %arg12[%c0_68, %c1_69, %c0_70, %c0_71], %30 {strides = array<i32>} : memref<1x10x10x128xbf16, #tpu.memory_space<vmem>>, vector<1x8x1x128xbf16>,
    %c0_72 = arith.constant 0 : index
    %c1_73 = arith.constant 1 : index
    %c9_74 = arith.constant 9 : index
    %c0_75 = arith.constant 0 : index
    %34 = vector.load %arg12[%c0_72, %c1_73, %c9_74, %c0_75] : memref<1x10x10x128xbf16, #tpu.memory_space<vmem>>, vector<1x8x1x128xbf16>
    tpu.vector_store %arg12[%c0_72, %c1_73, %c9_74, %c0_75], %30 {strides = array<i32>} : memref<1x10x10x128xbf16, #tpu.memory_space<vmem>>, vector<1x8x1x128xbf16>,
    %35 = arith.truncf %28 : vector<64x128xf32> to vector<64x128xbf16>
    %36 = vector.shape_cast %35 : vector<64x128xbf16> to vector<1x8x8x128xbf16>
    %c0_76 = arith.constant 0 : index
    %c1_77 = arith.constant 1 : index
    %c1_78 = arith.constant 1 : index
    %c0_79 = arith.constant 0 : index
    %37 = vector.load %arg12[%c0_76, %c1_77, %c1_78, %c0_79] : memref<1x10x10x128xbf16, #tpu.memory_space<vmem>>, vector<1x8x8x128xbf16>
    tpu.vector_store %arg12[%c0_76, %c1_77, %c1_78, %c0_79], %36 {strides = array<i32>} : memref<1x10x10x128xbf16, #tpu.memory_space<vmem>>, vector<1x8x8x128xbf16>,
    %c0_80 = arith.constant 0 : index
    %c0_81 = arith.constant 0 : index
    %c0_82 = arith.constant 0 : index
    %c0_83 = arith.constant 0 : index
    %38 = vector.load %arg12[%c0_80, %c0_81, %c0_82, %c0_83] : memref<1x10x10x128xbf16, #tpu.memory_space<vmem>>, vector<1x8x8x128xbf16>
    %39 = vector.shape_cast %38 : vector<1x8x8x128xbf16> to vector<64x128xbf16>
    %c0_84 = arith.constant 0 : index
    %c0_85 = arith.constant 0 : index
    %c1_86 = arith.constant 1 : index
    %c0_87 = arith.constant 0 : index
    %40 = vector.load %arg12[%c0_84, %c0_85, %c1_86, %c0_87] : memref<1x10x10x128xbf16, #tpu.memory_space<vmem>>, vector<1x8x8x128xbf16>
    %41 = vector.shape_cast %40 : vector<1x8x8x128xbf16> to vector<64x128xbf16>
    %c0_88 = arith.constant 0 : index
    %c0_89 = arith.constant 0 : index
    %c2 = arith.constant 2 : index
    %c0_90 = arith.constant 0 : index
    %42 = vector.load %arg12[%c0_88, %c0_89, %c2, %c0_90] : memref<1x10x10x128xbf16, #tpu.memory_space<vmem>>, vector<1x8x8x128xbf16>
    %43 = vector.shape_cast %42 : vector<1x8x8x128xbf16> to vector<64x128xbf16>
    %c0_91 = arith.constant 0 : index
    %c1_92 = arith.constant 1 : index
    %c0_93 = arith.constant 0 : index
    %c0_94 = arith.constant 0 : index
    %44 = vector.load %arg12[%c0_91, %c1_92, %c0_93, %c0_94] : memref<1x10x10x128xbf16, #tpu.memory_space<vmem>>, vector<1x8x8x128xbf16>
    %45 = vector.shape_cast %44 : vector<1x8x8x128xbf16> to vector<64x128xbf16>
    %c0_95 = arith.constant 0 : index
    %c1_96 = arith.constant 1 : index
    %c1_97 = arith.constant 1 : index
    %c0_98 = arith.constant 0 : index
    %46 = vector.load %arg12[%c0_95, %c1_96, %c1_97, %c0_98] : memref<1x10x10x128xbf16, #tpu.memory_space<vmem>>, vector<1x8x8x128xbf16>
    %47 = vector.shape_cast %46 : vector<1x8x8x128xbf16> to vector<64x128xbf16>
    %c0_99 = arith.constant 0 : index
    %c1_100 = arith.constant 1 : index
    %c2_101 = arith.constant 2 : index
    %c0_102 = arith.constant 0 : index
    %48 = vector.load %arg12[%c0_99, %c1_100, %c2_101, %c0_102] : memref<1x10x10x128xbf16, #tpu.memory_space<vmem>>, vector<1x8x8x128xbf16>
    %49 = vector.shape_cast %48 : vector<1x8x8x128xbf16> to vector<64x128xbf16>
    %c0_103 = arith.constant 0 : index
    %c2_104 = arith.constant 2 : index
    %c0_105 = arith.constant 0 : index
    %c0_106 = arith.constant 0 : index
    %50 = vector.load %arg12[%c0_103, %c2_104, %c0_105, %c0_106] : memref<1x10x10x128xbf16, #tpu.memory_space<vmem>>, vector<1x8x8x128xbf16>
    %51 = vector.shape_cast %50 : vector<1x8x8x128xbf16> to vector<64x128xbf16>
    %c0_107 = arith.constant 0 : index
    %c2_108 = arith.constant 2 : index
    %c1_109 = arith.constant 1 : index
    %c0_110 = arith.constant 0 : index
    %52 = vector.load %arg12[%c0_107, %c2_108, %c1_109, %c0_110] : memref<1x10x10x128xbf16, #tpu.memory_space<vmem>>, vector<1x8x8x128xbf16>
    %53 = vector.shape_cast %52 : vector<1x8x8x128xbf16> to vector<64x128xbf16>
    %c0_111 = arith.constant 0 : index
    %c2_112 = arith.constant 2 : index
    %c2_113 = arith.constant 2 : index
    %c0_114 = arith.constant 0 : index
    %54 = vector.load %arg12[%c0_111, %c2_112, %c2_113, %c0_114] : memref<1x10x10x128xbf16, #tpu.memory_space<vmem>>, vector<1x8x8x128xbf16>
    %55 = vector.shape_cast %54 : vector<1x8x8x128xbf16> to vector<64x128xbf16>
    %56 = tpu.concatenate %39, %41, %43, %45, %47, %49, %51, %53, %55 in 1 : vector<64x128xbf16>, vector<64x128xbf16>, vector<64x128xbf16>, vector<64x128xbf16>, vector<64x128xbf16>, vector<64x128xbf16>, vector<64x128xbf16>, vector<64x128xbf16>, vector<64x128xbf16> -> vector<64x1152xbf16>
    %c0_115 = arith.constant 0 : index
    %c0_116 = arith.constant 0 : index
    %57 = vector.load %arg5[%c0_115, %c0_116] : memref<1152x128xbf16, #tpu.memory_space<vmem>>, vector<1152x128xbf16>
    %cst_117 = arith.constant dense<0.000000e+00> : vector<64x128xf32>
    %58 = tpu.matmul %56, %57, %cst_117 {dimension_numbers = #tpu.dot_dimension_numbers<[1], [0], [0], [1], [0, 0, 1, 1], [], []>} : vector<64x1152xbf16>, vector<1152x128xbf16>, vector<64x128xf32> -> vector<64x128xf32>
    %c0_118 = arith.constant 0 : index
    %c0_119 = arith.constant 0 : index
    %59 = vector.load %arg6[%c0_118, %c0_119] : memref<1x128xf32, #tpu.memory_space<vmem>>, vector<1x128xf32>
    %60 = vector.broadcast %59 : vector<1x128xf32> to vector<64x128xf32>
    %61 = arith.mulf %58, %60 : vector<64x128xf32>
    %c0_120 = arith.constant 0 : index
    %c0_121 = arith.constant 0 : index
    %62 = vector.load %arg7[%c0_120, %c0_121] : memref<1x128xf32, #tpu.memory_space<vmem>>, vector<1x128xf32>
    %63 = vector.broadcast %62 : vector<1x128xf32> to vector<64x128xf32>
    %64 = arith.addf %61, %63 : vector<64x128xf32>
    %c0_122 = arith.constant 0 : index
    %c1_123 = arith.constant 1 : index
    %c1_124 = arith.constant 1 : index
    %c0_125 = arith.constant 0 : index
    %c0_126 = arith.constant 0 : index
    %c0_127 = arith.constant 0 : index
    %65 = vector.load %arg1[%c0_122, %c1_123, %c1_124, %c0_125, %c0_126, %c0_127] : memref<1x2x2x9x9x128xbf16, #tpu.memory_space<vmem>>, vector<1x1x1x8x8x128xbf16>
    %66 = vector.shape_cast %65 : vector<1x1x1x8x8x128xbf16> to vector<64x128xbf16>
    %c0_128 = arith.constant 0 : index
    %c0_129 = arith.constant 0 : index
    %67 = vector.load %arg8[%c0_128, %c0_129] : memref<128x128xbf16, #tpu.memory_space<vmem>>, vector<128x128xbf16>
    %cst_130 = arith.constant dense<0.000000e+00> : vector<64x128xf32>
    %68 = tpu.matmul %66, %67, %cst_130 {dimension_numbers = #tpu.dot_dimension_numbers<[1], [0], [0], [1], [0, 0, 1, 1], [], []>} : vector<64x128xbf16>, vector<128x128xbf16>, vector<64x128xf32> -> vector<64x128xf32>
    %c0_131 = arith.constant 0 : index
    %c0_132 = arith.constant 0 : index
    %69 = vector.load %arg9[%c0_131, %c0_132] : memref<1x128xf32, #tpu.memory_space<vmem>>, vector<1x128xf32>
    %70 = vector.broadcast %69 : vector<1x128xf32> to vector<64x128xf32>
    %71 = arith.mulf %68, %70 : vector<64x128xf32>
    %c0_133 = arith.constant 0 : index
    %c0_134 = arith.constant 0 : index
    %72 = vector.load %arg10[%c0_133, %c0_134] : memref<1x128xf32, #tpu.memory_space<vmem>>, vector<1x128xf32>
    %73 = vector.broadcast %72 : vector<1x128xf32> to vector<64x128xf32>
    %74 = arith.addf %71, %73 : vector<64x128xf32>
    %75 = arith.addf %64, %74 : vector<64x128xf32>
    %cst_135 = arith.constant 0.000000e+00 : f32
    %76 = vector.broadcast %cst_135 : f32 to vector<64x128xf32>
    %77 = arith.maximumf %75, %76 : vector<64x128xf32>
    %78 = vector.shape_cast %77 : vector<64x128xf32> to vector<1x8x8x128xf32>
    %c0_136 = arith.constant 0 : index
    %c0_137 = arith.constant 0 : index
    %c0_138 = arith.constant 0 : index
    %c0_139 = arith.constant 0 : index
    %79 = vector.load %arg11[%c0_136, %c0_137, %c0_138, %c0_139] : memref<1x8x8x128xf32, #tpu.memory_space<vmem>>, vector<1x8x8x128xf32>
    tpu.vector_store %arg11[%c0_136, %c0_137, %c0_138, %c0_139], %78 {strides = array<i32>} : memref<1x8x8x128xf32, #tpu.memory_space<vmem>>, vector<1x8x8x128xf32>,
    return
  }
  func.func @transform_0(%arg0: i32) -> (i32, i32, i32, i32, i32, i32) {
    %c0_i32 = arith.constant 0 : i32
    %c0_i32_0 = arith.constant 0 : i32
    %c0_i32_1 = arith.constant 0 : i32
    %c0_i32_2 = arith.constant 0 : i32
    %c0_i32_3 = arith.constant 0 : i32
    %c0_i32_4 = arith.constant 0 : i32
    return %arg0, %c0_i32, %c0_i32_0, %c0_i32_1, %c0_i32_2, %c0_i32_3 : i32, i32, i32, i32, i32, i32
  }
  func.func @transform_1(%arg0: i32) -> (i32, i32) {
    %c0_i32 = arith.constant 0 : i32
    %c0_i32_0 = arith.constant 0 : i32
    %c0_i32_1 = arith.constant 0 : i32
    return %c0_i32, %c0_i32_0 : i32, i32
  }
  func.func @transform_2(%arg0: i32) -> (i32, i32) {
    %c0_i32 = arith.constant 0 : i32
    %c0_i32_0 = arith.constant 0 : i32
    %c0_i32_1 = arith.constant 0 : i32
    return %c0_i32, %c0_i32_0 : i32, i32
  }
  func.func @transform_3(%arg0: i32) -> (i32, i32) {
    %c0_i32 = arith.constant 0 : i32
    %c0_i32_0 = arith.constant 0 : i32
    %c0_i32_1 = arith.constant 0 : i32
    return %c0_i32, %c0_i32_0 : i32, i32
  }
  func.func @transform_4(%arg0: i32) -> (i32, i32) {
    %c0_i32 = arith.constant 0 : i32
    %c0_i32_0 = arith.constant 0 : i32
    %c0_i32_1 = arith.constant 0 : i32
    return %c0_i32, %c0_i32_0 : i32, i32
  }
  func.func @transform_5(%arg0: i32) -> (i32, i32) {
    %c0_i32 = arith.constant 0 : i32
    %c0_i32_0 = arith.constant 0 : i32
    %c0_i32_1 = arith.constant 0 : i32
    return %c0_i32, %c0_i32_0 : i32, i32
  }
  func.func @transform_6(%arg0: i32) -> (i32, i32) {
    %c0_i32 = arith.constant 0 : i32
    %c0_i32_0 = arith.constant 0 : i32
    %c0_i32_1 = arith.constant 0 : i32
    return %c0_i32, %c0_i32_0 : i32, i32
  }
  func.func @transform_7(%arg0: i32) -> (i32, i32) {
    %c0_i32 = arith.constant 0 : i32
    %c0_i32_0 = arith.constant 0 : i32
    %c0_i32_1 = arith.constant 0 : i32
    return %c0_i32, %c0_i32_0 : i32, i32
  }
  func.func @transform_8(%arg0: i32) -> (i32, i32) {
    %c0_i32 = arith.constant 0 : i32
    %c0_i32_0 = arith.constant 0 : i32
    %c0_i32_1 = arith.constant 0 : i32
    return %c0_i32, %c0_i32_0 : i32, i32
  }
  func.func @transform_9(%arg0: i32) -> (i32, i32) {
    %c0_i32 = arith.constant 0 : i32
    %c0_i32_0 = arith.constant 0 : i32
    %c0_i32_1 = arith.constant 0 : i32
    return %c0_i32, %c0_i32_0 : i32, i32
  }
  func.func @transform_10(%arg0: i32) -> (i32, i32, i32, i32) {
    %c0_i32 = arith.constant 0 : i32
    %c0_i32_0 = arith.constant 0 : i32
    %c0_i32_1 = arith.constant 0 : i32
    %c0_i32_2 = arith.constant 0 : i32
    return %arg0, %c0_i32, %c0_i32_0, %c0_i32_1 : i32, i32, i32, i32
  }
}

</mosaic_0001>

<bundles_post_ra>
// kernel: tpu_custom_call.1
= control target key start
LH: loop header
LB: loop body
LE: loop exit
PB: predicated region body
PF: predicated region fallthrough
CT: control target
= control target key end

     0   :  { %15 = vsyncpa [#allocation4], 0  ;;  %s6441_s0 = inlined_call_operand.vmem [shape: bf16[2,2,2,9,9,128], index: 0, kind: input, shape index: {}]   ;;  %s6442_s1 = inlined_call_operand.vmem [shape: bf16[1152,128], index: 1, kind: input, shape index: {}]   ;;  %s6443_s2 = inlined_call_operand.vmem [shape: f32[1,128], index: 2, kind: input, shape index: {}]   ;;  %s6444_s3 = inlined_call_operand.vmem [shape: f32[1,128], index: 3, kind: input, shape index: {}]   ;;  %s6445_s4 = inlined_call_operand.hbm [shape: bf16[1152,128], index: 4, kind: input, shape index: {}]   ;;  %s6446_s5 = inlined_call_operand.vmem [shape: f32[1,128], index: 5, kind: input, shape index: {}]   ;;  %s6447_s6 = inlined_call_operand.vmem [shape: f32[1,128], index: 6, kind: input, shape index: {}]   ;;  %s6448_s7 = inlined_call_operand.vmem [shape: bf16[128,128], index: 7, kind: input, shape index: {}]   ;;  %s6449_s8 = inlined_call_operand.vmem [shape: f32[1,128], index: 8, kind: input, shape index: {}]   ;;  %s6450_s9 = inlined_call_operand.vmem [shape: f32[1,128], index: 9, kind: input, shape index: {}]   ;;  %s6451_s10 = inlined_call_operand.hbm [shape: f32[2,8,8,128], index: 10, kind: output, shape index: {}]  }
   0x1   :  { %16 = vsyncpa [#allocation5], 0 }
   0x2   :  { %18 = vsyncpa [#allocation5 + $0x1], 0  ;;  %s5296_s13 = smov 0   ;;  %s5298_s14 = smov 0  }
   0x3   :  { %s5300_s15 = smov 0   ;;  %s5302_s16 = smov 0  }
   0x4 LB: > { %s5317_s17 = sadd.s32 4294967295, %s5232_s16   ;;  %s4092_s18 = sadd.s32 4294967294, %s5232_s16   ;;  %s5232_s16 = sphi %s5302_s16, %s6477_s16   ;;  %s5228_s15 = sphi %s5300_s15, %s6476_s15   ;;  %s5224_s14 = sphi %s5298_s14, %s6475_s14   ;;  %s5220_s13 = sphi %s5296_s13, %s6474_s13  }
   0x5   : > { %s5321_s19 = sadd.s32 1, %s5232_s16   ;;  %s246_s20 = sadd.s32 1, %s5228_s15 }
   0x6   : > { %s243_s21 = ssub.s32 %s5232_s16, %s5321_s19  ;;  %p256_p0 = scmp.ne.s32.totalorder %s5228_s15, %s5224_s14 }
   0x7   : > { %p244_p1 = scmp.eq.s32.totalorder %s243_s21, 0  ;;  %p257_p2 = scmp.eq.s32.totalorder %s5317_s17, 1 }
   0x8   : > { %p262_p3 = scmp.ne.s32.totalorder %s5224_s14, %s5220_s13  ;;  %p263_p4 = scmp.eq.s32.totalorder %s4092_s18, 1 }
   0x9   : > { %s5332_s22 = scalar_select %p244_p1, %s5228_s15, %s246_s20  }
   0xa   : > { %p5334_p5 = por %p257_p2, %p256_p0  ;;  %p5338_p6 = por %p263_p4, %p262_p3 }
   0xb   : > { %p4093_p7 = scmp.ge.s32.totalorder %s5232_s16, 1  ;;  %p270_p8 = scmp.lt.s32.totalorder %s5232_s16, 3 }
   0xc   : > { %s6455_s23 = scalar_select %p5334_p5, 1, 0 }
   0xd   : > { %s6456_s24 = scalar_select %p5338_p6, 1, 0 }
   0xe   : > { %p6452_p9 = scmp.eq.s32.totalorder %s5317_s17, 0  ;;  %p5345_p10 = pnand %p4093_p7, %p270_p8 }
   0xf   : > { %s5234_s26 = smov [#allocation3]   ;;  %s5138_s11 = scalar_lea.hbm %s6445_s4, 9216 }
  0x10   : > { %s6457_s25 = scalar_select %p5345_p10, 1, 0 }
  0x11   : > { %s291_s27 = sshll.u32 %s5234_s26, 4  ;;  %p4895_p11 = pneg %p5345_p10  ;;  %s292_s27 = int_to_ptr.vmem [resolvable:$true] %s291_s27 }
  0x12   : > { %p5139_p13 = scmp.ne.s32.totalorder %s6445_s4, %s5138_s11  ;;  %p5145_p3 = scmp.lt.u32.totalorder %s5138_s11, %s6445_s4 }
  0x13   : > { %p5353_p12 = pnand %p6452_p9, %p4895_p11 }
  0x15   : > { %p5140_p0 = pneg %p5353_p12 }
  0x17   : > { %p5141_p1 = pnand %p5140_p0, %p5139_p13 }
  0x19   : > { %p5142_p2 = pneg %p5141_p1 }
  0x1b   : > { %p5147_p4 = pnand %p5145_p3, %p5142_p2 }
  0x1d   : > { %5150 = shalt.err (!%p5147_p4)
}
  0x1e   : > { %s5151_s26 = scalar_lea.vmem %s292_s27, 9216  ;;  %p5159_p9 = scmp.lt.s32.totalorder %s292_s27, %s292_s27 }
  0x1f   : > { %p5152_p7 = scmp.ne.s32.totalorder %s292_s27, %s5151_s26  ;;  %p5160_p6 = scmp.lt.s32.totalorder %s5151_s26, %s5151_s26 }
  0x21   : > { %p5154_p8 = pnand %p5152_p7, %p5140_p0  ;;  %p5161_p5 = por %p5160_p6, %p5159_p9 }
  0x23   : > { %p5155_p11 = pneg %p5154_p8 }
  0x25   : > { %p5162_p10 = pnand %p5161_p5, %p5155_p11 }
  0x27   : > { %5165 = shalt.err (!%p5162_p10)
}
  0x28   : > { %s5235_s29 = smov 64   ;;  %s5236_s30 = smov 4  }
  0x29   : > { %4898 = dma.hbm_to_vmem [thread:$0]  (!%p5353_p12), %s6445_s4, 9216, %s292_s27, [#allocation4], %s5235_s29, %s5235_s29, %s5236_s30  }
  0x2a   : > { %p6459_p13 = scmp.ne.s32.totalorder %s6457_s25, 0 }
  0x2b   : > { %p6460_p1 = scmp.eq.s32.totalorder (!%p6459_p13), %s5317_s17, 0 }
  0x2c   : > { %330 = sbr.rel (%p6459_p13) target bundleno = 748 (0x2ec), region = 60 }
  0x33   : > { %5211 = dma.done.wait (%p6460_p1), [#allocation4], 9216   ;;  %p6461_p0 = pmov %p6460_p1 }
  0x34   : > { %v4944_v0 = vld [vmem:[%s6442_s1 + $0x40] sm:$0xff]   ;;  %v4948_v4 = vld [vmem:[%s6442_s1 + $0x48] sm:$0xff]   ;;  %v4952_v8 = vld [vmem:[%s6442_s1 + $0x50] sm:$0xff]   ;;  %p368_p5 = scmp.lt.s32.totalorder %s5317_s17, 1  ;;  %vm399_vm0 = vsmask.f32 3328 }
  0x35   : > { %5213 = vsyncadd (%p6461_p0), [#allocation4], 4294958080  ;;  %v4945_v1 = vld [vmem:[%s6442_s1 + $0xc0] sm:$0xff]   ;;  %4444 = vmatprep.subr.bf16.mxu0 %v4944_v0  ;;  %v4949_v5 = vld [vmem:[%s6442_s1 + $0xc8] sm:$0xff]   ;;  %vm400_vm1 = vsmask.f32 7440 }
  0x36   : > { %v4946_v2 = vld [vmem:[%s6442_s1] sm:$0xff]   ;;  %4484 = vmatprep.subr.bf16.mxu1 %v4945_v1  ;;  %v4950_v6 = vld [vmem:[%s6442_s1 + $0x8] sm:$0xff]   ;;  %v4953_v9 = vld [vmem:[%s6442_s1 + $0xd0] sm:$0xff]   ;;  %s369_s21 = scalar_select %p368_p5, %s5317_s17, 1  ;;  %vm1927_vm3 = vcmask 1040384   ;;  %vm2084_vm8 = vcmask 1043456  }
  0x37   : > { %v4947_v3 = vld [vmem:[%s6442_s1 + $0x80] sm:$0xff]   ;;  %4445 = vmatpush3.bf16.msra.mxu0 %v4946_v2  ;;  %v4951_v7 = vld [vmem:[%s6442_s1 + $0x88] sm:$0xff]   ;;  %v4954_v10 = vld [vmem:[%s6442_s1 + $0x10] sm:$0xff]   ;;  %vm1928_vm4 = vsmask.f32 256  ;;  %vm2286_vm9 = vcmask 1042432  }
  0x38   : > { %4485 = vmatpush3.bf16.msra.mxu1 %v4947_v3  ;;  %4446 = vmatprep.subr.bf16.mxu0 %v4948_v4  ;;  %v4955_v11 = vld [vmem:[%s6442_s1 + $0x90] sm:$0xff]   ;;  %v4956_v12 = vld [vmem:[%s6442_s1 + $0x58] sm:$0xff]   ;;  %v4960_v16 = vld [vmem:[%s6442_s1 + $0x60] sm:$0xff]   ;;  %s4888_s11 = smul.u32 288, %s369_s21  ;;  %vm1954_vm6 = vsmask.f32 7938 }
  0x39   : > { %4486 = vmatprep.subr.bf16.mxu1 %v4949_v5  ;;  %v4957_v13 = vld [vmem:[%s6442_s1 + $0xd8] sm:$0xff]   ;;  %v4961_v17 = vld [vmem:[%s6442_s1 + $0xe0] sm:$0xff]   ;;  %v4964_v20 = vld [vmem:[%s6442_s1 + $0x68] sm:$0xff]   ;;  %vm2287_vm10 = vcmask 1046532   ;;  %s365_s18 = sand.u32 1, %s5224_s14   ;;  %p6472_p9 = scmp.ne.s32.totalorder %s6455_s23, 0 }
  0x3a   : > { %v4958_v14 = vld [vmem:[%s6442_s1 + $0x18] sm:$0xff]   ;;  %v4962_v18 = vld [vmem:[%s6442_s1 + $0x20] sm:$0xff]   ;;  %v4965_v21 = vld [vmem:[%s6442_s1 + $0xe8] sm:$0xff]   ;;  %s5477_s20 = scalar_lea.vmem %s6441_s0, %s4888_s11  ;;  %s4098_s26 = sshll.u32 %s365_s18, 6 }
  0x3b   : > { %4447 = vmatpush3.bf16.msra.mxu0 %v4950_v6  ;;  %v4959_v15 = vld [vmem:[%s6442_s1 + $0x98] sm:$0xff]   ;;  %v4963_v19 = vld [vmem:[%s6442_s1 + $0xa0] sm:$0xff]   ;;  %v4966_v22 = vld [vmem:[%s6442_s1 + $0x28] sm:$0xff]   ;;  %s6371_s28 = scalar_lea.vmem [#allocation6], %s4098_s26  ;;  %s5238_s12 = smov [#allocation6]  }
  0x3c   : > { %4487 = vmatpush3.bf16.msra.mxu1 %v4951_v7  ;;  %4448 = vmatprep.subr.bf16.mxu0 %v4952_v8  ;;  %v4967_v23 = vld [vmem:[%s6442_s1 + $0xa8] sm:$0xff]   ;;  %v4968_v24 = vld [vmem:[%s6442_s1 + $0x70] sm:$0xff]   ;;  %v4972_v28 = vld [vmem:[%s6442_s1 + $0x78] sm:$0xff]   ;;  %s4018_s11 = sshll.u32 %s6371_s28, 4  ;;  %s5170_s21 = sshll.u32 %s5238_s12, 4  ;;  %s6393_s11 = int_to_ptr.vmem [resolvable:$true] %s4018_s11  ;;  %s5171_s21 = int_to_ptr.vmem [resolvable:$false] %s5170_s21 }
  0x3d   : > { %4488 = vmatprep.subr.bf16.mxu1 %v4953_v9  ;;  %v4969_v25 = vld [vmem:[%s6442_s1 + $0xf0] sm:$0xff]   ;;  %v4973_v29 = vld [vmem:[%s6442_s1 + $0xf8] sm:$0xff]   ;;  %v374_v35 = vld [vmem:[%s5477_s20] sm:$0xf]  ;;  %s5166_s30 = scalar_lea.vmem %s6393_s11, 1024  ;;  %s5172_s26 = scalar_lea.vmem %s5171_s21, 2048 }
  0x3e   : > { %v4970_v26 = vld [vmem:[%s6442_s1 + $0x30] sm:$0xff]   ;;  %v4974_v30 = vld [vmem:[%s6442_s1 + $0x38] sm:$0xff]   ;;  %v375_v36 = vld [vmem:[%s5477_s20 + $0x8] sm:$0xf]  ;;  %v403_v38 = vshrl.u32 %v374_v35, 16  ;;  %v406_v39 = vshll.u32 %v374_v35, 16  ;;  %p5167_p6 = scmp.ne.s32.totalorder %s6393_s11, %s5166_s30  ;;  %p5173_p2 = scmp.lt.s32.totalorder %s6393_s11, %s5171_s21 }
  0x3f   : > { %4449 = vmatpush3.bf16.msra.mxu0 %v4954_v10  ;;  %v4971_v27 = vld [vmem:[%s6442_s1 + $0xb0] sm:$0xff]   ;;  %v4975_v31 = vld [vmem:[%s6442_s1 + $0xb8] sm:$0xff]   ;;  %v417_v40 = vshrl.u32 %v375_v36, 16  ;;  %v391_v41 = vld [vmem:[%s5477_s20 + $0x4] sm:$0x1]  ;;  %v420_v47 = vshll.u32 %v375_v36, 16  ;;  %v4156_v48 = vcombine.low %v374_v35, %v375_v36  ;;  %p5174_p3 = scmp.lt.s32.totalorder %s5172_s26, %s5166_s30 }
  0x40   : > { %4489 = vmatpush3.bf16.msra.mxu1 %v4955_v11  ;;  %4450 = vmatprep.subr.bf16.mxu0 %v4956_v12  ;;  %v4976_v32 = vld [vmem:[%s5477_s20 + $0x48] ss:$8 sps:$4 sm:$0xff]   ;;  %v4109_v34 = vld [vmem:[%s5477_s20 + $0x98] sm:$0xf]  ;;  %v4979_v42 = vld [vmem:[%s6442_s1 + $0x140] sm:$0xff]   ;;  %v405_v44 = vrot.slane %v403_v38, 4  ;;  %p5168_p10 = pnand %p5167_p6, %p6472_p9 }
  0x41   : > { %4490 = vmatprep.subr.bf16.mxu1 %v4957_v13  ;;  %v4108_v33 = vld [vmem:[%s5477_s20 + $0x90] sm:$0xf]  ;;  %1590 = vmatprep.mubr.bf16.mxu0 %v4976_v32  ;;  %v392_v43 = vld [vmem:[%s5477_s20 + $0xc] sm:$0x1]  ;;  %v408_v45 = vrot.slane %v406_v39, 5  ;;  %v419_v46 = vrot.slane %v417_v40, 4  ;;  %vm5497_vm2 = vmor %vm399_vm0, %vm400_vm1  ;;  %p5175_p4 = por %p5174_p3, %p5173_p2 }
  0x42   : > { %v4168_v37 = vcombine.low %v4108_v33, %v4109_v34  ;;  %v412_v49 = vshll.u32 %v391_v41, 16  ;;  %v4980_v50 = vld [vmem:[%s6442_s1 + $0x100] sm:$0xff]   ;;  %v422_v51 = vrot.slane %v420_v47, 5  ;;  %v426_v53 = vshll.u32 %v392_v43, 16  ;;  %v4983_v2 = vld [vmem:[%s6442_s1 + $0x148] sm:$0xff]   ;;  %v4991_v40 = vld [vmem:[%s6442_s1 + $0x110] sm:$0xff]   ;;  %p5169_p12 = pneg %p5168_p10 }
  0x43   : > { %4451 = vmatpush3.bf16.msra.mxu0 %v4958_v14  ;;  %v409_v52 = vor.u32 %v408_v45, %v405_v44  ;;  %v541_v54 = vshrl.u32 %v4108_v33, 16  ;;  %v4981_v57 = vld [vmem:[%s6442_s1 + $0x1c0] sm:$0xff]   ;;  %v544_v61 = vshll.u32 %v4108_v33, 16  ;;  %v555_v62 = vshrl.u32 %v4109_v34, 16  ;;  %v4984_v4 = vld [vmem:[%s6442_s1 + $0x108] sm:$0xff]   ;;  %v4993_v45 = vld [vmem:[%s6442_s1 + $0x190] sm:$0xff]  }
  0x44   : > { %4491 = vmatpush3.bf16.msra.mxu1 %v4959_v15  ;;  %4452 = vmatprep.subr.bf16.mxu0 %v4960_v16  ;;  %v414_v56 = vrot.slane %v412_v49, 5  ;;  %v423_v59 = vor.u32 %v422_v51, %v419_v46  ;;  %v428_v60 = vrot.slane %v426_v53, 5  ;;  %v4982_v1 = vld [vmem:[%s6442_s1 + $0x180] sm:$0xff]   ;;  %v558_v3 = vshll.u32 %v4109_v34, 16  ;;  %v4985_v6 = vld [vmem:[%s6442_s1 + $0x1c8] sm:$0xff]   ;;  %v4994_v46 = vld [vmem:[%s6442_s1 + $0x158] sm:$0xff]   ;;  %p5176_p7 = pnand %p5175_p4, %p5169_p12 }
  0x45   : > { %4492 = vmatprep.subr.bf16.mxu1 %v4961_v17  ;;  %1655 = vmatprep.mubr.bf16.mxu1 %v4168_v37  ;;  %v410_v58 = vrot.slane %v409_v52, 4  ;;  %v4986_v8 = vld [vmem:[%s5477_s20 + $0x58] ss:$8 sps:$4 sm:$0xff]   ;;  %v5523_v10 = vld [vmem:[%s5477_s20 + $0xa8] sm:$0xf]  ;;  %v5525_v11 = vrot.slane %v541_v54, 4  ;;  %vm5798_vm5 = vmand %vm1927_vm3, %vm1928_vm4 }
  0x46   : > { %v424_v0 = vrot.slane %v423_v59, 4  ;;  %v4110_v9 = vld [vmem:[%s5477_s20 + $0xa0] sm:$0xf]  ;;  %v5527_v12 = vrot.slane %v544_v61, 5  ;;  %v5529_v13 = vrot.slane %v555_v62, 4  ;;  %v5531_v14 = vrot.slane %v558_v3, 5  ;;  %vm5805_vm7 = vmand %vm1927_vm3, %vm1954_vm6 }
  0x47   : > { %4453 = vmatpush3.bf16.msra.mxu0 %v4962_v18  ;;  %v415_v63 = vsel %vm5497_vm2, %v410_v58, %v414_v56  ;;  %v4169_v15 = vcombine.low %v4110_v9, %v5523_v10  ;;  %v376_v16 = vld [vmem:[%s5477_s20 + $0x10] sm:$0xf]  ;;  %v569_v17 = vshrl.u32 %v4110_v9, 16  ;;  %v572_v18 = vshll.u32 %v4110_v9, 16  ;;  %v4996_v53 = vld [vmem:[%s6442_s1 + $0x1d8] sm:$0xff]   ;;  %vm5890_vm11 = vmand %vm2084_vm8, %vm1954_vm6 }
  0x48   : > { %4493 = vmatpush3.bf16.msra.mxu1 %v4963_v19  ;;  %4454 = vmatprep.subr.bf16.mxu0 %v4964_v20  ;;  %v429_v5 = vsel %vm5497_vm2, %v424_v0, %v428_v60  ;;  %v583_v19 = vshrl.u32 %v5523_v10, 16  ;;  %v4988_v20 = vld [vmem:[%s6442_s1 + $0x188] sm:$0xff]   ;;  %v586_v35 = vshll.u32 %v5523_v10, 16  ;;  %v4112_v56 = vld [vmem:[%s5477_s20 + $0xb0] sm:$0xf]  ;;  %v4999_v0 = vld [vmem:[%s6442_s1 + $0x198] sm:$0xff]  }
  0x49   : > { %4494 = vmatprep.subr.bf16.mxu1 %v4965_v21  ;;  %v4164_v7 = vcombine.low %v415_v63, %v429_v5  ;;  %v377_v21 = vld [vmem:[%s5477_s20 + $0x18] sm:$0xf]  ;;  %v5558_v47 = vrot.slane %v569_v17, 4  ;;  %v5567_v51 = vrot.slane %v572_v18, 5  ;;  %v4997_v54 = vld [vmem:[%s5477_s20 + $0x68] ss:$8 sps:$4 sm:$0xff]   ;;  %vm5915_vm12 = vmor %vm2286_vm9, %vm2287_vm10 }
  0x4a   : > { %v5575_v58 = vrot.slane %v583_v19, 4  ;;  %v597_v59 = vshrl.u32 %v4112_v56, 16  ;;  %v600_v60 = vshll.u32 %v4112_v56, 16  ;;  %v5577_v62 = vrot.slane %v586_v35, 5  ;;  %v396_v17 = vld [vmem:[%s5477_s20 + $0x2c] sm:$0x1] }
  0x4b   : > { %4455 = vmatpush3.bf16.msra.mxu0 %v4966_v22  ;;  %v431_v22 = vshrl.u32 %v376_v16, 16  ;;  %v5001_v19 = vld [vmem:[%s6442_s1 + $0x160] sm:$0xff]   ;;  %v5005_v35 = vld [vmem:[%s6442_s1 + $0x168] sm:$0xff]  }
  0x4c   : > { %4495 = vmatpush3.bf16.msra.mxu1 %v4967_v23  ;;  %4456 = vmatprep.subr.bf16.mxu0 %v4968_v24  ;;  %v434_v23 = vshll.u32 %v376_v16, 16  ;;  %v445_v24 = vshrl.u32 %v377_v21, 16  ;;  %v5585_v3 = vrot.slane %v600_v60, 5 }
  0x4d   : > { %4496 = vmatprep.subr.bf16.mxu1 %v4969_v25  ;;  %v448_v25 = vshll.u32 %v377_v21, 16 }
  0x4e   : > { %v436_v32 = vrot.slane %v434_v23, 5  ;;  %v447_v33 = vrot.slane %v445_v24, 4 }
  0x4f   : > { %4457 = vmatpush3.bf16.msra.mxu0 %v4970_v26  ;;  %v393_v26 = vld [vmem:[%s5477_s20 + $0x14] sm:$0x1]  ;;  %v450_v34 = vrot.slane %v448_v25, 5  ;;  %v482_v25 = vshll.u32 %v396_v17, 16 }
  0x50   : > { %4497 = vmatpush3.bf16.msra.mxu1 %v4971_v27  ;;  %4458 = vmatprep.subr.bf16.mxu0 %v4972_v28  ;;  %v4157_v27 = vcombine.low %v376_v16, %v377_v21  ;;  %v394_v28 = vld [vmem:[%s5477_s20 + $0x1c] sm:$0x1]  ;;  %v5014_v17 = vld [vmem:[%s6442_s1 + $0x1f0] sm:$0xff]  }
  0x51   : > { %4498 = vmatprep.subr.bf16.mxu1 %v4973_v29  ;;  %v440_v29 = vshll.u32 %v393_v26, 16  ;;  %v454_v36 = vshll.u32 %v394_v28, 16  ;;  %v451_v39 = vor.u32 %v450_v34, %v447_v33  ;;  %v5004_v34 = vld [vmem:[%s6442_s1 + $0x1a0] sm:$0xff]  }
  0x53   : > { %4459 = vmatpush3.bf16.msra.mxu0 %v4974_v30  ;;  %v4990_v30 = vld [vmem:[%s6442_s1 + $0x150] sm:$0xff]   ;;  %v442_v38 = vrot.slane %v440_v29, 5  ;;  %v456_v41 = vrot.slane %v454_v36, 5  ;;  %v452_v44 = vrot.slane %v451_v39, 4  ;;  %v5002_v29 = vld [vmem:[%s6442_s1 + $0x120] sm:$0xff]   ;;  %v547_v36 = vor.u32 %v5527_v12, %v5525_v11 }
  0x54   : > { %4499 = vmatpush3.bf16.msra.mxu1 %v4975_v31  ;;  %4524 = vmatprep.subr.bf16.mxu0 %v4979_v42  ;;  %v433_v31 = vrot.slane %v431_v22, 4  ;;  %v4992_v42 = vld [vmem:[%s6442_s1 + $0x1d0] sm:$0xff]   ;;  %v575_v11 = vor.u32 %v5567_v51, %v5558_v47  ;;  %v381_v51 = vld [vmem:[%s5477_s20 + $0x38] sm:$0xf] }
  0x55   : > { %4564 = vmatprep.subr.bf16.mxu1 %v4981_v57  ;;  %v457_v49 = vsel %vm5497_vm2, %v452_v44, %v456_v41  ;;  %v4113_v57 = vld [vmem:[%s5477_s20 + $0xb8] sm:$0xf]  ;;  %v5630_v44 = vld [vmem:[%s5477_s20 + $0xc0] sm:$0xf]  ;;  %v504_v60 = vshll.u32 %v381_v51, 16 }
  0x56   : > { %1591 = vmatmul.mubr.bf16.vlgmr.msra.gmra.mrb[0].mxu0 %v4156_v48  ;;  %v437_v37 = vor.u32 %v436_v32, %v433_v31  ;;  %v611_v61 = vshrl.u32 %v4113_v57, 16  ;;  %v4170_v63 = vcombine.low %v4112_v56, %v4113_v57  ;;  %v614_v5 = vshll.u32 %v4113_v57, 16  ;;  %v5003_v31 = vld [vmem:[%s6442_s1 + $0x1e0] sm:$0xff]  }
  0x57   : > { %4525 = vmatpush3.bf16.msra.mxu0 %v4980_v50  ;;  %1656 = vmatmul.mubr.bf16.vlgmr.msra.gmra.mrb[0].mxu1 %v4164_v7  ;;  %v4995_v50 = vld [vmem:[%s6442_s1 + $0x118] sm:$0xff]  }
  0x58   : > { %4526 = vmatprep.subr.bf16.mxu0 %v4983_v2  ;;  %1598 = vmatprep.mubr.bf16.mxu0 %v4986_v8  ;;  %v438_v43 = vrot.slane %v437_v37, 4  ;;  %v5583_v2 = vrot.slane %v597_v59, 4  ;;  %v616_v24 = vrot.slane %v614_v5, 5  ;;  %v561_v37 = vor.u32 %v5531_v14, %v5529_v13  ;;  %v5007_v13 = vld [vmem:[%s6442_s1 + $0x1e8] sm:$0xff]  }
  0x59   : > { %4565 = vmatpush3.bf16.msra.mxu1 %v4982_v1  ;;  %1663 = vmatprep.mubr.bf16.mxu1 %v4169_v15  ;;  %v378_v1 = vld [vmem:[%s5477_s20 + $0x20] sm:$0xf]  ;;  %v395_v15 = vld [vmem:[%s5477_s20 + $0x24] sm:$0x1]  ;;  %v589_v14 = vor.u32 %v5577_v62, %v5575_v58  ;;  %v501_v59 = vshrl.u32 %v381_v51, 16  ;;  %v506_v5 = vrot.slane %v504_v60, 5 }
  0x5a   : > { %4566 = vmatprep.subr.bf16.mxu1 %v4985_v6  ;;  %v443_v48 = vsel %vm5497_vm2, %v438_v43, %v442_v38  ;;  %v379_v6 = vld [vmem:[%s5477_s20 + $0x28] sm:$0xf]  ;;  %v459_v7 = vshrl.u32 %v378_v1, 16  ;;  %v462_v8 = vshll.u32 %v378_v1, 16  ;;  %v468_v18 = vshll.u32 %v395_v15, 16  ;;  %v5013_v15 = vld [vmem:[%s6442_s1 + $0x130] sm:$0xff]  }
  0x5b   : > { %4527 = vmatpush3.bf16.msra.mxu0 %v4984_v4  ;;  %v4165_v52 = vcombine.low %v443_v48, %v457_v49  ;;  %v5587_v4 = vrot.slane %v611_v61, 4  ;;  %v473_v9 = vshrl.u32 %v379_v6, 16  ;;  %v476_v10 = vshll.u32 %v379_v6, 16  ;;  %v5008_v43 = vld [vmem:[%s5477_s20 + $0x78] ss:$8 sps:$4 sm:$0xff]   ;;  %v5010_v49 = vld [vmem:[%s6442_s1 + $0x1a8] sm:$0xff]  }
  0x5c   : > { %4528 = vmatprep.subr.bf16.mxu0 %v4990_v30  ;;  %v4158_v16 = vcombine.low %v378_v1, %v379_v6  ;;  %v464_v21 = vrot.slane %v462_v8, 5  ;;  %v484_v30 = vrot.slane %v482_v25, 5  ;;  %v603_v41 = vor.u32 %v5585_v3, %v5583_v2  ;;  %v397_v61 = vld [vmem:[%s5477_s20 + $0x34] sm:$0x1]  ;;  %v5017_v25 = vld [vmem:[%s6442_s1 + $0x138] sm:$0xff]  }
  0x5d   : > { %4567 = vmatpush3.bf16.msra.mxu1 %v4988_v20  ;;  %v461_v20 = vrot.slane %v459_v7, 4  ;;  %v475_v22 = vrot.slane %v473_v9, 4  ;;  %v478_v23 = vrot.slane %v476_v10, 5  ;;  %v5637_v47 = vrot.slane %v561_v37, 4  ;;  %v5012_v1 = vld [vmem:[%s6442_s1 + $0x170] sm:$0xff]  }
  0x5e   : > { %1599 = vmatmul.mubr.bf16.gmra.mrb[4].mxu0 %v4157_v27  ;;  %4568 = vmatprep.subr.bf16.mxu1 %v4992_v42  ;;  %v470_v27 = vrot.slane %v468_v18, 5  ;;  %v617_v42 = vor.u32 %v616_v24, %v5587_v4  ;;  %v503_v4 = vrot.slane %v501_v59, 4  ;;  %v625_v6 = vshrl.u32 %v5630_v44, 16  ;;  %v5020_v37 = vld [vmem:[%s5477_s20 + $0xd8] ss:$8 sps:$4 sm:$0xff]  }
  0x5f   : > { %4529 = vmatpush3.bf16.msra.mxu0 %v4991_v40  ;;  %1664 = vmatmul.mubr.bf16.gmra.mrb[4].mxu1 %v4165_v52  ;;  %v465_v26 = vor.u32 %v464_v21, %v461_v20  ;;  %v479_v28 = vor.u32 %v478_v23, %v475_v22  ;;  %v5006_v40 = vld [vmem:[%s6442_s1 + $0x128] sm:$0xff]   ;;  %v5646_v52 = vrot.slane %v575_v11, 4  ;;  %v5015_v20 = vld [vmem:[%s6442_s1 + $0x1b0] sm:$0xff]   ;;  %v5016_v21 = vld [vmem:[%s6442_s1 + $0x178] sm:$0xff]   ;;  %v628_v22 = vshll.u32 %v5630_v44, 16 }
  0x60   : > { %4530 = vmatprep.subr.bf16.mxu0 %v4994_v46  ;;  %1606 = vmatprep.mubr.bf16.mxu0 %v4997_v54  ;;  %v5635_v46 = vrot.slane %v547_v36, 4  ;;  %v5650_v54 = vrot.slane %v603_v41, 4  ;;  %v5652_v56 = vrot.slane %v617_v42, 4  ;;  %v507_v10 = vor.u32 %v506_v5, %v503_v4  ;;  %v5705_v41 = vld [vmem:[%s5477_s20 + $0x10] sm:$0xf] }
  0x61   : > { %4569 = vmatpush3.bf16.msra.mxu1 %v4993_v45  ;;  %1671 = vmatprep.mubr.bf16.mxu1 %v4170_v63  ;;  %v466_v32 = vrot.slane %v465_v26, 4  ;;  %v480_v33 = vrot.slane %v479_v28, 4  ;;  %v5633_v45 = vld [vmem:[%s5477_s20 + $0xc8] sm:$0xf]  ;;  %v398_v63 = vld [vmem:[%s5477_s20 + $0x3c] sm:$0x1] }
  0x62   : > { %4570 = vmatprep.subr.bf16.mxu1 %v4996_v53  ;;  %v4171_v48 = vcombine.low %v5630_v44, %v5633_v45  ;;  %v5648_v53 = vrot.slane %v589_v14, 4  ;;  %v510_v7 = vshll.u32 %v398_v63, 16  ;;  %v639_v26 = vshrl.u32 %v5633_v45, 16  ;;  %v5018_v28 = vld [vmem:[%s6442_s1 + $0x1f8] sm:$0xff]   ;;  %v5024_v44 = vld [vmem:[%s6442_s1 + $0x208] sm:$0xff]  }
  0x63   : > { %4531 = vmatpush3.bf16.msra.mxu0 %v4995_v50  ;;  %v471_v38 = vsel %vm5497_vm2, %v466_v32, %v470_v27  ;;  %v485_v39 = vsel %vm5497_vm2, %v480_v33, %v484_v30  ;;  %v380_v50 = vld [vmem:[%s5477_s20 + $0x30] sm:$0xf]  ;;  %v4125_v30 = vld [vmem:[%s5477_s20 + $0x9c] sm:$0x1]  ;;  %v642_v33 = vshll.u32 %v5633_v45, 16  ;;  %v630_v42 = vrot.slane %v628_v22, 5 }
  0x64   : > { %4532 = vmatprep.subr.bf16.mxu0 %v5001_v19  ;;  %v4166_v12 = vcombine.low %v471_v38, %v485_v39  ;;  %v487_v57 = vshrl.u32 %v380_v50, 16  ;;  %v490_v58 = vshll.u32 %v380_v50, 16  ;;  %v4159_v62 = vcombine.low %v380_v50, %v381_v51  ;;  %v5021_v39 = vld [vmem:[%s6442_s1 + $0x200] sm:$0xff]   ;;  %v5025_v60 = vld [vmem:[%s5477_s20 + $0xe8] ss:$8 sps:$4 sm:$0xff]  }
  0x65   : > { %4571 = vmatpush3.bf16.msra.mxu1 %v4999_v0  ;;  %v496_v0 = vshll.u32 %v397_v61, 16  ;;  %v508_v19 = vrot.slane %v507_v10, 4  ;;  %v564_v32 = vshll.u32 %v4125_v30, 16  ;;  %v627_v38 = vrot.slane %v625_v6, 4  ;;  %v4126_v45 = vld [vmem:[%s5477_s20 + $0xa4] sm:$0x1] }
  0x66   : > { %1607 = vmatmul.mubr.bf16.gmra.mrb[8].mxu0 %v4158_v16  ;;  %4572 = vmatprep.subr.bf16.mxu1 %v5003_v31  ;;  %v489_v2 = vrot.slane %v487_v57, 4  ;;  %v492_v3 = vrot.slane %v490_v58, 5  ;;  %v512_v16 = vrot.slane %v510_v7, 5  ;;  %v644_v50 = vrot.slane %v642_v33, 5  ;;  %v5026_v58 = vld [vmem:[%s6442_s1 + $0x210] sm:$0xff]  }
  0x67   : > { %4533 = vmatpush3.bf16.msra.mxu0 %v5002_v29  ;;  %1672 = vmatmul.mubr.bf16.gmra.mrb[8].mxu1 %v4166_v12  ;;  %v498_v9 = vrot.slane %v496_v0, 5  ;;  %v4124_v29 = vld [vmem:[%s5477_s20 + $0x94] sm:$0x1]  ;;  %v566_v36 = vrot.slane %v564_v32, 5  ;;  %v5022_v12 = vld [vmem:[%s5477_s20 + $0x50] ss:$8 sps:$4 sm:$0xff]   ;;  %v631_v63 = vor.u32 %v630_v42, %v627_v38 }
  0x68   : > { %4534 = vmatprep.subr.bf16.mxu0 %v5005_v35  ;;  %1614 = vmatprep.mubr.bf16.mxu0 %v5008_v43  ;;  %v493_v8 = vor.u32 %v492_v3, %v489_v2  ;;  %v513_v24 = vsel %vm5497_vm2, %v508_v19, %v512_v16  ;;  %v550_v31 = vshll.u32 %v4124_v29, 16  ;;  %v5027_v61 = vld [vmem:[%s5477_s20 + $0x60] ss:$8 sps:$4 sm:$0xff]   ;;  %v5032_v32 = vld [vmem:[%s5477_s20 + $0x70] ss:$8 sps:$4 sm:$0xff]  }
  0x69   : > { %4573 = vmatpush3.bf16.msra.mxu1 %v5004_v34  ;;  %1679 = vmatprep.mubr.bf16.mxu1 %v4171_v48  ;;  %v5019_v34 = vld [vmem:[%s6442_s1 + $0x1b8] sm:$0xff]   ;;  %v567_v11 = vsel %vm5497_vm2, %v5637_v47, %v566_v36  ;;  %v578_v47 = vshll.u32 %v4126_v45, 16  ;;  %v4135_v2 = vld [vmem:[%s5477_s20 + $0x20] sm:$0xf]  ;;  %v4136_v33 = vld [vmem:[%s5477_s20 + $0x28] sm:$0xf] }
  0x6a   : > { %4574 = vmatprep.subr.bf16.mxu1 %v5007_v13  ;;  %v494_v18 = vrot.slane %v493_v8, 4  ;;  %v552_v35 = vrot.slane %v550_v31, 5  ;;  %v5702_v13 = vld [vmem:[%s5477_s20 + $0x8] sm:$0xf]  ;;  %v721_v6 = vshrl.u32 %v4135_v2, 16  ;;  %v724_v7 = vshll.u32 %v4135_v2, 16 }
  0x6b   : > { %4535 = vmatpush3.bf16.msra.mxu0 %v5006_v40  ;;  %v4180_v43 = vcombine.low %v5702_v13, %v5705_v41  ;;  %v580_v51 = vrot.slane %v578_v47, 5  ;;  %v679_v59 = vshrl.u32 %v5702_v13, 16  ;;  %v4128_v8 = vld [vmem:[%s5477_s20 + $0xb4] sm:$0x1]  ;;  %v5031_v29 = vld [vmem:[%s6442_s1 + $0x220] sm:$0xff]   ;;  %v738_v38 = vshll.u32 %v4136_v33, 16 }
  0x6c   : > { %4536 = vmatprep.subr.bf16.mxu0 %v5012_v1  ;;  %v499_v23 = vsel %vm5497_vm2, %v494_v18, %v498_v9  ;;  %v553_v40 = vsel %vm5497_vm2, %v5635_v46, %v552_v35  ;;  %v4127_v46 = vld [vmem:[%s5477_s20 + $0xac] sm:$0x1]  ;;  %v606_v18 = vshll.u32 %v4128_v8, 16  ;;  %v726_v19 = vrot.slane %v724_v7, 5  ;;  %v5030_v31 = vld [vmem:[%s5477_s20 + $0xf8] ss:$8 sps:$4 sm:$0xff]  }
  0x6d   : > { %4575 = vmatpush3.bf16.msra.mxu1 %v5010_v49  ;;  %v4167_v27 = vcombine.low %v499_v23, %v513_v24  ;;  %v4176_v14 = vcombine.low %v553_v40, %v567_v11  ;;  %v592_v48 = vshll.u32 %v4127_v46, 16  ;;  %v641_v49 = vrot.slane %v639_v26, 4  ;;  %v4130_v11 = vld [vmem:[%s5477_s20 + $0xc4] sm:$0x1]  ;;  %v4131_v42 = vld [vmem:[%s5477_s20 + $0xcc] sm:$0x1] }
  0x6e   : > { %1615 = vmatmul.mubr.bf16.gmra.mrb[12].mxu0 %v4159_v62  ;;  %4576 = vmatprep.subr.bf16.mxu1 %v5014_v17  ;;  %v4134_v62 = vld [vmem:[%s5477_s20 + $0x18] sm:$0xf]  ;;  %v581_v0 = vsel %vm5497_vm2, %v5646_v52, %v580_v51  ;;  %v4129_v17 = vld [vmem:[%s5477_s20 + $0xbc] sm:$0x1]  ;;  %v723_v52 = vrot.slane %v721_v6, 4  ;;  %v608_v22 = vrot.slane %v606_v18, 5 }
  0x6f   : > { %4537 = vmatpush3.bf16.msra.mxu0 %v5013_v15  ;;  %1680 = vmatmul.mubr.bf16.gmra.mrb[12].mxu1 %v4167_v27  ;;  %v594_v57 = vrot.slane %v592_v48, 5  ;;  %v707_v3 = vshrl.u32 %v4134_v62, 16  ;;  %v710_v4 = vshll.u32 %v4134_v62, 16  ;;  %v645_v9 = vor.u32 %v644_v50, %v641_v49 }
  0x70   : > { %4538 = vmatprep.subr.bf16.mxu0 %v5016_v21  ;;  %1785 = vmatprep.mubr.bf16.mxu1 %v5022_v12  ;;  %v4181_v16 = vcombine.low %v4134_v62, %v4135_v2  ;;  %v632_v23 = vrot.slane %v631_v63, 4  ;;  %v727_v27 = vor.u32 %v726_v19, %v723_v52  ;;  %v682_v35 = vshll.u32 %v5702_v13, 16  ;;  %v5037_v62 = vld [vmem:[%s5477_s20 + $0x80] ss:$8 sps:$4 sm:$0xff]  }
  0x71   : > { %4577 = vmatpush3.bf16.msra.mxu1 %v5015_v20  ;;  %1720 = vmatprep.mubr.bf16.mxu0 %v4176_v14  ;;  %v595_v1 = vsel %vm5497_vm2, %v5648_v53, %v594_v57  ;;  %v709_v10 = vrot.slane %v707_v3, 4  ;;  %v712_v15 = vrot.slane %v710_v4, 5  ;;  %v5029_v53 = vld [vmem:[%s6442_s1 + $0x218] sm:$0xff]   ;;  %v620_v20 = vshll.u32 %v4129_v17, 16  ;;  %v5034_v14 = vld [vmem:[%s6442_s1 + $0x228] sm:$0xff]  }
  0x72   : > { %4578 = vmatprep.subr.bf16.mxu1 %v5018_v28  ;;  %v4177_v5 = vcombine.low %v581_v0, %v595_v1  ;;  %v609_v28 = vsel %vm5497_vm2, %v5650_v54, %v608_v22  ;;  %v735_v54 = vshrl.u32 %v4136_v33, 16  ;;  %v5750_v12 = vrot.slane %v727_v27, 4  ;;  %v5035_v63 = vld [vmem:[%s5477_s20 + $0x108] ss:$8 sps:$4 sm:$0xff]   ;;  %v4138_v0 = vld [vmem:[%s5477_s20 + $0x38] sm:$0xf] }
  0x73   : > { %4539 = vmatpush3.bf16.msra.mxu0 %v5017_v25  ;;  %v713_v21 = vor.u32 %v712_v15, %v709_v10  ;;  %v622_v24 = vrot.slane %v620_v20, 5  ;;  %v646_v25 = vrot.slane %v645_v9, 4  ;;  %v684_v13 = vrot.slane %v682_v35, 5  ;;  %v4139_v1 = vld [vmem:[%s5477_s20 + $0x40] sm:$0xf]  ;;  %v5039_v9 = vld [vmem:[%s6442_s1 + $0x238] sm:$0xff]  }
  0x74   : > { %4800 = vmatprep.subr.bf16.mxu0 %v5021_v39  ;;  %v740_v45 = vrot.slane %v738_v38, 5  ;;  %v648_v46 = vshll.u32 %v4131_v42, 16  ;;  %v693_v47 = vshrl.u32 %v5705_v41, 16  ;;  %v696_v51 = vshll.u32 %v5705_v41, 16  ;;  %v4148_v10 = vld [vmem:[%s5477_s20 + $0xc] sm:$0x1] }
  0x75   : > { %4579 = vmatpush3.bf16.msra.mxu1 %v5019_v34  ;;  %v5733_v26 = vrot.slane %v713_v21, 4  ;;  %v623_v30 = vsel %vm5497_vm2, %v5652_v56, %v622_v24  ;;  %v681_v34 = vrot.slane %v679_v59, 4  ;;  %v763_v4 = vshrl.u32 %v4138_v0, 16  ;;  %v4149_v15 = vld [vmem:[%s5477_s20 + $0x14] sm:$0x1] }
  0x76   : > { %1721 = vmatmul.mubr.bf16.vlgmr.msra.gmra.mrb[16].mxu0 %v5020_v37  ;;  %v4178_v36 = vcombine.low %v609_v28, %v623_v30  ;;  %v4137_v37 = vld [vmem:[%s5477_s20 + $0x30] sm:$0xf]  ;;  %v650_v57 = vrot.slane %v648_v46, 5  ;;  %v777_v6 = vshrl.u32 %v4139_v1, 16  ;;  %v780_v7 = vshll.u32 %v4139_v1, 16 }
  0x77   : > { %4801 = vmatpush3.bf16.msra.mxu0 %v5021_v39  ;;  %1728 = vmatprep.mubr.bf16.mxu0 %v4177_v5  ;;  %v749_v39 = vshrl.u32 %v4137_v37, 16  ;;  %v752_v40 = vshll.u32 %v4137_v37, 16  ;;  %v4182_v56 = vcombine.low %v4136_v33, %v4137_v37  ;;  %v685_v59 = vor.u32 %v684_v13, %v681_v34  ;;  %v4150_v20 = vld [vmem:[%s5477_s20 + $0x1c] sm:$0x1]  ;;  %v4151_v24 = vld [vmem:[%s5477_s20 + $0x24] sm:$0x1] }
  0x78   : > { %1786 = vmatmul.mubr.bf16.vlgmr.msra.gmra.mrb[16].mxu1 %v4180_v43  ;;  %4802 = vmatprep.subr.bf16.mxu0 %v5024_v44  ;;  %v634_v43 = vshll.u32 %v4130_v11, 16  ;;  %v651_v41 = vsel %vm5497_vm2, %v646_v25, %v650_v57  ;;  %v766_v5 = vshll.u32 %v4138_v0, 16  ;;  %v4183_v8 = vcombine.low %v4138_v0, %v4139_v1  ;;  %v4153_v30 = vld [vmem:[%s5477_s20 + $0x34] sm:$0x1]  ;;  %v5042_v0 = vld [vmem:[#allocation3 + $0xc8] sm:$0xff]  }
  0x79   : > { %1793 = vmatprep.mubr.bf16.mxu1 %v5027_v61  ;;  %v751_v48 = vrot.slane %v749_v39, 4  ;;  %v754_v49 = vrot.slane %v752_v40, 5  ;;  %v765_v18 = vrot.slane %v763_v4, 4  ;;  %v779_v19 = vrot.slane %v777_v6, 4  ;;  %v4155_v40 = vld [vmem:[%s5477_s20 + $0x44] sm:$0x1] }
  0x7a   : > { %v636_v50 = vrot.slane %v634_v43, 5  ;;  %v768_v52 = vrot.slane %v766_v5, 5  ;;  %v782_v21 = vrot.slane %v780_v7, 5  ;;  %v698_v22 = vrot.slane %v696_v51, 5  ;;  %v5043_v1 = vld [vmem:[#allocation3 + $0x88] sm:$0xff]   ;;  %v5046_v7 = vld [vmem:[#allocation3 + $0xd0] sm:$0xff]  }
  0x7b   : > { %4803 = vmatpush3.bf16.msra.mxu0 %v5024_v44  ;;  %v737_v44 = vrot.slane %v735_v54, 4  ;;  %v755_v17 = vor.u32 %v754_v49, %v751_v48  ;;  %v716_v25 = vshll.u32 %v4150_v20, 16  ;;  %v730_v28 = vshll.u32 %v4151_v24, 16  ;;  %v1936_v4 = vld [vmem:[#allocation2 + $0x18] sm:$0x1] }
  0x7c   : > { %4804 = vmatprep.subr.bf16.mxu0 %v5026_v58  ;;  %v637_v61 = vsel %vm5497_vm2, %v632_v23, %v636_v50  ;;  %v702_v23 = vshll.u32 %v4149_v15, 16  ;;  %v786_v49 = vshll.u32 %v4155_v40, 16  ;;  %v1962_v6 = vld [vmem:[#allocation2 + $0x1c] sm:$0x1]  ;;  %v1956_v15 = vld [vmem:[#allocation2 + $0xc] sm:$0x1] }
  0x7d   : > { %v741_v2 = vor.u32 %v740_v45, %v737_v44  ;;  %v4179_v3 = vcombine.low %v637_v61, %v651_v41  ;;  %v718_v34 = vrot.slane %v716_v25, 5  ;;  %v732_v54 = vrot.slane %v730_v28, 5  ;;  %v5040_v41 = vld [vmem:[#allocation3 + $0xc0] sm:$0xff]   ;;  %v1965_v20 = vld [vmem:[#allocation2 + $0x24] sm:$0x1] }
  0x7e   : > { %1729 = vmatmul.mubr.bf16.gmra.mrb[20].mxu0 %v5025_v60  ;;  %v695_v60 = vrot.slane %v693_v47, 4  ;;  %v704_v33 = vrot.slane %v702_v23, 5  ;;  %v756_v39 = vrot.slane %v755_v17, 4  ;;  %v783_v45 = vor.u32 %v782_v21, %v779_v19  ;;  %v5047_v19 = vld [vmem:[#allocation3 + $0x90] sm:$0xff]   ;;  %v1933_v21 = vld [vmem:[#allocation2 + $0x10] sm:$0x1] }
  0x7f   : > { %4805 = vmatpush3.bf16.msra.mxu0 %v5026_v58  ;;  %1736 = vmatprep.mubr.bf16.mxu0 %v4178_v36  ;;  %v5036_v58 = vld [vmem:[%s6442_s1 + $0x230] sm:$0xff]   ;;  %v742_v35 = vrot.slane %v741_v2, 4  ;;  %v4154_v36 = vld [vmem:[%s5477_s20 + $0x3c] sm:$0x1]  ;;  %v733_v43 = vsel %vm5497_vm2, %v5750_v12, %v732_v54  ;;  %v788_v12 = vrot.slane %v786_v49, 5  ;;  %v1934_v23 = vsel %vm5798_vm5, 0, %v1933_v21 }
  0x80   : > { %1794 = vmatmul.mubr.bf16.gmra.mrb[20].mxu1 %v4181_v16  ;;  %4806 = vmatprep.subr.bf16.mxu0 %v5029_v53  ;;  %v686_v16 = vrot.slane %v685_v59, 4  ;;  %v772_v44 = vshll.u32 %v4154_v36, 16  ;;  %v784_v57 = vrot.slane %v783_v45, 4  ;;  %v5044_v2 = vld [vmem:[#allocation3 + $0x40] sm:$0xff]   ;;  %1935 = vst [vmem:[#allocation2 + $0x10] sm:$0x1] %v1934_v23 }
  0x81   : > { %1801 = vmatprep.mubr.bf16.mxu1 %v5032_v32  ;;  %v699_v32 = vor.u32 %v698_v22, %v695_v60  ;;  %4616 = vmatprep.subr.bf16.mxu1 %v5044_v2  ;;  %v1966_v22 = vsel %vm5805_vm7, 0, %v1965_v20  ;;  %v1959_v24 = vld [vmem:[#allocation2 + $0x14] sm:$0x1]  ;;  %v1974_v28 = vld [vmem:[#allocation2 + $0x3c] sm:$0x1]  ;;  %v5051_v54 = vld [vmem:[#allocation3 + $0x98] sm:$0xff]  }
  0x82   : > { %v774_v51 = vrot.slane %v772_v44, 5  ;;  %v789_v61 = vsel %vm5497_vm2, %v784_v57, %v788_v12  ;;  %1967 = vst [vmem:[#allocation2 + $0x24] sm:$0x1] %v1966_v22  ;;  %v1960_v25 = vsel %vm5805_vm7, 0, %v1959_v24  ;;  %v5049_v36 = vld [vmem:[#allocation3 + $0x8] sm:$0xff]   ;;  %v5054_v40 = vld [vmem:[#allocation3 + $0xe0] sm:$0xff]  }
  0x83   : > { %4807 = vmatpush3.bf16.msra.mxu0 %v5029_v53  ;;  %v688_v53 = vshll.u32 %v4148_v10, 16  ;;  %v700_v11 = vrot.slane %v699_v32, 4  ;;  %v1930_v10 = vld [vmem:[#allocation2 + $0x8] sm:$0x1]  ;;  %1961 = vst [vmem:[#allocation2 + $0x14] sm:$0x1] %v1960_v25 }
  0x84   : > { %4808 = vmatprep.subr.bf16.mxu0 %v5031_v29  ;;  %v1931_v17 = vsel %vm5798_vm5, 0, %v1930_v10  ;;  %v1942_v32 = vld [vmem:[#allocation2 + $0x28] sm:$0x1]  ;;  %v1945_v44 = vld [vmem:[#allocation2 + $0x30] sm:$0x1]  ;;  %v5058_v49 = vld [vmem:[#allocation3 + $0xe8] sm:$0xff]  }
  0x85   : > { %v690_v27 = vrot.slane %v688_v53, 5  ;;  %v705_v46 = vsel %vm5497_vm2, %v700_v11, %v704_v33  ;;  %1932 = vst [vmem:[#allocation2 + $0x8] sm:$0x1] %v1931_v17  ;;  %v1968_v33 = vld [vmem:[#allocation2 + $0x2c] sm:$0x1]  ;;  %v5055_v11 = vld [vmem:[#allocation3 + $0xa0] sm:$0xff]  }
  0x86   : > { %1737 = vmatmul.mubr.bf16.gmra.mrb[24].mxu0 %v5030_v31  ;;  %v769_v31 = vor.u32 %v768_v52, %v765_v18  ;;  %v1957_v18 = vsel %vm5805_vm7, 0, %v1956_v15  ;;  %v1939_v52 = vld [vmem:[#allocation2 + $0x20] sm:$0x1]  ;;  %v1971_v45 = vld [vmem:[#allocation2 + $0x34] sm:$0x1]  ;;  %v5074_v2 = vld [vmem:[#allocation3 + $0x78] sm:$0xff]  }
  0x87   : > { %4809 = vmatpush3.bf16.msra.mxu0 %v5031_v29  ;;  %1744 = vmatprep.mubr.bf16.mxu0 %v4179_v3  ;;  %v4152_v29 = vld [vmem:[%s5477_s20 + $0x2c] sm:$0x1]  ;;  %v691_v37 = vsel %vm5497_vm2, %v686_v16, %v690_v27  ;;  %v5045_v3 = vld [vmem:[#allocation3] sm:$0xff]   ;;  %v1963_v16 = vsel %vm5805_vm7, 0, %v1962_v6  ;;  %1958 = vst [vmem:[#allocation2 + $0xc] sm:$0x1] %v1957_v18 }
  0x88   : > { %1802 = vmatmul.mubr.bf16.gmra.mrb[24].mxu1 %v4182_v56  ;;  %4810 = vmatprep.subr.bf16.mxu0 %v5034_v14  ;;  %v744_v38 = vshll.u32 %v4152_v29, 16  ;;  %v719_v56 = vsel %vm5497_vm2, %v5733_v26, %v718_v34  ;;  %v770_v42 = vrot.slane %v769_v31, 4  ;;  %v4188_v50 = vcombine.low %v691_v37, %v705_v46  ;;  %1964 = vst [vmem:[#allocation2 + $0x1c] sm:$0x1] %v1963_v16  ;;  %v1948_v27 = vld [vmem:[#allocation2 + $0x38] sm:$0x1] }
  0x89   : > { %1809 = vmatprep.mubr.bf16.mxu1 %v5037_v62  ;;  %v4189_v47 = vcombine.low %v719_v56, %v733_v43  ;;  %4617 = vmatpush3.bf16.msra.mxu1 %v5045_v3  ;;  %v1940_v53 = vsel %vm5798_vm5, 0, %v1939_v52  ;;  %v1949_v29 = vsel %vm5798_vm5, 0, %v1948_v27  ;;  %v5048_v31 = vld [vmem:[#allocation3 + $0x48] sm:$0xff]   ;;  %v1943_v34 = vsel %vm5798_vm5, 0, %v1942_v32  ;;  %v5050_v37 = vld [vmem:[#allocation3 + $0xd8] sm:$0xff]   ;;  %v5061_v57 = vld [vmem:[#allocation3 + $0x20] sm:$0xff]  }
  0x8a   : > { %v746_v13 = vrot.slane %v744_v38, 5  ;;  %v775_v60 = vsel %vm5497_vm2, %v770_v42, %v774_v51  ;;  %1941 = vst [vmem:[#allocation2 + $0x20] sm:$0x1] %v1940_v53  ;;  %1950 = vst [vmem:[#allocation2 + $0x38] sm:$0x1] %v1949_v29  ;;  %4618 = vmatprep.subr.bf16.mxu1 %v5048_v31  ;;  %v5052_v38 = vld [vmem:[#allocation3 + $0x50] sm:$0xff]  }
  0x8b   : > { %4811 = vmatpush3.bf16.msra.mxu0 %v5034_v14  ;;  %v758_v14 = vshll.u32 %v4153_v30, 16  ;;  %v4191_v62 = vcombine.low %v775_v60, %v789_v61  ;;  %v1975_v30 = vsel %vm5805_vm7, 0, %v1974_v28  ;;  %1944 = vst [vmem:[#allocation2 + $0x28] sm:$0x1] %v1943_v34  ;;  %v5056_v56 = vld [vmem:[#allocation3 + $0x58] sm:$0xff]   ;;  %v1946_v46 = vsel %vm5798_vm5, 0, %v1945_v44 }
  0x8c   : > { %4812 = vmatprep.subr.bf16.mxu0 %v5036_v58  ;;  %v747_v26 = vsel %vm5497_vm2, %v742_v35, %v746_v13  ;;  %1976 = vst [vmem:[#allocation2 + $0x3c] sm:$0x1] %v1975_v30  ;;  %v1969_v35 = vsel %vm5805_vm7, 0, %v1968_v33  ;;  %v1977_v42 = vld [vmem:[#allocation2 + $0x44] sm:$0x1]  ;;  %v5237_v51 = vmov 0  }
  0x8d   : > { %v760_v48 = vrot.slane %v758_v14, 5  ;;  %1970 = vst [vmem:[#allocation2 + $0x2c] sm:$0x1] %v1969_v35  ;;  %4619 = vmatpush3.bf16.msra.mxu1 %v5049_v36  ;;  %v1951_v14 = vld [vmem:[#allocation2 + $0x40] sm:$0x1]  ;;  %v1978_v13 = vsel %vm5805_vm7, 0, %v1977_v42 }
  0x8e   : > { %1745 = vmatmul.mubr.bf16.gmra.mrb[28].mxu0 %v5035_v63  ;;  %v5041_v63 = vld [vmem:[#allocation3 + $0x80] sm:$0xff]   ;;  %4620 = vmatprep.subr.bf16.mxu1 %v5052_v38  ;;  %v1952_v43 = vsel %vm5798_vm5, 0, %v1951_v14  ;;  %1979 = vst [vmem:[#allocation2 + $0x44] sm:$0x1] %v1978_v13  ;;  %1947 = vst [vmem:[#allocation2 + $0x30] sm:$0x1] %v1946_v46 }
  0x8f   : > { %4813 = vmatpush3.bf16.msra.mxu0 %v5036_v58  ;;  %v761_v58 = vsel %vm5497_vm2, %v756_v39, %v760_v48  ;;  %4816 = vmatprep.mubr.bf16.mxu0 %v4188_v50  ;;  %v5053_v39 = vld [vmem:[#allocation3 + $0x10] sm:$0xff]   ;;  %1953 = vst [vmem:[#allocation2 + $0x40] sm:$0x1] %v1952_v43  ;;  %v5057_v48 = vld [vmem:[#allocation3 + $0x18] sm:$0xff]   ;;  %v5059_v50 = vld [vmem:[#allocation3 + $0xa8] sm:$0xff]  }
  0x90   : > { %1810 = vmatmul.mubr.bf16.gmra.mrb[28].mxu1 %v4183_v8  ;;  %4814 = vmatprep.subr.bf16.mxu0 %v5039_v9  ;;  %v4190_v59 = vcombine.low %v747_v26, %v761_v58  ;;  %v1937_v8 = vsel %vm5798_vm5, 0, %v1936_v4  ;;  %v5060_v26 = vld [vmem:[#allocation3 + $0x60] sm:$0xff]   ;;  %1921 = vst [vmem:[#allocation2] sm:$0xf] %v5237_v51  ;;  %1922 = vst [vmem:[#allocation2 + $0x4] sm:$0x1] %v5237_v51 }
  0x91   : > { %1938 = vst [vmem:[#allocation2 + $0x18] sm:$0x1] %v1937_v8  ;;  %4621 = vmatpush3.bf16.msra.mxu1 %v5053_v39  ;;  %1924 = vst [vmem:[#allocation2 + $0x48] sm:$0xf] %v5237_v51  ;;  %v5062_v58 = vld [vmem:[#allocation3 + $0xf0] sm:$0xff]   ;;  %v5065_v60 = vld [vmem:[#allocation3 + $0x28] sm:$0xff]  }
  0x92   : > { %4622 = vmatprep.subr.bf16.mxu1 %v5056_v56  ;;  %1925 = vst [vmem:[#allocation2 + $0x4c] sm:$0x1] %v5237_v51  ;;  %v5063_v12 = vld [vmem:[#allocation3 + $0xb0] sm:$0xff]   ;;  %v5066_v61 = vld [vmem:[#allocation3 + $0xf8] sm:$0xff]   ;;  %v5078_v10 = vld [vmem:[#allocation3 + $0x140] sm:$0xff]  }
  0x93   : > { %4815 = vmatpush3.bf16.msra.mxu0 %v5039_v9  ;;  %v5075_v8 = vld [vmem:[#allocation3 + $0x38] sm:$0xff]  }
  0x94   : > { %4656 = vmatprep.subr.bf16.mxu0 %v5040_v41  ;;  %v5068_v41 = vld [vmem:[#allocation3 + $0x70] sm:$0xff]  }
  0x95   : > { %4623 = vmatpush3.bf16.msra.mxu1 %v5057_v48 }
  0x96   : > { %4817 = vmatmul.mubr.bf16.vlgmr.msra.gmra.mrb[32].mxu0 %v4189_v47  ;;  %v1972_v47 = vsel %vm5805_vm7, 0, %v1971_v45  ;;  %4624 = vmatprep.subr.bf16.mxu1 %v5060_v26 }
  0x97   : > { %4820 = vmatprep.mubr.bf16.mxu0 %v4190_v59  ;;  %4657 = vmatpush3.bf16.msra.mxu0 %v5041_v63  ;;  %1973 = vst [vmem:[#allocation2 + $0x34] sm:$0x1] %v1972_v47  ;;  %v5064_v59 = vld [vmem:[#allocation3 + $0x68] sm:$0xff]   ;;  %v5069_v63 = vld [vmem:[#allocation3 + $0x30] sm:$0xff]  }
  0x98   : > { %4658 = vmatprep.subr.bf16.mxu0 %v5042_v0  ;;  %v5071_v0 = vld [vmem:[#allocation3 + $0x1c0] sm:$0xff]  }
  0x99   : > { %4625 = vmatpush3.bf16.msra.mxu1 %v5061_v57 }
  0x9a   : > { %4626 = vmatprep.subr.bf16.mxu1 %v5064_v59 }
  0x9b   : > { %4659 = vmatpush3.bf16.msra.mxu0 %v5043_v1 }
  0x9c   : > { %4660 = vmatprep.subr.bf16.mxu0 %v5046_v7 }
  0x9d   : > { %4627 = vmatpush3.bf16.msra.mxu1 %v5065_v60 }
  0x9e   : > { %4821 = vmatmul.mubr.bf16.gmra.mrb[36].mxu0 %v4191_v62  ;;  %v5067_v62 = vld [vmem:[#allocation3 + $0xb8] sm:$0xff]   ;;  %4628 = vmatprep.subr.bf16.mxu1 %v5068_v41 }
  0x9f   : > { %4661 = vmatpush3.bf16.msra.mxu0 %v5047_v19 }
  0xa0   : > { %4662 = vmatprep.subr.bf16.mxu0 %v5050_v37 }
  0xa1   : > { %4629 = vmatpush3.bf16.msra.mxu1 %v5069_v63 }
  0xa2   : > { %4630 = vmatprep.subr.bf16.mxu1 %v5074_v2 }
  0xa3   : > { %4663 = vmatpush3.bf16.msra.mxu0 %v5051_v54 }
  0xa4   : > { %4664 = vmatprep.subr.bf16.mxu0 %v5054_v40 }
  0xa5   : > { %4631 = vmatpush3.bf16.msra.mxu1 %v5075_v8 }
  0xa6   : > { %4696 = vmatprep.subr.bf16.mxu1 %v5078_v10 }
  0xa7   : > { %4665 = vmatpush3.bf16.msra.mxu0 %v5055_v11 }
  0xa8   : > { %4666 = vmatprep.subr.bf16.mxu0 %v5058_v49 }
  0xab   : > { %4667 = vmatpush3.bf16.msra.mxu0 %v5059_v50 }
  0xac   : > { %4668 = vmatprep.subr.bf16.mxu0 %v5062_v58 }
  0xaf   : > { %4669 = vmatpush3.bf16.msra.mxu0 %v5063_v12 }
  0xb0   : > { %4670 = vmatprep.subr.bf16.mxu0 %v5066_v61 }
  0xb3   : > { %4671 = vmatpush3.bf16.msra.mxu0 %v5067_v62 }
  0xb4   : > { %4736 = vmatprep.subr.bf16.mxu0 %v5071_v0 }
 0x129   : > { %v4460_v1 = vpop.f32.mrb[0].mxu0 }
 0x12a   : > { %v4461_v3 = vpop.f32.mrb[1].mxu0  ;;  %v4500_v15 = vpop.f32.mrb[0].mxu1 }
 0x12b   : > { %v4462_v4 = vadd.f32 %v4461_v3, %v4460_v1  ;;  %v4463_v6 = vpop.f32.mrb[2].mxu0  ;;  %v4501_v16 = vpop.f32.mrb[1].mxu1 }
 0x12c   : > { %v4464_v7 = vpop.f32.mrb[3].mxu0  ;;  %v4502_v17 = vadd.f32 %v4501_v16, %v4500_v15  ;;  %v4503_v18 = vpop.f32.mrb[2].mxu1 }
 0x12d   : > { %v4465_v9 = vadd.f32 %v4464_v7, %v4463_v6  ;;  %v4504_v52 = vpop.f32.mrb[3].mxu1 }
 0x12e   : > { %v1658_v19 = vadd.f32 %v4502_v17, %v4462_v4  ;;  %v4505_v53 = vadd.f32 %v4504_v52, %v4503_v18 }
 0x130   : > { %v1661_v21 = vadd.f32 %v4505_v53, %v4465_v9 }
 0x131   : > { %v4466_v20 = vpop.f32.mrb[4].mxu0 }
 0x132   : > { %v4467_v22 = vpop.f32.mrb[5].mxu0  ;;  %v4506_v28 = vpop.f32.mrb[4].mxu1 }
 0x133   : > { %v4468_v23 = vadd.f32 %v4467_v22, %v4466_v20  ;;  %v4469_v24 = vpop.f32.mrb[6].mxu0  ;;  %v4507_v29 = vpop.f32.mrb[5].mxu1 }
 0x134   : > { %v4470_v25 = vpop.f32.mrb[7].mxu0  ;;  %v4508_v30 = vadd.f32 %v4507_v29, %v4506_v28  ;;  %v4509_v31 = vpop.f32.mrb[6].mxu1 }
 0x135   : > { %v4471_v27 = vadd.f32 %v4470_v25, %v4469_v24  ;;  %v4510_v32 = vpop.f32.mrb[7].mxu1 }
 0x136   : > { %v1666_v33 = vadd.f32 %v4508_v30, %v4468_v23  ;;  %v4511_v34 = vadd.f32 %v4510_v32, %v4509_v31 }
 0x138   : > { %v1669_v35 = vadd.f32 %v4511_v34, %v4471_v27 }
 0x139   : > { %v4472_v36 = vpop.f32.mrb[8].mxu0 }
 0x13a   : > { %v4473_v37 = vpop.f32.mrb[9].mxu0  ;;  %v4512_v11 = vpop.f32.mrb[8].mxu1 }
 0x13b   : > { %v4474_v54 = vadd.f32 %v4473_v37, %v4472_v36  ;;  %v4475_v38 = vpop.f32.mrb[10].mxu0  ;;  %v4513_v56 = vpop.f32.mrb[9].mxu1 }
 0x13c   : > { %v4476_v39 = vpop.f32.mrb[11].mxu0  ;;  %v4514_v14 = vadd.f32 %v4513_v56, %v4512_v11  ;;  %v4515_v42 = vpop.f32.mrb[10].mxu1 }
 0x13d   : > { %v4477_v40 = vadd.f32 %v4476_v39, %v4475_v38  ;;  %v4516_v43 = vpop.f32.mrb[11].mxu1 }
 0x13e   : > { %v1674_v13 = vadd.f32 %v4514_v14, %v4474_v54  ;;  %v4517_v44 = vadd.f32 %v4516_v43, %v4515_v42 }
 0x140   : > { %v1677_v45 = vadd.f32 %v4517_v44, %v4477_v40 }
 0x141   : > { %v4478_v46 = vpop.f32.mrb[12].mxu0 }
 0x142   : > { %v4479_v47 = vpop.f32.mrb[13].mxu0  ;;  %v4518_v51 = vpop.f32.mrb[12].mxu1 }
 0x143   : > { %v4480_v48 = vadd.f32 %v4479_v47, %v4478_v46  ;;  %v4481_v49 = vpop.f32.mrb[14].mxu0  ;;  %v4519_v57 = vpop.f32.mrb[13].mxu1 }
 0x144   : > { %v4482_v50 = vpop.f32.mrb[15].mxu0  ;;  %v4520_v58 = vadd.f32 %v4519_v57, %v4518_v51  ;;  %v4521_v12 = vpop.f32.mrb[14].mxu1 }
 0x145   : > { %v4483_v26 = vadd.f32 %v4482_v50, %v4481_v49  ;;  %v4522_v59 = vpop.f32.mrb[15].mxu1 }
 0x146   : > { %v1682_v60 = vadd.f32 %v4520_v58, %v4480_v48  ;;  %v4523_v61 = vadd.f32 %v4522_v59, %v4521_v12 }
 0x148   : > { %v5839_v62 = vadd.f32 %v4523_v61, %v4483_v26 }
 0x149   : > { %v4540_v41 = vpop.f32.mrb[16].mxu0 }
 0x14a   : > { %v4541_v63 = vpop.f32.mrb[17].mxu0 }
 0x14b   : > { %v4580_v0 = vpop.f32.mrb[16].mxu1  ;;  %v4542_v1 = vadd.f32 %v4541_v63, %v4540_v41  ;;  %v4543_v2 = vpop.f32.mrb[18].mxu0 }
 0x14c   : > { %v4581_v3 = vpop.f32.mrb[17].mxu1  ;;  %v4544_v4 = vpop.f32.mrb[19].mxu0 }
 0x14d   : > { %v4582_v6 = vadd.f32 %v4581_v3, %v4580_v0  ;;  %v4583_v7 = vpop.f32.mrb[18].mxu1  ;;  %v1723_v8 = vadd.f32 %v4542_v1, %v1658_v19  ;;  %v4545_v9 = vadd.f32 %v4544_v4, %v4543_v2  ;;  %v5843_v0 = vld [vmem:[#allocation2] sm:$0xf] }
 0x14e   : > { %v4584_v10 = vpop.f32.mrb[19].mxu1  ;;  %v5849_v3 = vld [vmem:[%s6443_s2] ss:$0 sm:$0xff] }
 0x14f   : > { %v4585_v15 = vadd.f32 %v4584_v10, %v4583_v7  ;;  %v1726_v16 = vadd.f32 %v4545_v9, %v1661_v21  ;;  %v1788_v17 = vadd.f32 %v4582_v6, %v1723_v8  ;;  %v2151_v6 = vshrl.u32 %v5843_v0, 16  ;;  %v5858_v9 = vld [vmem:[%s6444_s3] ss:$0 sm:$0xff] }
 0x151   : > { %v4546_v18 = vpop.f32.mrb[20].mxu0  ;;  %v1791_v52 = vadd.f32 %v4585_v15, %v1726_v16 }
 0x152   : > { %v4547_v53 = vpop.f32.mrb[21].mxu0 }
 0x153   : > { %v4586_v20 = vpop.f32.mrb[20].mxu1  ;;  %v4548_v22 = vadd.f32 %v4547_v53, %v4546_v18  ;;  %v4549_v23 = vpop.f32.mrb[22].mxu0 }
 0x154   : > { %v4587_v24 = vpop.f32.mrb[21].mxu1  ;;  %v4550_v25 = vpop.f32.mrb[23].mxu0 }
 0x155   : > { %v4588_v27 = vadd.f32 %v4587_v24, %v4586_v20  ;;  %v4589_v28 = vpop.f32.mrb[22].mxu1  ;;  %v1731_v29 = vadd.f32 %v4548_v22, %v1666_v33  ;;  %v4551_v30 = vadd.f32 %v4550_v25, %v4549_v23  ;;  %v5862_v22 = vld [vmem:[#allocation2 + $0x4] sm:$0x1]  ;;  %v5864_v23 = vld [vmem:[#allocation2] sm:$0xe]  ;;  %v5866_v24 = vrot.slane %v2151_v6, 4 }
 0x156   : > { %v4590_v31 = vpop.f32.mrb[23].mxu1  ;;  %v2089_v6 = vld [vmem:[#allocation2 + $0xc] sm:$0x1] }
 0x157   : > { %v4591_v32 = vadd.f32 %v4590_v31, %v4589_v28  ;;  %v1734_v19 = vadd.f32 %v4551_v30, %v1669_v35  ;;  %v1796_v34 = vadd.f32 %v4588_v27, %v1731_v29  ;;  %v5874_v30 = vld [vmem:[#allocation2 + $0x48] sm:$0xf] }
 0x159   : > { %v4552_v36 = vpop.f32.mrb[24].mxu0  ;;  %v1799_v37 = vadd.f32 %v4591_v32, %v1734_v19  ;;  %v4274_v32 = vrot.slane %v5864_v23, 9  ;;  %v2291_v19 = vrot.slane %v5862_v22, 5 }
 0x15a   : > { %v4553_v21 = vpop.f32.mrb[25].mxu0 }
 0x15b   : > { %v4592_v54 = vpop.f32.mrb[24].mxu1  ;;  %v4554_v38 = vadd.f32 %v4553_v21, %v4552_v36  ;;  %v4555_v39 = vpop.f32.mrb[26].mxu0 }
 0x15c   : > { %v4593_v40 = vpop.f32.mrb[25].mxu1  ;;  %v4556_v11 = vpop.f32.mrb[27].mxu0 }
 0x15d   : > { %v4594_v56 = vadd.f32 %v4593_v40, %v4592_v54  ;;  %v4595_v14 = vpop.f32.mrb[26].mxu1  ;;  %v1739_v42 = vadd.f32 %v4554_v38, %v1674_v13  ;;  %v4557_v43 = vadd.f32 %v4556_v11, %v4555_v39  ;;  %v2160_v54 = vshll.u32 %v5862_v22, 16 }
 0x15e   : > { %v4596_v44 = vpop.f32.mrb[27].mxu1 }
 0x15f   : > { %v4597_v46 = vadd.f32 %v4596_v44, %v4595_v14  ;;  %v1742_v33 = vadd.f32 %v4557_v43, %v1677_v45  ;;  %v1804_v47 = vadd.f32 %v4594_v56, %v1739_v42  ;;  %v2621_v56 = vshrl.u32 %v5874_v30, 16 }
 0x161   : > { %v4558_v48 = vpop.f32.mrb[28].mxu0  ;;  %v5841_v49 = vadd.f32 %v4597_v46, %v1742_v33  ;;  %v2624_v46 = vshll.u32 %v5874_v30, 16  ;;  %v5946_v30 = vsel %vm5915_vm12, %v4274_v32, %v2291_v19 }
 0x162   : > { %v4559_v35 = vpop.f32.mrb[29].mxu0 }
 0x163   : > { %v4598_v50 = vpop.f32.mrb[28].mxu1  ;;  %v4560_v26 = vadd.f32 %v4559_v35, %v4558_v48  ;;  %v4561_v51 = vpop.f32.mrb[30].mxu0 }
 0x164   : > { %v4599_v57 = vpop.f32.mrb[29].mxu1  ;;  %v4562_v58 = vpop.f32.mrb[31].mxu0 }
 0x165   : > { %v4600_v12 = vadd.f32 %v4599_v57, %v4598_v50  ;;  %v4601_v59 = vpop.f32.mrb[30].mxu1  ;;  %v1747_v61 = vadd.f32 %v4560_v26, %v1682_v60  ;;  %v4563_v41 = vadd.f32 %v4562_v58, %v4561_v51  ;;  %v2154_v60 = vshll.u32 %v5843_v0, 16  ;;  %v2098_v51 = vld [vmem:[#allocation2 + $0x18] sm:$0xf]  ;;  %v2101_v57 = vld [vmem:[#allocation2 + $0x1c] sm:$0x1] }
 0x166   : > { %v4602_v63 = vpop.f32.mrb[31].mxu1 }
 0x167   : > { %v4603_v13 = vadd.f32 %v4602_v63, %v4601_v59  ;;  %v1750_v45 = vadd.f32 %v4563_v41, %v5839_v62  ;;  %v1812_v1 = vadd.f32 %v4600_v12, %v1747_v61  ;;  %v5868_v25 = vrot.slane %v2154_v60, 5 }
 0x169   : > { %v4818_v2 = vpop.f32.mrb[32].mxu0  ;;  %v5851_v4 = vadd.f32 %v4603_v13, %v1750_v45  ;;  %v2157_v21 = vor.u32 %v5868_v25, %v5866_v24  ;;  %v2122_v25 = vld [vmem:[#allocation2 + $0x38] sm:$0xf] }
 0x16a   : > { %v1861_v7 = vadd.f32 %v4818_v2, %v1796_v34  ;;  %v1852_v8 = vpop.f32.mrb[33].mxu0 }
 0x16b   : > { %v1853_v62 = vadd.f32 %v1852_v8, %v1788_v17  ;;  %v4819_v10 = vpop.f32.mrb[34].mxu0 }
 0x16c   : > { %v1892_v15 = vmul.f32 %v5849_v3, %v1861_v7  ;;  %v1864_v16 = vadd.f32 %v4819_v10, %v1799_v37  ;;  %v1855_v18 = vpop.f32.mrb[35].mxu0 }
 0x16d   : > { %v1890_v53 = vmul.f32 %v5849_v3, %v1853_v62  ;;  %v1856_v20 = vadd.f32 %v1855_v18, %v1791_v52 }
 0x16e   : > { %v1907_v27 = vadd.f32 %v5858_v9, %v1892_v15  ;;  %v1893_v17 = vmul.f32 %v5849_v3, %v1864_v16  ;;  %v2104_v16 = vld [vmem:[#allocation2 + $0x20] sm:$0xf] }
 0x16f   : > { %v1905_v28 = vadd.f32 %v5858_v9, %v1890_v53  ;;  %v1891_v29 = vmul.f32 %v5849_v3, %v1856_v20 }
 0x170   : > { %v1915_v52 = vmax.f32 %v1907_v27, 0.0  ;;  %v1908_v31 = vadd.f32 %v5858_v9, %v1893_v17  ;;  %v2107_v27 = vld [vmem:[#allocation2 + $0x24] sm:$0x1] }
 0x171   : > { %v1913_v34 = vmax.f32 %v1905_v28, 0.0  ;;  %v1906_v36 = vadd.f32 %v5858_v9, %v1891_v29  ;;  %v4822_v37 = vpop.f32.mrb[36].mxu0 }
 0x172   : > { %v4437_v38 = vpack.c.bf16 %v1915_v52, %v1915_v52  ;;  %v1916_v39 = vmax.f32 %v1908_v31, 0.0  ;;  %v1877_v40 = vadd.f32 %v4822_v37, %v1812_v1  ;;  %v1868_v11 = vpop.f32.mrb[37].mxu0  ;;  %v2095_v37 = vld [vmem:[#allocation2 + $0x14] sm:$0x1] }
 0x173   : > { %v4435_v14 = vpack.c.bf16 %v1913_v34, %v1913_v34  ;;  %v1914_v42 = vmax.f32 %v1906_v36, 0.0  ;;  %v1869_v43 = vadd.f32 %v1868_v11, %v1804_v47  ;;  %v4823_v44 = vpop.f32.mrb[38].mxu0  ;;  %v2086_v47 = vld [vmem:[#allocation2 + $0x8] sm:$0xf]  ;;  %v2092_v36 = vld [vmem:[#allocation2 + $0x10] sm:$0xf] }
 0x174   : > { %v2021_v33 = vshrl.u32 %v4437_v38, 16  ;;  %v2024_v48 = vshll.u32 %v4437_v38, 16  ;;  %v4438_v35 = vpack.c.bf16 %v1916_v39, %v1916_v39  ;;  %v1896_v50 = vmul.f32 %v5849_v3, %v1877_v40  ;;  %v1871_v26 = vpop.f32.mrb[39].mxu0 }
 0x175   : > { %v2005_v58 = vshrl.u32 %v4435_v14, 16  ;;  %v2008_v12 = vshll.u32 %v4435_v14, 16  ;;  %v4436_v59 = vpack.c.bf16 %v1914_v42, %v1914_v42  ;;  %v1894_v61 = vmul.f32 %v5849_v3, %v1869_v43 }
 0x176   : > { %v2023_v41 = vrot.slane %v2021_v33, 7  ;;  %v2029_v63 = vshrl.u32 %v4438_v35, 16  ;;  %v2032_v13 = vshll.u32 %v4438_v35, 16  ;;  %v1911_v45 = vadd.f32 %v5858_v9, %v1896_v50 }
 0x177   : > { %v2007_v2 = vrot.slane %v2005_v58, 7  ;;  %v2013_v60 = vshrl.u32 %v4436_v59, 16  ;;  %v2016_v7 = vshll.u32 %v4436_v59, 16  ;;  %v1909_v8 = vadd.f32 %v5858_v9, %v1894_v61 }
 0x178   : > { %v2026_v62 = vor.u32 %v2024_v48, %v2023_v41  ;;  %v2027_v10 = vrot.slane %v2023_v41, 4  ;;  %v2031_v15 = vrot.slane %v2029_v63, 7  ;;  %v1919_v18 = vmax.f32 %v1911_v45, 0.0  ;;  %v2125_v63 = vld [vmem:[#allocation2 + $0x3c] sm:$0x1] }
 0x179   : > { %v2010_v53 = vor.u32 %v2008_v12, %v2007_v2  ;;  %v2011_v20 = vrot.slane %v2007_v2, 4  ;;  %v2015_v17 = vrot.slane %v2013_v60, 7  ;;  %v1917_v28 = vmax.f32 %v1909_v8, 0.0  ;;  %v5135_v12 = vld [vmem:[%s5477_s20 + $0x108] ss:$8 sps:$4 sm:$0xff]  }
 0x17a   : > { %v2099_v29 = vsel %vm5890_vm11, %v2026_v62, %v2098_v51  ;;  %v2102_v52 = vsel %vm5798_vm5, %v2027_v10, %v2101_v57  ;;  %v2034_v31 = vor.u32 %v2032_v13, %v2031_v15  ;;  %v2035_v34 = vrot.slane %v2031_v15, 4  ;;  %v2113_v13 = vld [vmem:[#allocation2 + $0x2c] sm:$0x1] }
 0x17b   : > { %2100 = vst [vmem:[#allocation2 + $0x18] sm:$0xf] %v2099_v29  ;;  %2103 = vst [vmem:[#allocation2 + $0x1c] sm:$0x1] %v2102_v52  ;;  %v2087_v38 = vsel %vm5890_vm11, %v2010_v53, %v2086_v47  ;;  %v2090_v39 = vsel %vm5798_vm5, %v2011_v20, %v2089_v6  ;;  %v2018_v40 = vor.u32 %v2016_v7, %v2015_v17  ;;  %v2019_v11 = vrot.slane %v2015_v17, 4 }
 0x17c   : > { %2088 = vst [vmem:[#allocation2 + $0x8] sm:$0xf] %v2087_v38  ;;  %2091 = vst [vmem:[#allocation2 + $0xc] sm:$0x1] %v2090_v39  ;;  %v2105_v14 = vsel %vm5890_vm11, %v2034_v31, %v2104_v16  ;;  %v2108_v42 = vsel %vm5798_vm5, %v2035_v34, %v2107_v27  ;;  %v4441_v43 = vpack.c.bf16 %v1919_v18, %v1919_v18  ;;  %v5922_v59 = vrot.slane %v2157_v21, 4 }
 0x17d   : > { %v4439_v33 = vpack.c.bf16 %v1917_v28, %v1917_v28  ;;  %2106 = vst [vmem:[#allocation2 + $0x20] sm:$0xf] %v2105_v14  ;;  %2109 = vst [vmem:[#allocation2 + $0x24] sm:$0x1] %v2108_v42  ;;  %v2093_v48 = vsel %vm5890_vm11, %v2018_v40, %v2092_v36  ;;  %v2096_v35 = vsel %vm5798_vm5, %v2019_v11, %v2095_v37  ;;  %v5936_v61 = vrot.slane %v2624_v46, 5 }
 0x17e   : > { %v1880_v50 = vadd.f32 %v4823_v44, %v5851_v4  ;;  %v1872_v51 = vadd.f32 %v1871_v26, %v5841_v49  ;;  %2094 = vst [vmem:[#allocation2 + $0x10] sm:$0xf] %v2093_v48  ;;  %2097 = vst [vmem:[#allocation2 + $0x14] sm:$0x1] %v2096_v35  ;;  %v2053_v57 = vshrl.u32 %v4441_v43, 16  ;;  %v5926_v4 = vrot.slane %v2160_v54, 5 }
 0x17f   : > { %v2037_v58 = vshrl.u32 %v4439_v33, 16  ;;  %v5932_v26 = vrot.slane %v2621_v56, 4  ;;  %v2056_v24 = vshll.u32 %v4441_v43, 16  ;;  %v2040_v47 = vshll.u32 %v4439_v33, 16  ;;  %v2110_v54 = vld [vmem:[#allocation2 + $0x28] sm:$0xf] }
 0x180   : > { %v1897_v49 = vmul.f32 %v5849_v3, %v1880_v50  ;;  %v1895_v44 = vmul.f32 %v5849_v3, %v1872_v51  ;;  %v2055_v41 = vrot.slane %v2053_v57, 7  ;;  %v2521_v27 = vld [vmem:[#allocation2 + $0x4c] sm:$0x1]  ;;  %v2128_v40 = vld [vmem:[#allocation2 + $0x40] sm:$0xf] }
 0x181   : > { %v2039_v21 = vrot.slane %v2037_v58, 7  ;;  %v2627_v22 = vor.u32 %v5936_v61, %v5932_v26  ;;  %v2630_v31 = vshll.u32 %v2521_v27, 16  ;;  %v2131_v11 = vld [vmem:[#allocation2 + $0x44] sm:$0x1]  ;;  %v2116_v58 = vld [vmem:[#allocation2 + $0x30] sm:$0xf] }
 0x182   : > { %v1912_v45 = vadd.f32 %v5858_v9, %v1897_v49  ;;  %v1910_v3 = vadd.f32 %v5858_v9, %v1895_v44  ;;  %v2058_v56 = vor.u32 %v2056_v24, %v2055_v41  ;;  %v2059_v46 = vrot.slane %v2055_v41, 4  ;;  %v2323_v39 = vld [vmem:[#allocation2 + $0x18] sm:$0xf]  ;;  %v2119_v49 = vld [vmem:[#allocation2 + $0x34] sm:$0x1] }
 0x183   : > { %v2042_v2 = vor.u32 %v2040_v47, %v2039_v21  ;;  %v2043_v6 = vrot.slane %v2039_v21, 4  ;;  %v2321_v8 = vld [vmem:[#allocation2 + $0x8] sm:$0xf]  ;;  %v2163_v9 = vsel %vm5497_vm2, %v5922_v59, %v5926_v4  ;;  %v5962_v52 = vld [vmem:[#allocation2 + $0xc] sm:$0x1]  ;;  %v2366_v61 = vshrl.u32 %v2323_v39, 16 }
 0x184   : > { %v1920_v60 = vmax.f32 %v1912_v45, 0.0  ;;  %v1918_v7 = vmax.f32 %v1910_v3, 0.0  ;;  %v2123_v23 = vsel %vm5890_vm11, %v2058_v56, %v2122_v25  ;;  %v2126_v32 = vsel %vm5798_vm5, %v2059_v46, %v2125_v63  ;;  %v2263_v10 = vld [vmem:[#allocation2 + $0x8] sm:$0xe]  ;;  %v5965_v57 = vld [vmem:[#allocation2 + $0x20] sm:$0xf] }
 0x185   : > { %v2111_v19 = vsel %vm5890_vm11, %v2042_v2, %v2110_v54  ;;  %v2114_v62 = vsel %vm5798_vm5, %v2043_v6, %v2113_v13  ;;  %2124 = vst [vmem:[#allocation2 + $0x38] sm:$0xf] %v2123_v23  ;;  %2127 = vst [vmem:[#allocation2 + $0x3c] sm:$0x1] %v2126_v32  ;;  %v2322_v18 = vld [vmem:[#allocation2 + $0x10] sm:$0xf] }
 0x186   : > { %2112 = vst [vmem:[#allocation2 + $0x28] sm:$0xf] %v2111_v19  ;;  %2115 = vst [vmem:[#allocation2 + $0x2c] sm:$0x1] %v2114_v62  ;;  %v4442_v15 = vpack.c.bf16 %v1920_v60, %v1920_v60  ;;  %v4440_v16 = vpack.c.bf16 %v1918_v7, %v1918_v7  ;;  %v2338_v53 = vshrl.u32 %v2321_v8, 16  ;;  %v2341_v20 = vshll.u32 %v2321_v8, 16 }
 0x187   : > { %v2352_v17 = vshrl.u32 %v2322_v18, 16  ;;  %v2355_v28 = vshll.u32 %v2322_v18, 16  ;;  %v4310_v29 = vcombine.low %v2321_v8, %v2322_v18  ;;  %v4275_v38 = vrot.slane %v2263_v10, 9  ;;  %v5972_v45 = vld [vmem:[#allocation2 + $0x8] sm:$0xf]  ;;  %v5073_v60 = vld [vmem:[#allocation3 + $0x180] sm:$0xff]  }
 0x188   : > { %v2061_v34 = vshrl.u32 %v4442_v15, 16  ;;  %v2064_v36 = vshll.u32 %v4442_v15, 16  ;;  %v2045_v37 = vshrl.u32 %v4440_v16, 16  ;;  %v2340_v14 = vrot.slane %v2338_v53, 4  ;;  %v5984_v7 = vld [vmem:[#allocation2 + $0x10] sm:$0xf] }
 0x189   : > { %v2343_v42 = vrot.slane %v2341_v20, 5  ;;  %v2354_v43 = vrot.slane %v2352_v17, 4  ;;  %v2357_v33 = vrot.slane %v2355_v28, 5  ;;  %3531 = vmatprep.mubr.bf16.mxu0 %v4310_v29  ;;  %v2048_v50 = vshll.u32 %v4440_v16, 16  ;;  %v5986_v8 = vld [vmem:[#allocation2 + $0x18] sm:$0xf] }
 0x18a   : > { %v2063_v48 = vrot.slane %v2061_v34, 7  ;;  %v2047_v35 = vrot.slane %v2045_v37, 7  ;;  %v2295_v51 = vrot.slane %v5962_v52, 5  ;;  %v5967_v41 = vrot.slane %v2627_v22, 4  ;;  %v5076_v19 = vld [vmem:[#allocation3 + $0x1c8] sm:$0xff]  }
 0x18b   : > { %v2344_v44 = vor.u32 %v2343_v42, %v2340_v14  ;;  %v2358_v26 = vor.u32 %v2357_v33, %v2354_v43  ;;  %v2369_v54 = vshll.u32 %v2323_v39, 16  ;;  %v2380_v13 = vshrl.u32 %v5965_v57, 16  ;;  %v2144_v5 = vld [vmem:[#allocation2 + $0x14] sm:$0x1]  ;;  %v2145_v18 = vld [vmem:[#allocation2 + $0x1c] sm:$0x1] }
 0x18c   : > { %v2066_v24 = vor.u32 %v2064_v36, %v2063_v48  ;;  %v2067_v25 = vrot.slane %v2063_v48, 4  ;;  %v2050_v21 = vor.u32 %v2048_v50, %v2047_v35  ;;  %v2051_v47 = vrot.slane %v2047_v35, 4  ;;  %v2264_v17 = vld [vmem:[#allocation2 + $0x10] sm:$0xe]  ;;  %v5077_v29 = vld [vmem:[#allocation3 + $0x188] sm:$0xff]  }
 0x18d   : > { %v2296_v63 = vsel %vm5915_vm12, %v4275_v38, %v2295_v51  ;;  %v5974_v3 = vrot.slane %v2630_v31, 5  ;;  %v5988_v22 = vrot.slane %v2344_v44, 4  ;;  %v5990_v23 = vrot.slane %v2358_v26, 4  ;;  %v2325_v48 = vld [vmem:[#allocation2 + $0x28] sm:$0xf]  ;;  %v5084_v59 = vld [vmem:[#allocation3 + $0x148] sm:$0xff]  }
 0x18e   : > { %v2129_v56 = vsel %vm5890_vm11, %v2066_v24, %v2128_v40  ;;  %v2132_v46 = vsel %vm5798_vm5, %v2067_v25, %v2131_v11  ;;  %v2117_v2 = vsel %vm5890_vm11, %v2050_v21, %v2116_v58  ;;  %v2120_v6 = vsel %vm5798_vm5, %v2051_v47, %v2119_v49  ;;  %v2265_v11 = vld [vmem:[#allocation2 + $0x18] sm:$0xe]  ;;  %v2147_v4 = vld [vmem:[#allocation2 + $0x2c] sm:$0x1] }
 0x18f   : > { %2130 = vst [vmem:[#allocation2 + $0x40] sm:$0xf] %v2129_v56  ;;  %2133 = vst [vmem:[#allocation2 + $0x44] sm:$0x1] %v2132_v46  ;;  %v4306_v32 = vcombine.low %v5946_v30, %v2296_v63  ;;  %v5993_v1 = vrot.slane %v2366_v61, 4  ;;  %v4311_v62 = vcombine.low %v2323_v39, %v5965_v57  ;;  %v2165_v10 = vshrl.u32 %v5972_v45, 16 }
 0x190   : > { %2118 = vst [vmem:[#allocation2 + $0x30] sm:$0xf] %v2117_v2  ;;  %2121 = vst [vmem:[#allocation2 + $0x34] sm:$0x1] %v2120_v6  ;;  %v2168_v15 = vshll.u32 %v5972_v45, 16  ;;  %v2174_v16 = vshll.u32 %v5962_v52, 16 }
 0x191   : > { %3532 = vmatmul.mubr.bf16.vlgmr.msra.gmra.mrb[40].mxu0 %v4306_v32  ;;  %v5999_v53 = vrot.slane %v2369_v54, 5  ;;  %v6001_v20 = vrot.slane %v2380_v13, 4  ;;  %v2179_v30 = vshrl.u32 %v5984_v7, 16  ;;  %v2182_v27 = vshll.u32 %v5984_v7, 16  ;;  %v5081_v52 = vld [vmem:[#allocation3 + $0x1d0] sm:$0xff]   ;;  %v5086_v2 = vld [vmem:[#allocation3 + $0x1d8] sm:$0xff]  }
 0x192   : > { %v2383_v28 = vshll.u32 %v5965_v57, 16  ;;  %3539 = vmatprep.mubr.bf16.mxu0 %v4311_v62  ;;  %4737 = vmatpush3.bf16.msra.mxu0 %v5073_v60  ;;  %v2167_v31 = vrot.slane %v2165_v10, 4  ;;  %v2170_v34 = vrot.slane %v2168_v15, 5  ;;  %v2188_v36 = vshll.u32 %v2144_v5, 16  ;;  %v5083_v61 = vld [vmem:[#allocation3 + $0x190] sm:$0xff]   ;;  %v5080_v32 = vld [vmem:[#allocation3 + $0x100] sm:$0xff]  }
 0x193   : > { %4738 = vmatprep.subr.bf16.mxu0 %v5076_v19  ;;  %v2181_v37 = vrot.slane %v2179_v30, 4  ;;  %v2184_v38 = vrot.slane %v2182_v27, 5  ;;  %v2193_v39 = vshrl.u32 %v5986_v8, 16  ;;  %v2196_v40 = vshll.u32 %v5986_v8, 16  ;;  %v6014_v6 = vld [vmem:[#allocation2 + $0x20] sm:$0xf] }
 0x194   : > { %v2171_v14 = vor.u32 %v2170_v34, %v2167_v31  ;;  %v2176_v42 = vrot.slane %v2174_v16, 5  ;;  %v2202_v43 = vshll.u32 %v2145_v18, 16  ;;  %v4276_v33 = vrot.slane %v2264_v17, 9  ;;  %v6023_v10 = vld [vmem:[#allocation2 + $0x28] sm:$0xf]  ;;  %v5085_v31 = vld [vmem:[#allocation3 + $0x108] sm:$0xff]  }
 0x195   : > { %v2185_v35 = vor.u32 %v2184_v38, %v2181_v37  ;;  %v2195_v50 = vrot.slane %v2193_v39, 4  ;;  %v2198_v51 = vrot.slane %v2196_v40, 5  ;;  %v2299_v57 = vrot.slane %v2144_v5, 5  ;;  %v6025_v15 = vld [vmem:[#allocation2 + $0x24] sm:$0x1]  ;;  %v5091_v39 = vld [vmem:[#allocation3 + $0x1e0] sm:$0xff]  }
 0x196   : > { %4739 = vmatpush3.bf16.msra.mxu0 %v5077_v29  ;;  %v2172_v58 = vrot.slane %v2171_v14, 4  ;;  %v2190_v49 = vrot.slane %v2188_v36, 5  ;;  %v4277_v44 = vrot.slane %v2265_v11, 9  ;;  %v2303_v26 = vrot.slane %v2145_v18, 5  ;;  %v2266_v36 = vld [vmem:[#allocation2 + $0x20] sm:$0xe] }
 0x197   : > { %v2186_v24 = vrot.slane %v2185_v35, 4  ;;  %v2199_v25 = vor.u32 %v2198_v51, %v2195_v50  ;;  %v2300_v21 = vsel %vm5915_vm12, %v4276_v33, %v2299_v57  ;;  %4740 = vmatprep.subr.bf16.mxu0 %v5081_v52  ;;  %v2326_v47 = vld [vmem:[#allocation2 + $0x30] sm:$0xf]  ;;  %v2394_v63 = vshrl.u32 %v2325_v48, 16  ;;  %v2267_v38 = vld [vmem:[#allocation2 + $0x28] sm:$0xe] }
 0x198   : > { %v2177_v54 = vsel %vm5497_vm2, %v2172_v58, %v2176_v42  ;;  %v2204_v13 = vrot.slane %v2202_v43, 5  ;;  %v2304_v56 = vsel %vm5915_vm12, %v4277_v44, %v2303_v26  ;;  %v2397_v46 = vshll.u32 %v2325_v48, 16  ;;  %v2327_v43 = vld [vmem:[#allocation2 + $0x38] sm:$0xf]  ;;  %v6047_v26 = vld [vmem:[#allocation2 + $0x40] sm:$0xf] }
 0x199   : > { %v4302_v60 = vcombine.low %v2163_v9, %v2177_v54  ;;  %v2191_v19 = vsel %vm5497_vm2, %v2186_v24, %v2190_v49  ;;  %v2200_v5 = vrot.slane %v2199_v25, 4  ;;  %v4307_v62 = vcombine.low %v2300_v21, %v2304_v56  ;;  %v5090_v25 = vld [vmem:[#allocation3 + $0x110] sm:$0xff]   ;;  %v5096_v54 = vld [vmem:[#allocation3 + $0x1e8] sm:$0xff]  }
 0x19a   : > { %v6027_v16 = vrot.slane %v2383_v28, 5  ;;  %v4298_v18 = vcombine.low %v5843_v0, %v5972_v45  ;;  %v6031_v30 = vrot.slane %v2394_v63, 4  ;;  %v2408_v27 = vshrl.u32 %v2326_v47, 16  ;;  %4741 = vmatpush3.bf16.msra.mxu0 %v5083_v61  ;;  %v5087_v28 = vld [vmem:[#allocation3 + $0x198] sm:$0xff]   ;;  %v5093_v61 = vld [vmem:[#allocation3 + $0x1a0] sm:$0xff]  }
 0x19b   : > { %3466 = vmatprep.mubr.bf16.mxu1 %v4302_v60  ;;  %v2205_v9 = vsel %vm5497_vm2, %v2200_v5, %v2204_v13  ;;  %3540 = vmatmul.mubr.bf16.gmra.mrb[44].mxu0 %v4307_v62  ;;  %v6035_v17 = vrot.slane %v2397_v46, 5  ;;  %v4312_v29 = vcombine.low %v2325_v48, %v2326_v47  ;;  %v2207_v34 = vshrl.u32 %v6014_v6, 16  ;;  %v5088_v48 = vld [vmem:[#allocation3 + $0x150] sm:$0xff]   ;;  %v6058_v62 = vld [vmem:[#allocation2 + $0x38] sm:$0xf] }
 0x19c   : > { %3467 = vmatmul.mubr.bf16.vlgmr.msra.gmra.mrb[32].mxu1 %v4298_v18  ;;  %v4303_v0 = vcombine.low %v2191_v19, %v2205_v9  ;;  %v2411_v45 = vshll.u32 %v2326_v47, 16  ;;  %4742 = vmatprep.subr.bf16.mxu0 %v5086_v2  ;;  %v2210_v52 = vshll.u32 %v6014_v6, 16  ;;  %v2216_v37 = vshll.u32 %v6025_v15, 16  ;;  %v5095_v9 = vld [vmem:[#allocation3 + $0x118] sm:$0xff]  }
 0x19d   : > { %4697 = vmatpush3.bf16.msra.mxu1 %v5080_v32  ;;  %3547 = vmatprep.mubr.bf16.mxu0 %v4312_v29  ;;  %v2209_v40 = vrot.slane %v2207_v34, 4  ;;  %v2221_v11 = vshrl.u32 %v6023_v10, 16  ;;  %v2224_v14 = vshll.u32 %v6023_v10, 16  ;;  %v2230_v42 = vshll.u32 %v2147_v4, 16  ;;  %v5097_v29 = vld [vmem:[#allocation3 + $0x1a8] sm:$0xff]  }
 0x19e   : > { %3474 = vmatprep.mubr.bf16.mxu1 %v4303_v0  ;;  %v6042_v33 = vrot.slane %v2408_v27, 4  ;;  %4698 = vmatprep.subr.bf16.mxu1 %v5084_v59  ;;  %v2212_v35 = vrot.slane %v2210_v52, 5  ;;  %v4278_v50 = vrot.slane %v2266_v36, 9  ;;  %v2307_v51 = vrot.slane %v6025_v15, 5  ;;  %v2148_v15 = vld [vmem:[#allocation2 + $0x34] sm:$0x1] }
 0x19f   : > { %4743 = vmatpush3.bf16.msra.mxu0 %v5087_v28  ;;  %v4299_v57 = vcombine.low %v5984_v7, %v5986_v8  ;;  %v2223_v58 = vrot.slane %v2221_v11, 4  ;;  %v2226_v49 = vrot.slane %v2224_v14, 5  ;;  %v4279_v44 = vrot.slane %v2267_v38, 9  ;;  %v5094_v7 = vld [vmem:[#allocation3 + $0x158] sm:$0xff]   ;;  %v6051_v8 = vld [vmem:[#allocation2 + $0x30] sm:$0xf] }
 0x1a0   : > { %v6049_v24 = vrot.slane %v2411_v45, 5  ;;  %v2213_v21 = vor.u32 %v2212_v35, %v2209_v40  ;;  %v2311_v47 = vrot.slane %v2147_v4, 5  ;;  %4744 = vmatprep.subr.bf16.mxu0 %v5091_v39  ;;  %v2422_v63 = vshrl.u32 %v2327_v43, 16  ;;  %v5098_v0 = vld [vmem:[#allocation3 + $0x160] sm:$0xff]   ;;  %v2149_v45 = vld [vmem:[#allocation2 + $0x3c] sm:$0x1] }
 0x1a1   : > { %4699 = vmatpush3.bf16.msra.mxu1 %v5085_v31  ;;  %v2218_v13 = vrot.slane %v2216_v37, 5  ;;  %v2227_v56 = vor.u32 %v2226_v49, %v2223_v58  ;;  %v2232_v46 = vrot.slane %v2230_v42, 5  ;;  %v2425_v2 = vshll.u32 %v2327_v43, 16  ;;  %v5101_v31 = vld [vmem:[#allocation3 + $0x1f0] sm:$0xff]   ;;  %v2268_v37 = vld [vmem:[#allocation2 + $0x30] sm:$0xe] }
 0x1a2   : > { %4700 = vmatprep.subr.bf16.mxu1 %v5088_v48  ;;  %v2214_v60 = vrot.slane %v2213_v21, 4  ;;  %v2308_v32 = vsel %vm5915_vm12, %v4278_v50, %v2307_v51  ;;  %v2312_v19 = vsel %vm5915_vm12, %v4279_v44, %v2311_v47  ;;  %v2436_v5 = vshrl.u32 %v6047_v26, 16  ;;  %v2269_v14 = vld [vmem:[#allocation2 + $0x38] sm:$0xe]  ;;  %v5102_v42 = vld [vmem:[#allocation3 + $0x1b0] sm:$0xff]  }
 0x1a3   : > { %v2228_v18 = vrot.slane %v2227_v56, 4  ;;  %v4308_v27 = vcombine.low %v2308_v32, %v2312_v19  ;;  %v6060_v59 = vrot.slane %v2422_v63, 4  ;;  %v2439_v4 = vshll.u32 %v6047_v26, 16  ;;  %4745 = vmatpush3.bf16.msra.mxu0 %v5093_v61  ;;  %v6076_v51 = vld [vmem:[#allocation2 + $0x10] sm:$0xf] }
 0x1a4   : > { %3475 = vmatmul.mubr.bf16.gmra.mrb[36].mxu1 %v4299_v57  ;;  %v2219_v28 = vsel %vm5497_vm2, %v2214_v60, %v2218_v13  ;;  %v6065_v34 = vrot.slane %v2425_v2, 5  ;;  %v4313_v36 = vcombine.low %v2327_v43, %v6047_v26  ;;  %4746 = vmatprep.subr.bf16.mxu0 %v5096_v54  ;;  %v2235_v52 = vshrl.u32 %v6051_v8, 16  ;;  %v6078_v57 = vld [vmem:[#allocation2 + $0x18] sm:$0xf]  ;;  %v6086_v32 = vld [vmem:[#allocation2 + $0x1c] sm:$0x1] }
 0x1a5   : > { %4701 = vmatpush3.bf16.msra.mxu1 %v5090_v25  ;;  %v2233_v38 = vsel %vm5497_vm2, %v2228_v18, %v2232_v46  ;;  %3548 = vmatmul.mubr.bf16.gmra.mrb[48].mxu0 %v4308_v27  ;;  %v2238_v39 = vshll.u32 %v6051_v8, 16  ;;  %v2244_v40 = vshll.u32 %v2148_v15, 16  ;;  %v2249_v11 = vshrl.u32 %v6058_v62, 16  ;;  %v6080_v25 = vld [vmem:[#allocation2 + $0x14] sm:$0x1]  ;;  %v5103_v18 = vld [vmem:[#allocation3 + $0x168] sm:$0xff]  }
 0x1a6   : > { %v4304_v48 = vcombine.low %v2219_v28, %v2233_v38  ;;  %3555 = vmatprep.mubr.bf16.mxu0 %v4313_v36  ;;  %4702 = vmatprep.subr.bf16.mxu1 %v5094_v7  ;;  %v4300_v43 = vcombine.low %v6014_v6, %v6023_v10  ;;  %v2237_v35 = vrot.slane %v2235_v52, 4  ;;  %v2252_v50 = vshll.u32 %v6058_v62, 16  ;;  %v5105_v6 = vld [vmem:[#allocation3 + $0x1f8] sm:$0xff]   ;;  %v5100_v10 = vld [vmem:[#allocation3 + $0x120] sm:$0xff]   ;;  %v5104_v28 = vld [vmem:[#allocation3 + $0x128] sm:$0xff]  }
 0x1a7   : > { %4747 = vmatpush3.bf16.msra.mxu0 %v5097_v29  ;;  %v2240_v58 = vrot.slane %v2238_v39, 5  ;;  %v2251_v49 = vrot.slane %v2249_v11, 4  ;;  %v2258_v44 = vshll.u32 %v2149_v45, 16  ;;  %v4280_v61 = vrot.slane %v2268_v37, 9  ;;  %v5106_v36 = vld [vmem:[#allocation3 + $0x1b8] sm:$0xff]   ;;  %v6097_v39 = vld [vmem:[%s6448_s7] sm:$0xff]  }
 0x1a8   : > { %3482 = vmatprep.mubr.bf16.mxu1 %v4304_v48  ;;  %v2246_v21 = vrot.slane %v2244_v40, 5  ;;  %v2254_v47 = vrot.slane %v2252_v50, 5  ;;  %v2315_v63 = vrot.slane %v2148_v15, 5  ;;  %v4281_v54 = vrot.slane %v2269_v14, 9  ;;  %4748 = vmatprep.subr.bf16.mxu0 %v5101_v31  ;;  %v6092_v38 = vld [vmem:[#allocation2 + $0xc] sm:$0x1] }
 0x1a9   : > { %4703 = vmatpush3.bf16.msra.mxu1 %v5095_v9  ;;  %v2241_v13 = vor.u32 %v2240_v58, %v2237_v35  ;;  %v2319_v56 = vrot.slane %v2149_v45, 5  ;;  %v2523_v46 = vshrl.u32 %v6076_v51, 16  ;;  %v2526_v2 = vshll.u32 %v6076_v51, 16  ;;  %v2330_v48 = vld [vmem:[#allocation2 + $0x14] sm:$0x1] }
 0x1aa   : > { %4704 = vmatprep.subr.bf16.mxu1 %v5098_v0  ;;  %v2255_v7 = vor.u32 %v2254_v47, %v2251_v49  ;;  %v2316_v60 = vsel %vm5915_vm12, %v4280_v61, %v2315_v63  ;;  %v2532_v19 = vshll.u32 %v6080_v25, 16  ;;  %v2537_v15 = vshrl.u32 %v6078_v57, 16  ;;  %v2450_v61 = vld [vmem:[#allocation2 + $0x10] sm:$0xe]  ;;  %v6117_v26 = vld [vmem:[#allocation2 + $0x28] sm:$0xf] }
 0x1ab   : > { %v2242_v27 = vrot.slane %v2241_v13, 4  ;;  %v2320_v9 = vsel %vm5915_vm12, %v4281_v54, %v2319_v56  ;;  %4749 = vmatpush3.bf16.msra.mxu0 %v5102_v42  ;;  %v2525_v29 = vrot.slane %v2523_v46, 4  ;;  %v2528_v31 = vrot.slane %v2526_v2, 5  ;;  %v6115_v54 = vld [vmem:[#allocation2 + $0x20] sm:$0xf] }
 0x1ac   : > { %3483 = vmatmul.mubr.bf16.gmra.mrb[40].mxu1 %v4300_v43  ;;  %v2256_v0 = vrot.slane %v2255_v7, 4  ;;  %v2260_v45 = vrot.slane %v2258_v44, 5  ;;  %v4309_v52 = vcombine.low %v2316_v60, %v2320_v9  ;;  %v2539_v37 = vrot.slane %v2537_v15, 4  ;;  %4750 = vmatprep.subr.bf16.mxu0 %v5105_v6  ;;  %v2449_v43 = vld [vmem:[#allocation2 + $0x8] sm:$0xe]  ;;  %v5107_v44 = vld [vmem:[#allocation3 + $0x170] sm:$0xff]  }
 0x1ad   : > { %4705 = vmatpush3.bf16.msra.mxu1 %v5100_v10  ;;  %v2247_v40 = vsel %vm5497_vm2, %v2242_v27, %v2246_v21  ;;  %v2529_v11 = vor.u32 %v2528_v31, %v2525_v29  ;;  %v2540_v14 = vshll.u32 %v6078_v57, 16  ;;  %v2546_v42 = vshll.u32 %v6086_v32, 16  ;;  %v6121_v56 = vld [vmem:[#allocation2 + $0x24] sm:$0x1]  ;;  %v6128_v15 = vld [vmem:[#allocation2 + $0x2c] sm:$0x1] }
 0x1ae   : > { %v6105_v35 = vrot.slane %v2436_v5, 4  ;;  %v6109_v50 = vrot.slane %v2439_v4, 5  ;;  %v2261_v58 = vsel %vm5497_vm2, %v2256_v0, %v2260_v45  ;;  %3556 = vmatmul.mubr.bf16.gmra.mrb[52].mxu0 %v4309_v52  ;;  %v2534_v49 = vrot.slane %v2532_v19, 5  ;;  %4706 = vmatprep.subr.bf16.mxu1 %v5103_v18  ;;  %v5109_v7 = vld [vmem:[#allocation3 + $0x130] sm:$0xff]   ;;  %v5111_v9 = vld [vmem:[#allocation3 + $0x178] sm:$0xff]  }
 0x1af   : > { %v4305_v21 = vcombine.low %v2247_v40, %v2261_v58  ;;  %v2530_v47 = vrot.slane %v2529_v11, 4  ;;  %v2542_v63 = vrot.slane %v2540_v14, 5  ;;  %4751 = vmatpush3.bf16.msra.mxu0 %v5106_v36  ;;  %v4301_v5 = vcombine.low %v6051_v8, %v6058_v62  ;;  %v6137_v40 = vld [vmem:[#allocation2 + $0x1c] sm:$0x1]  ;;  %v2451_v58 = vld [vmem:[#allocation2 + $0x18] sm:$0xe] }
 0x1b0   : > { %v2347_v4 = vshll.u32 %v6092_v38, 16  ;;  %v2361_v6 = vshll.u32 %v2330_v48, 16  ;;  %v4282_v10 = vrot.slane %v2449_v43, 9  ;;  %v2475_v13 = vrot.slane %v6092_v38, 5  ;;  %4848 = vmatprep.subr.bf16.mxu0 %v6097_v39  ;;  %v5112_v38 = vld [vmem:[#allocation3 + $0x138] sm:$0xff]   ;;  %v5113_v43 = vld [vmem:[#allocation3 + $0x200] sm:$0xff]  }
 0x1b1   : > { %3490 = vmatprep.mubr.bf16.mxu1 %v4305_v21  ;;  %v2543_v46 = vor.u32 %v2542_v63, %v2539_v37  ;;  %v2548_v2 = vrot.slane %v2546_v42, 5  ;;  %4707 = vmatpush3.bf16.msra.mxu1 %v5104_v28  ;;  %v4283_v8 = vrot.slane %v2450_v61, 9  ;;  %v2479_v62 = vrot.slane %v2330_v48, 5  ;;  %v2452_v63 = vld [vmem:[#allocation2 + $0x20] sm:$0xe] }
 0x1b2   : > { %v2535_v60 = vsel %vm5497_vm2, %v2530_v47, %v2534_v49  ;;  %4708 = vmatprep.subr.bf16.mxu1 %v5107_v44  ;;  %v2476_v19 = vsel %vm5915_vm12, %v4282_v10, %v2475_v13  ;;  %v2551_v18 = vshrl.u32 %v6115_v54, 16  ;;  %v2554_v27 = vshll.u32 %v6115_v54, 16  ;;  %v6142_v47 = vld [vmem:[#allocation2 + $0x24] sm:$0x1] }
 0x1b3   : > { %v2544_v29 = vrot.slane %v2543_v46, 4  ;;  %v2480_v31 = vsel %vm5915_vm12, %v4283_v8, %v2479_v62  ;;  %v2560_v28 = vshll.u32 %v6121_v56, 16  ;;  %v2565_v36 = vshrl.u32 %v6117_v26, 16  ;;  %v6149_v46 = vld [vmem:[#allocation2 + $0x30] sm:$0xf] }
 0x1b4   : > { %3491 = vmatmul.mubr.bf16.gmra.mrb[44].mxu1 %v4301_v5  ;;  %v4318_v0 = vcombine.low %v2476_v19, %v2480_v31  ;;  %v2553_v45 = vrot.slane %v2551_v18, 4  ;;  %v2556_v52 = vrot.slane %v2554_v27, 5  ;;  %v2568_v37 = vshll.u32 %v6117_v26, 16  ;;  %v6159_v8 = vld [vmem:[#allocation2 + $0x38] sm:$0xf] }
 0x1b5   : > { %v2549_v11 = vsel %vm5497_vm2, %v2544_v29, %v2548_v2  ;;  %4709 = vmatpush3.bf16.msra.mxu1 %v5109_v7  ;;  %v2363_v14 = vrot.slane %v2361_v6, 5  ;;  %v2567_v42 = vrot.slane %v2565_v36, 4  ;;  %v2574_v48 = vshll.u32 %v6128_v15, 16  ;;  %v6161_v62 = vld [vmem:[#allocation2 + $0x34] sm:$0x1]  ;;  %v5116_v31 = vld [vmem:[#allocation3 + $0x208] sm:$0xff]  }
 0x1b6   : > { %v4326_v49 = vcombine.low %v2535_v60, %v2549_v11  ;;  %v2349_v44 = vrot.slane %v2347_v4, 5  ;;  %3596 = vmatprep.mubr.bf16.mxu1 %v4318_v0  ;;  %v2557_v61 = vor.u32 %v2556_v52, %v2553_v45  ;;  %v2570_v21 = vrot.slane %v2568_v37, 5  ;;  %4710 = vmatprep.subr.bf16.mxu1 %v5111_v9  ;;  %v6154_v4 = vld [vmem:[%s6448_s7 + $0x8] sm:$0xff]   ;;  %v6174_v0 = vld [vmem:[#allocation2 + $0x3c] sm:$0x1] }
 0x1b7   : > { %v4322_v5 = vcombine.low %v6076_v51, %v6078_v57  ;;  %v2562_v10 = vrot.slane %v2560_v28, 5  ;;  %v2576_v13 = vrot.slane %v2574_v48, 5  ;;  %v2364_v6 = vsel %vm5497_vm2, %v5990_v23, %v2363_v14  ;;  %v6184_v48 = vld [vmem:[%s6448_s7 + $0x10] sm:$0xff]  }
 0x1b8   : > { %3661 = vmatprep.mubr.bf16.mxu0 %v4326_v49  ;;  %v2558_v2 = vrot.slane %v2557_v61, 4  ;;  %v2571_v7 = vor.u32 %v2570_v21, %v2567_v42  ;;  %v2350_v51 = vsel %vm5497_vm2, %v5988_v22, %v2349_v44  ;;  %v4284_v57 = vrot.slane %v2451_v58, 9  ;;  %v2453_v42 = vld [vmem:[#allocation2 + $0x28] sm:$0xe]  ;;  %v5118_v21 = vld [vmem:[#allocation3 + $0x210] sm:$0xff]  }
 0x1b9   : > { %3662 = vmatmul.mubr.bf16.vlgmr.msra.gmra.mrb[56].mxu0 %v4322_v5  ;;  %4711 = vmatpush3.bf16.msra.mxu1 %v5112_v38  ;;  %v4314_v23 = vcombine.low %v2350_v51, %v2364_v6  ;;  %v2483_v60 = vrot.slane %v6137_v40, 5  ;;  %v4285_v19 = vrot.slane %v2452_v63, 9  ;;  %v2487_v18 = vrot.slane %v6142_v47, 5  ;;  %v6193_v6 = vld [vmem:[#allocation2 + $0x2c] sm:$0x1] }
 0x1ba   : > { %v2563_v27 = vsel %vm5497_vm2, %v2558_v2, %v2562_v10  ;;  %v2572_v9 = vrot.slane %v2571_v7, 4  ;;  %4824 = vmatprep.subr.bf16.mxu1 %v5113_v43  ;;  %v2579_v22 = vshrl.u32 %v6149_v46, 16  ;;  %v2582_v29 = vshll.u32 %v6149_v46, 16  ;;  %4849 = vmatpush3.bf16.msra.mxu0 %v6097_v39  ;;  %v2454_v7 = vld [vmem:[#allocation2 + $0x30] sm:$0xe] }
 0x1bb   : > { %v2484_v28 = vsel %vm5915_vm12, %v4284_v57, %v2483_v60  ;;  %v2488_v36 = vsel %vm5915_vm12, %v4285_v19, %v2487_v18  ;;  %v2588_v45 = vshll.u32 %v6161_v62, 16  ;;  %v2593_v52 = vshrl.u32 %v6159_v8, 16  ;;  %4850 = vmatprep.subr.bf16.mxu0 %v6154_v4 }
 0x1bc   : > { %v2577_v37 = vsel %vm5497_vm2, %v2572_v9, %v2576_v13  ;;  %3597 = vmatmul.mubr.bf16.vlgmr.msra.gmra.mrb[48].mxu1 %v4314_v23  ;;  %v4319_v38 = vcombine.low %v2484_v28, %v2488_v36  ;;  %v2581_v11 = vrot.slane %v2579_v22, 4  ;;  %v2584_v14 = vrot.slane %v2582_v29, 5  ;;  %v6213_v29 = vld [vmem:[#allocation2 + $0x44] sm:$0x1]  ;;  %v5121_v28 = vld [vmem:[#allocation3 + $0x218] sm:$0xff]  }
 0x1bd   : > { %v4327_v58 = vcombine.low %v2563_v27, %v2577_v37  ;;  %4825 = vmatpush3.bf16.msra.mxu1 %v5113_v43  ;;  %v4323_v49 = vcombine.low %v6115_v54, %v6117_v26  ;;  %v2595_v44 = vrot.slane %v2593_v52, 4  ;;  %v2596_v61 = vshll.u32 %v6159_v8, 16  ;;  %v6195_v43 = vld [vmem:[#allocation2 + $0x34] sm:$0x1] }
 0x1be   : > { %3604 = vmatprep.mubr.bf16.mxu1 %v4319_v38  ;;  %v2585_v63 = vor.u32 %v2584_v14, %v2581_v11  ;;  %v2602_v5 = vshll.u32 %v6174_v0, 16  ;;  %4826 = vmatprep.subr.bf16.mxu1 %v5116_v31  ;;  %v2372_v10 = vor.u32 %v5999_v53, %v5993_v1  ;;  %v2375_v13 = vshll.u32 %v6137_v40, 16  ;;  %v6205_v40 = vld [vmem:[%s6448_s7 + $0x18] sm:$0xff]  }
 0x1bf   : > { %3669 = vmatprep.mubr.bf16.mxu0 %v4327_v58  ;;  %v2598_v54 = vrot.slane %v2596_v61, 5  ;;  %4851 = vmatpush3.bf16.msra.mxu0 %v6154_v4  ;;  %v2386_v26 = vor.u32 %v6027_v16, %v6001_v20  ;;  %v2389_v2 = vshll.u32 %v6142_v47, 16  ;;  %v4286_v51 = vrot.slane %v2453_v42, 9  ;;  %v6208_v47 = vld [vmem:[#allocation2 + $0x40] sm:$0xf] }
 0x1c0   : > { %v2586_v57 = vrot.slane %v2585_v63, 4  ;;  %v2590_v23 = vrot.slane %v2588_v45, 5  ;;  %v2373_v1 = vrot.slane %v2372_v10, 4  ;;  %v2377_v53 = vrot.slane %v2375_v13, 5  ;;  %4852 = vmatprep.subr.bf16.mxu0 %v6184_v48  ;;  %v6227_v42 = vld [vmem:[#allocation2 + $0x3c] sm:$0x1] }
 0x1c1   : > { %3670 = vmatmul.mubr.bf16.gmra.mrb[60].mxu0 %v4323_v49  ;;  %v2599_v60 = vor.u32 %v2598_v54, %v2595_v44  ;;  %4827 = vmatpush3.bf16.msra.mxu1 %v5116_v31  ;;  %v2387_v19 = vrot.slane %v2386_v26, 4  ;;  %v2391_v20 = vrot.slane %v2389_v2, 5  ;;  %v2491_v16 = vrot.slane %v6193_v6, 5  ;;  %v6232_v58 = vld [vmem:[%s6448_s7 + $0x20] sm:$0xff]   ;;  %v2455_v10 = vld [vmem:[#allocation2 + $0x38] sm:$0xe] }
 0x1c2   : > { %v2591_v18 = vsel %vm5497_vm2, %v2586_v57, %v2590_v23  ;;  %v2604_v27 = vrot.slane %v2602_v5, 5  ;;  %4828 = vmatprep.subr.bf16.mxu1 %v5118_v21  ;;  %v4287_v9 = vrot.slane %v2454_v7, 9  ;;  %v2495_v22 = vrot.slane %v6195_v43, 5  ;;  %v6239_v5 = vld [vmem:[#allocation2 + $0x44] sm:$0x1]  ;;  %v5123_v2 = vld [vmem:[#allocation3 + $0x220] sm:$0xff]  }
 0x1c3   : > { %v2600_v36 = vrot.slane %v2599_v60, 4  ;;  %v2378_v31 = vsel %vm5497_vm2, %v2373_v1, %v2377_v53  ;;  %v2392_v45 = vsel %vm5497_vm2, %v2387_v19, %v2391_v20  ;;  %v2492_v52 = vsel %vm5915_vm12, %v4286_v51, %v2491_v16  ;;  %4853 = vmatpush3.bf16.msra.mxu0 %v6184_v48  ;;  %v2456_v51 = vld [vmem:[#allocation2 + $0x40] sm:$0xe]  ;;  %v5126_v16 = vld [vmem:[#allocation3 + $0x228] sm:$0xff]  }
 0x1c4   : > { %v4315_v37 = vcombine.low %v2378_v31, %v2392_v45  ;;  %v2496_v38 = vsel %vm5915_vm12, %v4287_v9, %v2495_v22  ;;  %v2607_v11 = vshrl.u32 %v6208_v47, 16  ;;  %v2610_v14 = vshll.u32 %v6208_v47, 16  ;;  %4854 = vmatprep.subr.bf16.mxu0 %v6205_v40 }
 0x1c5   : > { %v2605_v49 = vsel %vm5497_vm2, %v2600_v36, %v2604_v27  ;;  %4829 = vmatpush3.bf16.msra.mxu1 %v5118_v21  ;;  %v4320_v44 = vcombine.low %v2492_v52, %v2496_v38  ;;  %v2616_v61 = vshll.u32 %v6213_v29, 16  ;;  %v2400_v63 = vor.u32 %v6035_v17, %v6031_v30  ;;  %v5128_v38 = vld [vmem:[#allocation3 + $0x230] sm:$0xff]  }
 0x1c6   : > { %v4328_v13 = vcombine.low %v2591_v18, %v2605_v49  ;;  %3605 = vmatmul.mubr.bf16.gmra.mrb[52].mxu1 %v4315_v37  ;;  %v2609_v54 = vrot.slane %v2607_v11, 4  ;;  %v2612_v26 = vrot.slane %v2610_v14, 5  ;;  %4830 = vmatprep.subr.bf16.mxu1 %v5121_v28  ;;  %v2403_v7 = vshll.u32 %v6193_v6, 16 }
 0x1c7   : > { %3612 = vmatprep.mubr.bf16.mxu1 %v4320_v44  ;;  %v4324_v21 = vcombine.low %v6149_v46, %v6159_v8  ;;  %4855 = vmatpush3.bf16.msra.mxu0 %v6205_v40  ;;  %v2401_v57 = vrot.slane %v2400_v63, 4  ;;  %v2414_v30 = vor.u32 %v6049_v24, %v6042_v33  ;;  %v2417_v17 = vshll.u32 %v6195_v43, 16  ;;  %v6253_v46 = vld [vmem:[%s6448_s7 + $0x28] sm:$0xff]   ;;  %v5132_v63 = vld [vmem:[%s5477_s20 + $0xd8] ss:$8 sps:$4 sm:$0xff]  }
 0x1c8   : > { %3677 = vmatprep.mubr.bf16.mxu0 %v4328_v13  ;;  %v2613_v23 = vor.u32 %v2612_v26, %v2609_v54  ;;  %v2405_v1 = vrot.slane %v2403_v7, 5  ;;  %v4288_v53 = vrot.slane %v2455_v10, 9  ;;  %v2499_v60 = vrot.slane %v6227_v42, 5  ;;  %4856 = vmatprep.subr.bf16.mxu0 %v6232_v58  ;;  %v6293_v54 = vld [vmem:[%s6448_s7 + $0x38] sm:$0xff]   ;;  %v5130_v26 = vld [vmem:[#allocation3 + $0x238] sm:$0xff]  }
 0x1c9   : > { %3678 = vmatmul.mubr.bf16.gmra.mrb[64].mxu0 %v4324_v21  ;;  %4831 = vmatpush3.bf16.msra.mxu1 %v5121_v28  ;;  %v2415_v8 = vrot.slane %v2414_v30, 4  ;;  %v2419_v6 = vrot.slane %v2417_v17, 5  ;;  %v4289_v33 = vrot.slane %v2456_v51, 9  ;;  %v2503_v24 = vrot.slane %v6239_v5, 5  ;;  %v2634_v28 = vld [vmem:[#allocation2 + $0x10] sm:$0xe] }
 0x1ca   : > { %v2614_v43 = vrot.slane %v2613_v23, 4  ;;  %v2618_v19 = vrot.slane %v2616_v61, 5  ;;  %v2633_v20 = vsel %vm5497_vm2, %v5967_v41, %v5974_v3  ;;  %4832 = vmatprep.subr.bf16.mxu1 %v5123_v2  ;;  %v2406_v18 = vsel %vm5497_vm2, %v2401_v57, %v2405_v1  ;;  %v2638_v7 = vld [vmem:[#allocation2 + $0x30] sm:$0xe]  ;;  %v2636_v57 = vld [vmem:[#allocation2 + $0x20] sm:$0xe] }
 0x1cb   : > { %v2420_v27 = vsel %vm5497_vm2, %v2415_v8, %v2419_v6  ;;  %v2504_v9 = vsel %vm5915_vm12, %v4289_v33, %v2503_v24  ;;  %4857 = vmatpush3.bf16.msra.mxu0 %v6232_v58  ;;  %v2428_v22 = vor.u32 %v6065_v34, %v6060_v59  ;;  %v2500_v36 = vsel %vm5915_vm12, %v4288_v53, %v2499_v60  ;;  %v2635_v34 = vld [vmem:[#allocation2 + $0x18] sm:$0xe]  ;;  %v5133_v6 = vld [vmem:[%s5477_s20 + $0xe8] ss:$8 sps:$4 sm:$0xff]  }
 0x1cc   : > { %v2619_v41 = vsel %vm5497_vm2, %v2614_v43, %v2618_v19  ;;  %v4316_v3 = vcombine.low %v2406_v18, %v2420_v27  ;;  %4858 = vmatprep.subr.bf16.mxu0 %v6253_v46  ;;  %v2442_v31 = vor.u32 %v6109_v50, %v6105_v35  ;;  %v4321_v52 = vcombine.low %v2500_v36, %v2504_v9  ;;  %v6282_v35 = vld [vmem:[%s6448_s7 + $0x30] sm:$0xff]   ;;  %v5136_v50 = vld [vmem:[#allocation2 + $0x48] sm:$0xf]  ;;  %v2639_v1 = vld [vmem:[#allocation2 + $0x38] sm:$0xe] }
 0x1cd   : > { %v4329_v45 = vcombine.low %v2619_v41, %v2633_v20  ;;  %4833 = vmatpush3.bf16.msra.mxu1 %v5123_v2  ;;  %v2431_v37 = vshll.u32 %v6227_v42, 16  ;;  %v2445_v59 = vshll.u32 %v6239_v5, 16  ;;  %v4290_v14 = vrot.slane %v2634_v28, 9  ;;  %v2637_v2 = vld [vmem:[#allocation2 + $0x28] sm:$0xe] }
 0x1ce   : > { %3613 = vmatmul.mubr.bf16.gmra.mrb[56].mxu1 %v4316_v3  ;;  %4834 = vmatprep.subr.bf16.mxu1 %v5126_v16  ;;  %v2443_v11 = vrot.slane %v2442_v31, 4  ;;  %v2660_v49 = vrot.slane %v6080_v25, 5  ;;  %v4325_v42 = vcombine.low %v6208_v47, %v5136_v50  ;;  %v2429_v44 = vrot.slane %v2428_v22, 4  ;;  %v2641_v43 = vld [vmem:[#allocation2 + $0x48] sm:$0xe] }
 0x1cf   : > { %3685 = vmatprep.mubr.bf16.mxu0 %v4329_v45  ;;  %3620 = vmatprep.mubr.bf16.mxu1 %v4321_v52  ;;  %v2447_v61 = vrot.slane %v2445_v59, 5  ;;  %v4291_v5 = vrot.slane %v2635_v34, 9  ;;  %v2664_v10 = vrot.slane %v6086_v32, 5  ;;  %v2433_v25 = vrot.slane %v2431_v37, 5  ;;  %v2640_v19 = vld [vmem:[#allocation2 + $0x40] sm:$0xe] }
 0x1d0   : > { %4859 = vmatpush3.bf16.msra.mxu0 %v6253_v46  ;;  %v2661_v47 = vsel %vm5915_vm12, %v4290_v14, %v2660_v49  ;;  %v2672_v30 = vrot.slane %v6128_v15, 5  ;;  %v4293_v23 = vrot.slane %v2637_v2, 9  ;;  %v4294_v55 = vrot.slane %v2638_v7, 9  ;;  %v5137_v22 = vld [vmem:[#allocation2 + $0x4c] sm:$0x1] }
 0x1d1   : > { %3686 = vmatmul.mubr.bf16.gmra.mrb[68].mxu0 %v4325_v42  ;;  %4835 = vmatpush3.bf16.msra.mxu1 %v5126_v16  ;;  %v2448_v13 = vsel %vm5497_vm2, %v2443_v11, %v2447_v61  ;;  %v2434_v32 = vsel %vm5497_vm2, %v2429_v44, %v2433_v25  ;;  %v2665_v21 = vsel %vm5915_vm12, %v4291_v5, %v2664_v10  ;;  %v2676_v53 = vrot.slane %v6161_v62, 5  ;;  %v5134_v36 = vld [vmem:[%s5477_s20 + $0xf8] ss:$8 sps:$4 sm:$0xff]   ;;  %s4443_s20 = sshll.u32 %s5317_s17, 10  ;;  %s6400_s17 = scalar_lea.sflag [#allocation5], %s365_s18 }
 0x1d2   : > { %4836 = vmatprep.subr.bf16.mxu1 %v5128_v38  ;;  %4860 = vmatprep.subr.bf16.mxu0 %v6282_v35  ;;  %v4317_v51 = vcombine.low %v2434_v32, %v2448_v13  ;;  %v4330_v17 = vcombine.low %v2661_v47, %v2665_v21  ;;  %v2668_v60 = vrot.slane %v6121_v56, 5  ;;  %v4292_v8 = vrot.slane %v2636_v57, 9  ;;  %s6391_s29 = scalar_lea.hbm %s6451_s10, %s4443_s20 }
 0x1d3   : > { %4864 = vmatprep.mubr.bf16.mxu0 %v5132_v63  ;;  %v4295_v33 = vrot.slane %v2639_v1, 9  ;;  %v2680_v15 = vrot.slane %v6174_v0, 5  ;;  %v2673_v24 = vsel %vm5915_vm12, %v4293_v23, %v2672_v30  ;;  %v2677_v62 = vsel %vm5915_vm12, %v4294_v55, %v2676_v53 }
 0x1d4   : > { %4861 = vmatpush3.bf16.msra.mxu0 %v6282_v35  ;;  %v2669_v56 = vsel %vm5915_vm12, %v4292_v8, %v2668_v60  ;;  %v4297_v16 = vrot.slane %v2641_v43, 9  ;;  %v4296_v27 = vrot.slane %v2640_v19, 9  ;;  %v2684_v9 = vrot.slane %v6213_v29, 5 }
 0x1d5   : > { %4837 = vmatpush3.bf16.msra.mxu1 %v5128_v38  ;;  %4862 = vmatprep.subr.bf16.mxu0 %v6293_v54  ;;  %v4331_v20 = vcombine.low %v2669_v56, %v2673_v24  ;;  %v2681_v0 = vsel %vm5915_vm12, %v4295_v33, %v2680_v15  ;;  %v2688_v28 = vrot.slane %v5137_v22, 5 }
 0x1d6   : > { %3621 = vmatmul.mubr.bf16.gmra.mrb[60].mxu1 %v4317_v51  ;;  %4838 = vmatprep.subr.bf16.mxu1 %v5130_v26  ;;  %v4332_v18 = vcombine.low %v2677_v62, %v2681_v0  ;;  %v2685_v41 = vsel %vm5915_vm12, %v4296_v27, %v2684_v9 }
 0x1d7   : > { %4840 = vmatprep.mubr.bf16.mxu1 %v4330_v17  ;;  %v2689_v3 = vsel %vm5915_vm12, %v4297_v16, %v2688_v28 }
 0x1d8   : > { %4863 = vmatpush3.bf16.msra.mxu0 %v6293_v54  ;;  %v4333_v29 = vcombine.low %v2685_v41, %v2689_v3 }
 0x1d9   : > { %4839 = vmatpush3.bf16.msra.mxu1 %v5130_v26 }
 0x1da   : > { %4872 = vmatprep.subr.bf16.mxu1 %v6097_v39 }
 0x1db   : > { %4865 = vmatmul.mubr.bf16.vlgmr.msra.gmra.mrb[72].mxu0 %v5133_v6 }
 0x1de   : > { %4841 = vmatmul.mubr.bf16.vlgmr.msra.gmra.mrb[64].mxu1 %v4331_v20 }
 0x1df   : > { %4880 = vmatpush3.bf16.msra.mxu1 %v6097_v39  ;;  %4844 = vmatprep.mubr.bf16.mxu1 %v4332_v18 }
 0x1e0   : > { %4873 = vmatprep.subr.bf16.mxu1 %v6154_v4 }
 0x1e3   : > { %4881 = vmatpush3.bf16.msra.mxu1 %v6154_v4 }
 0x1e4   : > { %4874 = vmatprep.subr.bf16.mxu1 %v6184_v48 }
 0x1e6   : > { %4845 = vmatmul.mubr.bf16.gmra.mrb[68].mxu1 %v4333_v29 }
 0x1e7   : > { %4882 = vmatpush3.bf16.msra.mxu1 %v6184_v48  ;;  %4868 = vmatprep.mubr.bf16.mxu1 %v5134_v36 }
 0x1e8   : > { %4875 = vmatprep.subr.bf16.mxu1 %v6205_v40 }
 0x1eb   : > { %4883 = vmatpush3.bf16.msra.mxu1 %v6205_v40 }
 0x1ec   : > { %4876 = vmatprep.subr.bf16.mxu1 %v6232_v58 }
 0x1ef   : > { %4884 = vmatpush3.bf16.msra.mxu1 %v6232_v58 }
 0x1f0   : > { %4877 = vmatprep.subr.bf16.mxu1 %v6253_v46 }
 0x1f3   : > { %4885 = vmatpush3.bf16.msra.mxu1 %v6253_v46 }
 0x1f4   : > { %4878 = vmatprep.subr.bf16.mxu1 %v6282_v35 }
 0x1f7   : > { %4886 = vmatpush3.bf16.msra.mxu1 %v6282_v35 }
 0x1f8   : > { %4879 = vmatprep.subr.bf16.mxu1 %v6293_v54 }
 0x1fb   : > { %4887 = vmatpush3.bf16.msra.mxu1 %v6293_v54 }
 0x1fe   : > { %4869 = vmatmul.mubr.bf16.vlgmr.msra.gmra.mrb[72].mxu1 %v5135_v12 }
 0x264   : > { %v4672_v39 = vpop.f32.mrb[40].mxu0 }
 0x265   : > { %v4673_v4 = vpop.f32.mrb[41].mxu0 }
 0x266   : > { %v4674_v48 = vadd.f32 %v4673_v4, %v4672_v39  ;;  %v4675_v40 = vpop.f32.mrb[42].mxu0 }
 0x267   : > { %v4676_v31 = vpop.f32.mrb[43].mxu0 }
 0x268   : > { %v4677_v58 = vadd.f32 %v4676_v31, %v4675_v40 }
 0x26e   : > { %v4678_v45 = vpop.f32.mrb[44].mxu0 }
 0x26f   : > { %v4632_v52 = vpop.f32.mrb[32].mxu1  ;;  %v4679_v37 = vpop.f32.mrb[45].mxu0 }
 0x270   : > { %v4633_v46 = vpop.f32.mrb[33].mxu1  ;;  %v4680_v59 = vadd.f32 %v4679_v37, %v4678_v45  ;;  %v4681_v34 = vpop.f32.mrb[46].mxu0 }
 0x271   : > { %v4634_v38 = vadd.f32 %v4633_v46, %v4632_v52  ;;  %v4635_v11 = vpop.f32.mrb[34].mxu1  ;;  %v4682_v14 = vpop.f32.mrb[47].mxu0 }
 0x272   : > { %v4636_v49 = vpop.f32.mrb[35].mxu1  ;;  %v4683_v35 = vadd.f32 %v4682_v14, %v4681_v34 }
 0x273   : > { %v3534_v50 = vadd.f32 %v4674_v48, %v4634_v38  ;;  %v4637_v42 = vadd.f32 %v4636_v49, %v4635_v11 }
 0x275   : > { %v3537_v44 = vadd.f32 %v4677_v58, %v4637_v42 }
 0x277   : > { %v4638_v61 = vpop.f32.mrb[36].mxu1 }
 0x278   : > { %v4639_v63 = vpop.f32.mrb[37].mxu1  ;;  %v4684_v5 = vpop.f32.mrb[48].mxu0 }
 0x279   : > { %v4640_v10 = vadd.f32 %v4639_v63, %v4638_v61  ;;  %v4641_v25 = vpop.f32.mrb[38].mxu1  ;;  %v4685_v13 = vpop.f32.mrb[49].mxu0 }
 0x27a   : > { %v4686_v54 = vadd.f32 %v4685_v13, %v4684_v5  ;;  %v4642_v47 = vpop.f32.mrb[39].mxu1  ;;  %v4687_v26 = vpop.f32.mrb[50].mxu0 }
 0x27b   : > { %v3542_v2 = vadd.f32 %v4680_v59, %v4640_v10  ;;  %v4643_v32 = vadd.f32 %v4642_v47, %v4641_v25  ;;  %v4688_v7 = vpop.f32.mrb[51].mxu0 }
 0x27c   : > { %v4689_v51 = vadd.f32 %v4688_v7, %v4687_v26 }
 0x27d   : > { %v3545_v21 = vadd.f32 %v4683_v35, %v4643_v32 }
 0x27f   : > { %v4644_v57 = vpop.f32.mrb[40].mxu1 }
 0x280   : > { %v4645_v30 = vpop.f32.mrb[41].mxu1 }
 0x281   : > { %v4646_v17 = vadd.f32 %v4645_v30, %v4644_v57  ;;  %v4690_v23 = vpop.f32.mrb[52].mxu0  ;;  %v4647_v1 = vpop.f32.mrb[42].mxu1 }
 0x282   : > { %v4691_v55 = vpop.f32.mrb[53].mxu0  ;;  %v4648_v53 = vpop.f32.mrb[43].mxu1 }
 0x283   : > { %v3550_v60 = vadd.f32 %v4686_v54, %v4646_v17  ;;  %v4692_v8 = vadd.f32 %v4691_v55, %v4690_v23  ;;  %v4649_v6 = vadd.f32 %v4648_v53, %v4647_v1  ;;  %v4693_v33 = vpop.f32.mrb[54].mxu0 }
 0x284   : > { %v4694_v15 = vpop.f32.mrb[55].mxu0 }
 0x285   : > { %v3553_v24 = vadd.f32 %v4689_v51, %v4649_v6  ;;  %v4695_v43 = vadd.f32 %v4694_v15, %v4693_v33 }
 0x287   : > { %v4650_v62 = vpop.f32.mrb[44].mxu1 }
 0x288   : > { %v4651_v19 = vpop.f32.mrb[45].mxu1 }
 0x289   : > { %v4652_v56 = vadd.f32 %v4651_v19, %v4650_v62  ;;  %v4653_v20 = vpop.f32.mrb[46].mxu1 }
 0x28a   : > { %v4654_v0 = vpop.f32.mrb[47].mxu1 }
 0x28b   : > { %v3558_v16 = vadd.f32 %v4692_v8, %v4652_v56  ;;  %v4655_v18 = vadd.f32 %v4654_v0, %v4653_v20 }
 0x28c   : > { %v4752_v27 = vpop.f32.mrb[56].mxu0 }
 0x28d   : > { %v4753_v9 = vpop.f32.mrb[57].mxu0  ;;  %v3561_v22 = vadd.f32 %v4695_v43, %v4655_v18 }
 0x28e   : > { %v4754_v28 = vadd.f32 %v4753_v9, %v4752_v27  ;;  %v4755_v41 = vpop.f32.mrb[58].mxu0 }
 0x28f   : > { %v4756_v3 = vpop.f32.mrb[59].mxu0  ;;  %v4712_v36 = vpop.f32.mrb[48].mxu1 }
 0x290   : > { %v4757_v29 = vadd.f32 %v4756_v3, %v4755_v41  ;;  %v4713_v12 = vpop.f32.mrb[49].mxu1 }
 0x291   : > { %v4714_v39 = vadd.f32 %v4713_v12, %v4712_v36  ;;  %v4715_v4 = vpop.f32.mrb[50].mxu1  ;;  %v4406_v12 = vld [vmem:[%s6446_s5] ss:$0 sm:$0xff] }
 0x292   : > { %v4716_v48 = vpop.f32.mrb[51].mxu1 }
 0x293   : > { %v3599_v40 = vadd.f32 %v4714_v39, %v3534_v50  ;;  %v4717_v31 = vadd.f32 %v4716_v48, %v4715_v4 }
 0x294   : > { %v4758_v58 = vpop.f32.mrb[60].mxu0 }
 0x295   : > { %v4759_v45 = vpop.f32.mrb[61].mxu0  ;;  %v3602_v52 = vadd.f32 %v4717_v31, %v3537_v44  ;;  %v3664_v37 = vadd.f32 %v4754_v28, %v3599_v40 }
 0x296   : > { %v4760_v46 = vadd.f32 %v4759_v45, %v4758_v58  ;;  %v4761_v59 = vpop.f32.mrb[62].mxu0  ;;  %v4407_v58 = vld [vmem:[%s6447_s6] ss:$0 sm:$0xff] }
 0x297   : > { %v4762_v34 = vpop.f32.mrb[63].mxu0  ;;  %v6341_v38 = vadd.f32 %v4757_v29, %v3602_v52 }
 0x298   : > { %v4763_v11 = vadd.f32 %v4762_v34, %v4761_v59 }
 0x299   : > { %v4718_v14 = vpop.f32.mrb[52].mxu1 }
 0x29a   : > { %v4719_v49 = vpop.f32.mrb[53].mxu1 }
 0x29b   : > { %v4720_v35 = vadd.f32 %v4719_v49, %v4718_v14  ;;  %v4721_v42 = vpop.f32.mrb[54].mxu1 }
 0x29c   : > { %v4764_v61 = vpop.f32.mrb[64].mxu0  ;;  %v4722_v63 = vpop.f32.mrb[55].mxu1 }
 0x29d   : > { %v3607_v5 = vadd.f32 %v4720_v35, %v3542_v2  ;;  %v4765_v10 = vpop.f32.mrb[65].mxu0  ;;  %v4723_v50 = vadd.f32 %v4722_v63, %v4721_v42 }
 0x29e   : > { %v4766_v25 = vadd.f32 %v4765_v10, %v4764_v61  ;;  %v4767_v13 = vpop.f32.mrb[66].mxu0 }
 0x29f   : > { %v3610_v54 = vadd.f32 %v4723_v50, %v3545_v21  ;;  %v4768_v44 = vpop.f32.mrb[67].mxu0  ;;  %v3672_v47 = vadd.f32 %v4760_v46, %v3607_v5 }
 0x2a0   : > { %v4769_v26 = vadd.f32 %v4768_v44, %v4767_v13 }
 0x2a1   : > { %v4724_v32 = vpop.f32.mrb[56].mxu1  ;;  %v3675_v7 = vadd.f32 %v4763_v11, %v3610_v54 }
 0x2a2   : > { %v4725_v51 = vpop.f32.mrb[57].mxu1 }
 0x2a3   : > { %v4726_v57 = vadd.f32 %v4725_v51, %v4724_v32  ;;  %v4727_v30 = vpop.f32.mrb[58].mxu1 }
 0x2a4   : > { %v4770_v17 = vpop.f32.mrb[68].mxu0  ;;  %v4728_v23 = vpop.f32.mrb[59].mxu1 }
 0x2a5   : > { %v3615_v1 = vadd.f32 %v4726_v57, %v3550_v60  ;;  %v4771_v55 = vpop.f32.mrb[69].mxu0  ;;  %v4729_v53 = vadd.f32 %v4728_v23, %v4727_v30  ;;  %v6346_v60 = vld [vmem:[%s6449_s8] ss:$0 sm:$0xff] }
 0x2a6   : > { %v4772_v8 = vadd.f32 %v4771_v55, %v4770_v17  ;;  %v4773_v2 = vpop.f32.mrb[70].mxu0 }
 0x2a7   : > { %v3618_v6 = vadd.f32 %v4729_v53, %v3553_v24  ;;  %v4774_v33 = vpop.f32.mrb[71].mxu0  ;;  %v3680_v15 = vadd.f32 %v4766_v25, %v3615_v1 }
 0x2a8   : > { %v4775_v43 = vadd.f32 %v4774_v33, %v4773_v2 }
 0x2a9   : > { %v4730_v21 = vpop.f32.mrb[60].mxu1  ;;  %v3683_v62 = vadd.f32 %v4769_v26, %v3618_v6 }
 0x2aa   : > { %v4731_v19 = vpop.f32.mrb[61].mxu1 }
 0x2ab   : > { %v4732_v56 = vadd.f32 %v4731_v19, %v4730_v21  ;;  %v4733_v20 = vpop.f32.mrb[62].mxu1 }
 0x2ac   : > { %v4734_v0 = vpop.f32.mrb[63].mxu1 }
 0x2ad   : > { %v3623_v18 = vadd.f32 %v4732_v56, %v3558_v16  ;;  %v4735_v27 = vadd.f32 %v4734_v0, %v4733_v20  ;;  %v6355_v16 = vld [vmem:[%s6450_s9] ss:$0 sm:$0xff] }
 0x2ae   : > { %v4866_v9 = vpop.f32.mrb[72].mxu0 }
 0x2af   : > { %v3626_v28 = vadd.f32 %v4735_v27, %v3561_v22  ;;  %v3919_v41 = vpop.f32.mrb[73].mxu0  ;;  %v3688_v24 = vadd.f32 %v4772_v8, %v3623_v18  ;;  %v3959_v3 = vmul.f32 %v4866_v9, %v6346_v60 }
 0x2b0   : > { %v4867_v36 = vpop.f32.mrb[74].mxu0  ;;  %v3957_v39 = vmul.f32 %v6346_v60, %v3919_v41 }
 0x2b1   : > { %v4842_v29 = vpop.f32.mrb[64].mxu1  ;;  %v3922_v4 = vpop.f32.mrb[75].mxu0  ;;  %v3691_v22 = vadd.f32 %v4775_v43, %v3626_v28  ;;  %v3960_v31 = vmul.f32 %v4867_v36, %v6346_v60  ;;  %v3974_v11 = vadd.f32 %v6355_v16, %v3959_v3 }
 0x2b2   : > { %v3737_v48 = vadd.f32 %v4842_v29, %v3672_v47  ;;  %v3728_v40 = vpop.f32.mrb[65].mxu1  ;;  %v3958_v46 = vmul.f32 %v6346_v60, %v3922_v4  ;;  %v3972_v42 = vadd.f32 %v6355_v16, %v3957_v39 }
 0x2b3   : > { %v3729_v45 = vadd.f32 %v3728_v40, %v3664_v37  ;;  %v4843_v52 = vpop.f32.mrb[66].mxu1  ;;  %v3975_v37 = vadd.f32 %v6355_v16, %v3960_v31 }
 0x2b4   : > { %v3768_v59 = vmul.f32 %v4406_v12, %v3737_v48  ;;  %v3740_v34 = vadd.f32 %v4843_v52, %v3675_v7  ;;  %v3731_v14 = vpop.f32.mrb[67].mxu1  ;;  %v3973_v50 = vadd.f32 %v6355_v16, %v3958_v46 }
 0x2b5   : > { %v3766_v49 = vmul.f32 %v4406_v12, %v3729_v45  ;;  %v3732_v35 = vadd.f32 %v3731_v14, %v6341_v38 }
 0x2b6   : > { %v3783_v61 = vadd.f32 %v4407_v58, %v3768_v59  ;;  %v3769_v63 = vmul.f32 %v4406_v12, %v3740_v34 }
 0x2b7   : > { %v3781_v5 = vadd.f32 %v4407_v58, %v3766_v49  ;;  %v3767_v10 = vmul.f32 %v4406_v12, %v3732_v35 }
 0x2b8   : > { %v3784_v25 = vadd.f32 %v4407_v58, %v3769_v63  ;;  %v3982_v13 = vadd.f32 %v3974_v11, %v3783_v61 }
 0x2b9   : > { %v3782_v54 = vadd.f32 %v4407_v58, %v3767_v10  ;;  %v3980_v44 = vadd.f32 %v3972_v42, %v3781_v5  ;;  %v4846_v47 = vpop.f32.mrb[68].mxu1 }
 0x2ba   : > { %v3990_v26 = vmax.f32 %v3982_v13, 0.0  ;;  %v3983_v32 = vadd.f32 %v3975_v37, %v3784_v25  ;;  %v3753_v38 = vadd.f32 %v4846_v47, %v3688_v24  ;;  %v3744_v7 = vpop.f32.mrb[69].mxu1 }
 0x2bb   : > { %v3988_v51 = vmax.f32 %v3980_v44, 0.0  ;;  %v3981_v57 = vadd.f32 %v3973_v50, %v3782_v54  ;;  %v3745_v30 = vadd.f32 %v3744_v7, %v3680_v15  ;;  %v4847_v17 = vpop.f32.mrb[70].mxu1 }
 0x2bc   : > { %3998 = vst [vmem:[%s6371_s28 + $0x10] sm:$0xff] %v3990_v26  ;;  %v3991_v23 = vmax.f32 %v3983_v32, 0.0  ;;  %v3756_v1 = vadd.f32 %v4847_v17, %v3691_v22  ;;  %v3747_v55 = vpop.f32.mrb[71].mxu1  ;;  %v3772_v2 = vmul.f32 %v4406_v12, %v3753_v38 }
 0x2bd   : > { %3996 = vst [vmem:[%s6371_s28] sm:$0xff] %v3988_v51  ;;  %v3989_v53 = vmax.f32 %v3981_v57, 0.0  ;;  %v3748_v8 = vadd.f32 %v3747_v55, %v3683_v62  ;;  %v3770_v6 = vmul.f32 %v4406_v12, %v3745_v30 }
 0x2be   : > { %3999 = vst [vmem:[%s6371_s28 + $0x18] sm:$0xff] %v3991_v23  ;;  %v3773_v15 = vmul.f32 %v4406_v12, %v3756_v1  ;;  %v3787_v0 = vadd.f32 %v4407_v58, %v3772_v2 }
 0x2bf   : > { %3997 = vst [vmem:[%s6371_s28 + $0x8] sm:$0xff] %v3989_v53  ;;  %v3771_v19 = vmul.f32 %v4406_v12, %v3748_v8  ;;  %v3785_v9 = vadd.f32 %v4407_v58, %v3770_v6 }
 0x2c0   : > { %v3788_v24 = vadd.f32 %v4407_v58, %v3773_v15 }
 0x2c1   : > { %v3786_v29 = vadd.f32 %v4407_v58, %v3771_v19 }
 0x2d1   : > { %v4870_v33 = vpop.f32.mrb[72].mxu1 }
 0x2d2   : > { %v3963_v43 = vmul.f32 %v4870_v33, %v6346_v60  ;;  %v3935_v21 = vpop.f32.mrb[73].mxu1 }
 0x2d3   : > { %v3961_v56 = vmul.f32 %v6346_v60, %v3935_v21  ;;  %v4871_v20 = vpop.f32.mrb[74].mxu1 }
 0x2d4   : > { %v3978_v18 = vadd.f32 %v6355_v16, %v3963_v43  ;;  %v3964_v62 = vmul.f32 %v4871_v20, %v6346_v60  ;;  %v3938_v27 = vpop.f32.mrb[75].mxu1 }
 0x2d5   : > { %v3976_v28 = vadd.f32 %v6355_v16, %v3961_v56  ;;  %v3962_v41 = vmul.f32 %v6346_v60, %v3938_v27 }
 0x2d6   : > { %v3986_v3 = vadd.f32 %v3978_v18, %v3787_v0  ;;  %v3979_v36 = vadd.f32 %v6355_v16, %v3964_v62 }
 0x2d7   : > { %v3984_v12 = vadd.f32 %v3976_v28, %v3785_v9  ;;  %v3977_v39 = vadd.f32 %v6355_v16, %v3962_v41 }
 0x2d8   : > { %v3994_v4 = vmax.f32 %v3986_v3, 0.0  ;;  %v3987_v22 = vadd.f32 %v3979_v36, %v3788_v24 }
 0x2d9   : > { %v3992_v48 = vmax.f32 %v3984_v12, 0.0  ;;  %v3985_v40 = vadd.f32 %v3977_v39, %v3786_v29 }
 0x2da   : > { %4002 = vst [vmem:[%s6371_s28 + $0x30] sm:$0xff] %v3994_v4  ;;  %v3995_v60 = vmax.f32 %v3987_v22, 0.0 }
 0x2db   : > { %4000 = vst [vmem:[%s6371_s28 + $0x20] sm:$0xff] %v3992_v48  ;;  %v3993_v16 = vmax.f32 %v3985_v40, 0.0 }
 0x2dc   : > { %4003 = vst [vmem:[%s6371_s28 + $0x38] sm:$0xff] %v3995_v60 }
 0x2dd   : > { %4001 = vst [vmem:[%s6371_s28 + $0x28] sm:$0xff] %v3993_v16 }
 0x2de   : > { %5179 = shalt.err (!%p5176_p7)
}
 0x2df   : > { %s5180_s18 = scalar_lea.hbm %s6391_s29, 1024  ;;  %s5184_s27 = scalar_lea.hbm %s6451_s10, 2048 }
 0x2e0   : > { %p5181_p8 = scmp.ne.s32.totalorder %s6391_s29, %s5180_s18  ;;  %p5185_p1 = scmp.lt.u32.totalorder %s6391_s29, %s6451_s10 }
 0x2e1   : > { %p5186_p0 = scmp.lt.u32.totalorder %s5184_s27, %s5180_s18  ;;  %p5188_p6 = scmp.lt.u32.totalorder %s5180_s18, %s6391_s29 }
 0x2e2   : > { %p5182_p11 = pnand %p5181_p8, %p6472_p9 }
 0x2e3   : > { %p5187_p5 = por %p5186_p0, %p5185_p1 }
 0x2e4   : > { %p5183_p13 = pneg %p5182_p11 }
 0x2e5   : > { %p5189_p10 = por %p5188_p6, %p5187_p5 }
 0x2e7   : > { %p5190_p12 = pnand %p5189_p10, %p5183_p13 }
 0x2e9   : > { %5193 = shalt.err (!%p5190_p12)
}
 0x2ea   : > { %s5239_s30 = smov 128   ;;  %s5240_s21 = smov 8  }
 0x2eb   : > { %4893 = dma.vmem_to_hbm [thread:$0]  (%p6472_p9), %s6393_s11, 1024, %s6391_s29, %s6400_s17, %s5239_s30, %s5239_s30, %s5240_s21  }
 0x2ec PF: > { %p4905_p2 = scmp.ge.s32.totalorder %s5232_s16, 2  ;;  %s4033_s26 = sand.u32 1, %s5220_s13  }
 0x2ed   : > { %p6473_p3 = scmp.ne.s32.totalorder %s6456_s24, 0  ;;  %s4034_s18 = scalar_lea.sflag [#allocation5], %s4033_s26 }
 0x2ef   : > { %p4900_p4 = pnand %p4905_p2, %p6473_p3 }
 0x2f1   : > { %5215 = dma.done.wait (!%p4900_p4), %s4034_s18, 1024  }
 0x2f2   : > { %5217 = vsyncadd (!%p4900_p4), %s4034_s18, 4294966272  ;;  %p21_p7 = scmp.ge.s32.totalorder %s5321_s19, 4   ;;  %s6474_s13 = smov %s5224_s14 }
 0x2f3   : > { %s6475_s14 = smov %s5228_s15  ;;  %s6476_s15 = smov %s5332_s22 }
 0x2f4   : > { %s6477_s16 = smov %s5321_s19  ;;  %23 = sbr.rel (!%p21_p7) target bundleno = 4 (0x4), region = 108 }
 0x2fb   :  { %4039 = vsyncpa [#allocation4], 1 }
 0x2fc   :  { %4041 = vsyncpa [#allocation4 + $0x1], 1 }
 0x2fd   :  { %4042 = vsyncpa [#allocation5], 1 }
 0x2fe   :  { %4044 = vsyncpa [#allocation5 + $0x1], 1 }

</bundles_post_ra>
